<compile_context>
chip_gen: v6e
topology: v6e:2x2x1
jax: 0.10.0
libtpu: 0.0.40
codegen_flags: <defaults>
</compile_context>

<pallas_src>
import functools
import math

import jax
import jax.numpy as jnp
from jax.experimental import pallas as pl
from jax.experimental.pallas import tpu as pltpu

_MASK_FILL = -9e15
_LN_EPS = 1e-6
_GELU_C = math.sqrt(2.0 / math.pi)
_DOT_DTYPE = jnp.bfloat16      # MXU operand dtype; accumulation is always f32
_LANE = 128                    # pad N to a lane multiple -> lane-dense score stores


def _round_up(v, m):
    return (v + m - 1) // m * m


def _pick_vmem_limit():
    """Generation-aware scoped-VMEM limit (bytes)."""
    try:
        kind = jax.devices()[0].device_kind.lower()
    except Exception:
        return 64 * 1024 * 1024
    if "v7" in kind:
        return 48 * 1024 * 1024          # v7x: 64 MiB physical VMEM per TC
    if "v5" in kind or "v6" in kind:
        return 96 * 1024 * 1024          # v5e/v6e: 128 MiB physical VMEM
    return 64 * 1024 * 1024


# -----------------------------------------------------------------------------
# In-kernel helpers (traced inside the fused kernel body)
# -----------------------------------------------------------------------------
def _layer_norm(o, gamma, beta):
    # Single-pass statistics: E[x], E[x^2] -> biased variance (LayerNorm).
    mu = jnp.mean(o, axis=-1, keepdims=True)
    ex2 = jnp.mean(o * o, axis=-1, keepdims=True)
    var = jnp.maximum(ex2 - mu * mu, 0.0)
    return (o - mu) * jax.lax.rsqrt(var + _LN_EPS) * gamma + beta


def _feed_forward(x2, w1, b1, w2, b2, gamma, beta):
    h = jnp.dot(x2.astype(_DOT_DTYPE), w1,
                preferred_element_type=jnp.float32) + b1
    # tanh-GELU (matches the custom GELU module in the reference)
    h = 0.5 * h * (1.0 + jnp.tanh(_GELU_C * (h + 0.044715 * h * h * h)))
    y = jnp.dot(h.astype(_DOT_DTYPE), w2,
                preferred_element_type=jnp.float32) + b2
    return _layer_norm(x2 + y, gamma, beta)


def _mha(x2, bias_b, wq_ref, wk_ref, wv_ref, gamma, beta,
         scores_ref, att_idx, bb, Np, D, H):
    """Multi-head attention on one batch tile.

    Projections use per-head weight slices (pre-split in the wrapper), so no
    in-kernel lane-slicing / relayout of the (N, D) activations is needed.
    Scores are stored directly into the final (n_att, B, H, N, N) layout.
    """
    dk = D // H
    scale = 1.0 / math.sqrt(dk)
    xc = x2.astype(_DOT_DTYPE)

    head_outs = []
    for h in range(H):                                 # static unroll; H small
        q = (jnp.dot(xc, wq_ref[att_idx, h],
                     preferred_element_type=jnp.float32) * scale).reshape(bb, Np, dk)
        k = jnp.dot(xc, wk_ref[att_idx, h],
                    preferred_element_type=jnp.float32).reshape(bb, Np, dk)
        v = jnp.dot(xc, wv_ref[att_idx, h],
                    preferred_element_type=jnp.float32).reshape(bb, Np, dk)

        # Batched over the batch tile, contracting dk (no explicit transpose).
        s = jnp.einsum('bqd,bkd->bqk',
                       q.astype(_DOT_DTYPE), k.astype(_DOT_DTYPE),
                       preferred_element_type=jnp.float32) + bias_b
        m = jnp.max(s, axis=-1, keepdims=True)
        p = jnp.exp(s - m)
        inv = 1.0 / jnp.sum(p, axis=-1, keepdims=True)   # exact normalization
        probs = p * inv
        scores_ref[att_idx, :, h] = probs                # final layout, static idx
        head_outs.append(
            jnp.einsum('bqk,bkd->bqd',
                       probs.astype(_DOT_DTYPE), v.astype(_DOT_DTYPE),
                       preferred_element_type=jnp.float32))

    attn = jnp.concatenate(head_outs, axis=-1).reshape(bb * Np, D)
    return _layer_norm(attn + x2, gamma, beta)


# -----------------------------------------------------------------------------
# Fused kernel: the full n_layers stack for one batch tile per grid step
# -----------------------------------------------------------------------------
def _fused_kernel(x_ref, bias_ref,
                  wq_ref, wk_ref, wv_ref, ag_ref, ab_ref,
                  w1_ref, b1_ref, w2_ref, b2_ref, fg_ref, fb_ref,
                  scores_ref, out_ref, *, heads, n_layers):
    bb, Np, D = x_ref.shape
    x2 = x_ref[...].reshape(bb * Np, D)       # activations stay VMEM-resident
    # Key-mask bias broadcast ONCE per grid step (no per-head re-broadcast).
    bias_b = jnp.broadcast_to(bias_ref[...], (bb, Np, Np))

    att_idx = 0
    for n in range(n_layers):                 # static unroll of the layer stack
        if n % 2 == 0:
            # TODO(synk): GatedGCNLayer is not defined in the reference source;
            # even (GCN) sub-layers are identity on x (graph g, edges e unused).
            pass
        else:
            x2 = _mha(x2, bias_b,
                      wq_ref, wk_ref, wv_ref,
                      ag_ref[att_idx], ab_ref[att_idx],
                      scores_ref, att_idx, bb, Np, D, heads)
            att_idx += 1
        x2 = _feed_forward(x2, w1_ref[n], b1_ref[n], w2_ref[n], b2_ref[n],
                           fg_ref[n], fb_ref[n])

    out_ref[...] = x2.reshape(bb, Np, D)


# -----------------------------------------------------------------------------
# Parameter preparation (called ONCE, outside the forward path)
# -----------------------------------------------------------------------------
def prepare_params(params, heads):
    """Stack per-layer weights along a leading layer axis, pre-split attention
    projections per head, and cast matmul operands to bf16 — once."""
    n_att = len(params["att"])
    d_model = params["att"][0]["wq"].shape[0]
    assert d_model % heads == 0
    dk = d_model // heads

    def stack(group, name):
        return jnp.stack([p[name] for p in params[group]], axis=0)

    def per_head(w):  # (n_att, D, D) -> (n_att, H, D, dk); head h <- out cols h*dk:(h+1)*dk
        return jnp.transpose(w.reshape(n_att, d_model, heads, dk),
                             (0, 2, 1, 3)).astype(_DOT_DTYPE)

    return dict(
        wq=per_head(stack("att", "wq")),
        wk=per_head(stack("att", "wk")),
        wv=per_head(stack("att", "wv")),
        ag=stack("att", "gamma"), ab=stack("att", "beta"),
        w1=stack("pff", "w1").astype(_DOT_DTYPE), b1=stack("pff", "b1"),
        w2=stack("pff", "w2").astype(_DOT_DTYPE), b2=stack("pff", "b2"),
        fg=stack("pff", "gamma"), fb=stack("pff", "beta"),
    )


# -----------------------------------------------------------------------------
# Wrapper (mirrors Global_Reactivity_Attention_GNN.forward, eval mode)
# -----------------------------------------------------------------------------
def global_reactivity_attention_gnn_forward(x, mask, prepared, heads, n_layers,
                                            *, batch_tile=1):
    # TODO(synk): optional attn_bias argument of the reference is not supported
    # (None path only).
    B, N, D = x.shape
    n_att = n_layers // 2
    assert n_att >= 1, "fused kernel expects at least one attention layer"
    assert D % heads == 0
    assert B % batch_tile == 0
    bb = batch_tile
    dk = D // heads
    Np = _round_up(max(N, 8), _LANE)          # lane-dense scores / aligned reshapes

    # Pad the node dimension once.  Padded keys are masked via the additive
    # bias; padded query rows are sliced off after the kernel.
    x_p = jnp.pad(x, ((0, 0), (0, Np - N), (0, 0)))
    mask_p = jnp.pad(mask.astype(jnp.float32), ((0, 0), (0, Np - N)))
    bias = jnp.where(mask_p > 0.5, 0.0, _MASK_FILL).astype(jnp.float32)
    bias = bias.reshape(B, 1, Np)

    def tile_spec(*rest):                     # follows the batch grid
        rest = tuple(rest)
        return pl.BlockSpec((bb,) + rest,
                            lambda b, _z=(0,) * len(rest): (b,) + _z)

    def const_spec(arr):                      # weights: resident across steps
        shape = arr.shape
        return pl.BlockSpec(shape, lambda b, _z=(0,) * len(shape): _z)

    wq, wk, wv = prepared["wq"], prepared["wk"], prepared["wv"]
    ag, ab = prepared["ag"], prepared["ab"]
    w1, b1 = prepared["w1"], prepared["b1"]
    w2, b2 = prepared["w2"], prepared["b2"]
    fg, fb = prepared["fg"], prepared["fb"]

    in_specs = [
        tile_spec(Np, D),        # x
        tile_spec(1, Np),        # additive key-mask bias
        const_spec(wq), const_spec(wk), const_spec(wv),
        const_spec(ag), const_spec(ab),
        const_spec(w1), const_spec(b1), const_spec(w2), const_spec(b2),
        const_spec(fg), const_spec(fb),
    ]
    out_specs = (
        pl.BlockSpec((n_att, bb, heads, Np, Np),
                     lambda b: (0, b, 0, 0, 0)),        # scores, final layout
        tile_spec(Np, D),                               # x out
    )
    out_shapes = (
        jax.ShapeDtypeStruct((n_att, B, heads, Np, Np), jnp.float32),
        jax.ShapeDtypeStruct((B, Np, D), jnp.float32),
    )

    scores_all, out_p = pl.pallas_call(
        functools.partial(_fused_kernel, heads=heads, n_layers=n_layers),
        out_shape=out_shapes,
        grid_spec=pltpu.PrefetchScalarGridSpec(
            num_scalar_prefetch=0,
            grid=(B // bb,),
            in_specs=in_specs,
            out_specs=out_specs),
        compiler_params=pltpu.CompilerParams(
            dimension_semantics=("parallel",),           # v7x dual-TC sharding
            vmem_limit_bytes=_pick_vmem_limit()),
    )(x_p, bias, wq, wk, wv, ag, ab, w1, b1, w2, b2, fg, fb)

    out = out_p[:, :N, :]
    scores = [scores_all[i, :, :, :N, :N] for i in range(n_att)]
    return scores, out


# -----------------------------------------------------------------------------
# Parameter init (deterministic, shapes taken from the PyTorch __init__)
# -----------------------------------------------------------------------------
def xavier_uniform(key, shape):
    fan_in, fan_out = shape
    lim = math.sqrt(6.0 / (fan_in + fan_out))
    return jax.random.uniform(key, shape, jnp.float32, -lim, lim)


def lecun_uniform(key, shape, fan_in):
    lim = 1.0 / math.sqrt(fan_in)
    return jax.random.uniform(key, shape, jnp.float32, -lim, lim)


def init_params(key, d_model, heads, n_layers):
    params = {"att": [], "pff": []}
    for _ in range(n_layers // 2):
        key, kq, kk, kv = jax.random.split(key, 4)
        params["att"].append(dict(
            wq=xavier_uniform(kq, (d_model, d_model)),
            wk=xavier_uniform(kk, (d_model, d_model)),
            wv=xavier_uniform(kv, (d_model, d_model)),
            gamma=jnp.ones((1, d_model), jnp.float32),
            beta=jnp.zeros((1, d_model), jnp.float32),
        ))
    for _ in range(n_layers):
        key, k1, k2, k3, k4 = jax.random.split(key, 5)
        params["pff"].append(dict(
            w1=lecun_uniform(k1, (d_model, 2 * d_model), d_model),
            b1=lecun_uniform(k2, (1, 2 * d_model), d_model),
            w2=lecun_uniform(k3, (2 * d_model, d_model), 2 * d_model),
            b2=lecun_uniform(k4, (1, d_model), 2 * d_model),
            gamma=jnp.ones((1, d_model), jnp.float32),
            beta=jnp.zeros((1, d_model), jnp.float32),
        ))
    return params


if __name__ == "__main__":
    B, N, D, HEADS, N_LAYERS = 2, 8, 32, 4, 2

    key = jax.random.PRNGKey(0)
    key, kx = jax.random.split(key)
    x = jax.random.normal(kx, (B, N, D), jnp.float32)

    # node mask: sample 1 has its last two nodes masked out as attention keys
    mask = jnp.ones((B, N), jnp.float32).at[1, -2:].set(0.0)

    params = init_params(key, D, HEADS, N_LAYERS)
    prepared = prepare_params(params, HEADS)        # stack + bf16 cast, ONCE

    fwd = jax.jit(functools.partial(
        global_reactivity_attention_gnn_forward, heads=HEADS, n_layers=N_LAYERS))
    scores, out = fwd(x, mask, prepared)

    out = jax.block_until_ready(out)
    scores = [jax.block_until_ready(s) for s in scores]

    assert out.shape == (B, N, D)
    assert scores[0].shape == (B, HEADS, N, N)
    assert bool(jnp.all(jnp.isfinite(out)))
    # masked keys of sample 1 must receive ~zero attention probability
    assert float(jnp.max(scores[0][1, :, :, -2:])) < 1e-6
    # softmax rows sum to ~1 (exact f32 normalization)
    assert bool(jnp.allclose(jnp.sum(scores[0], axis=-1), 1.0, atol=1e-3))
    print("KERNEL_OK")
</pallas_src>

<mosaic_0001>
module attributes {stable_mosaic.version = 11 : i64} {
  func.func @_fused_kernel(%arg0: i32, %arg1: memref<1x128x32xf32, #tpu.memory_space<vmem>>, %arg2: memref<1x1x128xf32, #tpu.memory_space<vmem>>, %arg3: memref<1x4x32x8xbf16, #tpu.memory_space<vmem>>, %arg4: memref<1x4x32x8xbf16, #tpu.memory_space<vmem>>, %arg5: memref<1x4x32x8xbf16, #tpu.memory_space<vmem>>, %arg6: memref<1x1x32xf32, #tpu.memory_space<vmem>>, %arg7: memref<1x1x32xf32, #tpu.memory_space<vmem>>, %arg8: memref<2x32x64xbf16, #tpu.memory_space<vmem>>, %arg9: memref<2x1x64xf32, #tpu.memory_space<vmem>>, %arg10: memref<2x64x32xbf16, #tpu.memory_space<vmem>>, %arg11: memref<2x1x32xf32, #tpu.memory_space<vmem>>, %arg12: memref<2x1x32xf32, #tpu.memory_space<vmem>>, %arg13: memref<2x1x32xf32, #tpu.memory_space<vmem>>, %arg14: memref<1x1x4x128x128xf32, #tpu.memory_space<vmem>>, %arg15: memref<1x128x32xf32, #tpu.memory_space<vmem>>) attributes {dimension_semantics = [#tpu.dimension_semantics<parallel>], iteration_bounds = array<i64: 2>, scalar_prefetch = 0 : i64, scratch_operands = 0 : i64, tpu.core_type = #tpu.core_type<tc>, window_params = [{transform_indices = @transform_0, window_bounds = array<i64: 1, 128, 32>}, {transform_indices = @transform_1, window_bounds = array<i64: 1, 1, 128>}, {pipeline_mode = #tpu.pipeline_mode<synchronous>, transform_indices = @transform_2, window_bounds = array<i64: 1, 4, 32, 8>}, {pipeline_mode = #tpu.pipeline_mode<synchronous>, transform_indices = @transform_3, window_bounds = array<i64: 1, 4, 32, 8>}, {pipeline_mode = #tpu.pipeline_mode<synchronous>, transform_indices = @transform_4, window_bounds = array<i64: 1, 4, 32, 8>}, {pipeline_mode = #tpu.pipeline_mode<synchronous>, transform_indices = @transform_5, window_bounds = array<i64: 1, 1, 32>}, {pipeline_mode = #tpu.pipeline_mode<synchronous>, transform_indices = @transform_6, window_bounds = array<i64: 1, 1, 32>}, {pipeline_mode = #tpu.pipeline_mode<synchronous>, transform_indices = @transform_7, window_bounds = array<i64: 2, 32, 64>}, {pipeline_mode = #tpu.pipeline_mode<synchronous>, transform_indices = @transform_8, window_bounds = array<i64: 2, 1, 64>}, {pipeline_mode = #tpu.pipeline_mode<synchronous>, transform_indices = @transform_9, window_bounds = array<i64: 2, 64, 32>}, {pipeline_mode = #tpu.pipeline_mode<synchronous>, transform_indices = @transform_10, window_bounds = array<i64: 2, 1, 32>}, {pipeline_mode = #tpu.pipeline_mode<synchronous>, transform_indices = @transform_11, window_bounds = array<i64: 2, 1, 32>}, {pipeline_mode = #tpu.pipeline_mode<synchronous>, transform_indices = @transform_12, window_bounds = array<i64: 2, 1, 32>}, {transform_indices = @transform_13, window_bounds = array<i64: 1, 1, 4, 128, 128>}, {transform_indices = @transform_14, window_bounds = array<i64: 1, 128, 32>}]} {
    %c0 = arith.constant 0 : index
    %c0_0 = arith.constant 0 : index
    %c0_1 = arith.constant 0 : index
    %0 = vector.load %arg1[%c0, %c0_0, %c0_1] : memref<1x128x32xf32, #tpu.memory_space<vmem>>, vector<1x128x32xf32>
    %1 = vector.shape_cast %0 : vector<1x128x32xf32> to vector<128x32xf32>
    %c0_2 = arith.constant 0 : index
    %c0_3 = arith.constant 0 : index
    %c0_4 = arith.constant 0 : index
    %2 = vector.load %arg2[%c0_2, %c0_3, %c0_4] : memref<1x1x128xf32, #tpu.memory_space<vmem>>, vector<1x1x128xf32>
    %3 = vector.shape_cast %2 : vector<1x1x128xf32> to vector<1x1x128xf32>
    %4 = vector.broadcast %3 : vector<1x1x128xf32> to vector<1x128x128xf32>
    %c0_5 = arith.constant 0 : index
    %c0_6 = arith.constant 0 : index
    %c0_7 = arith.constant 0 : index
    %5 = vector.load %arg8[%c0_5, %c0_6, %c0_7] : memref<2x32x64xbf16, #tpu.memory_space<vmem>>, vector<1x32x64xbf16>
    %6 = vector.shape_cast %5 : vector<1x32x64xbf16> to vector<32x64xbf16>
    %c0_8 = arith.constant 0 : index
    %c0_9 = arith.constant 0 : index
    %c0_10 = arith.constant 0 : index
    %7 = vector.load %arg9[%c0_8, %c0_9, %c0_10] : memref<2x1x64xf32, #tpu.memory_space<vmem>>, vector<1x1x64xf32>
    %8 = vector.shape_cast %7 : vector<1x1x64xf32> to vector<1x64xf32>
    %c0_11 = arith.constant 0 : index
    %c0_12 = arith.constant 0 : index
    %c0_13 = arith.constant 0 : index
    %9 = vector.load %arg10[%c0_11, %c0_12, %c0_13] : memref<2x64x32xbf16, #tpu.memory_space<vmem>>, vector<1x64x32xbf16>
    %10 = vector.shape_cast %9 : vector<1x64x32xbf16> to vector<64x32xbf16>
    %c0_14 = arith.constant 0 : index
    %c0_15 = arith.constant 0 : index
    %c0_16 = arith.constant 0 : index
    %11 = vector.load %arg11[%c0_14, %c0_15, %c0_16] : memref<2x1x32xf32, #tpu.memory_space<vmem>>, vector<1x1x32xf32>
    %12 = vector.shape_cast %11 : vector<1x1x32xf32> to vector<1x32xf32>
    %c0_17 = arith.constant 0 : index
    %c0_18 = arith.constant 0 : index
    %c0_19 = arith.constant 0 : index
    %13 = vector.load %arg12[%c0_17, %c0_18, %c0_19] : memref<2x1x32xf32, #tpu.memory_space<vmem>>, vector<1x1x32xf32>
    %14 = vector.shape_cast %13 : vector<1x1x32xf32> to vector<1x32xf32>
    %c0_20 = arith.constant 0 : index
    %c0_21 = arith.constant 0 : index
    %c0_22 = arith.constant 0 : index
    %15 = vector.load %arg13[%c0_20, %c0_21, %c0_22] : memref<2x1x32xf32, #tpu.memory_space<vmem>>, vector<1x1x32xf32>
    %16 = vector.shape_cast %15 : vector<1x1x32xf32> to vector<1x32xf32>
    %17 = arith.truncf %1 : vector<128x32xf32> to vector<128x32xbf16>
    %cst = arith.constant dense<0.000000e+00> : vector<128x64xf32>
    %18 = tpu.matmul %17, %6, %cst {dimension_numbers = #tpu.dot_dimension_numbers<[1], [0], [0], [1], [0, 0, 1, 1], [], []>} : vector<128x32xbf16>, vector<32x64xbf16>, vector<128x64xf32> -> vector<128x64xf32>
    %19 = vector.broadcast %8 : vector<1x64xf32> to vector<128x64xf32>
    %20 = arith.addf %18, %19 : vector<128x64xf32>
    %cst_23 = arith.constant 5.000000e-01 : f32
    %21 = vector.broadcast %cst_23 : f32 to vector<128x64xf32>
    %22 = arith.mulf %21, %20 : vector<128x64xf32>
    %cst_24 = arith.constant 4.471500e-02 : f32
    %23 = vector.broadcast %cst_24 : f32 to vector<128x64xf32>
    %24 = arith.mulf %23, %20 : vector<128x64xf32>
    %25 = arith.mulf %24, %20 : vector<128x64xf32>
    %26 = arith.mulf %25, %20 : vector<128x64xf32>
    %27 = arith.addf %20, %26 : vector<128x64xf32>
    %cst_25 = arith.constant 0.797884583 : f32
    %28 = vector.broadcast %cst_25 : f32 to vector<128x64xf32>
    %29 = arith.mulf %28, %27 : vector<128x64xf32>
    %30 = math.tanh %29 : vector<128x64xf32>
    %cst_26 = arith.constant 1.000000e+00 : f32
    %31 = vector.broadcast %cst_26 : f32 to vector<128x64xf32>
    %32 = arith.addf %31, %30 : vector<128x64xf32>
    %33 = arith.mulf %22, %32 : vector<128x64xf32>
    %34 = arith.truncf %33 : vector<128x64xf32> to vector<128x64xbf16>
    %cst_27 = arith.constant dense<0.000000e+00> : vector<128x32xf32>
    %35 = tpu.matmul %34, %10, %cst_27 {dimension_numbers = #tpu.dot_dimension_numbers<[1], [0], [0], [1], [0, 0, 1, 1], [], []>} : vector<128x64xbf16>, vector<64x32xbf16>, vector<128x32xf32> -> vector<128x32xf32>
    %36 = vector.broadcast %12 : vector<1x32xf32> to vector<128x32xf32>
    %37 = arith.addf %35, %36 : vector<128x32xf32>
    %38 = arith.addf %1, %37 : vector<128x32xf32>
    %cst_28 = arith.constant dense<0.000000e+00> : vector<128xf32>
    %39 = vector.multi_reduction <add>, %38, %cst_28 [1] : vector<128x32xf32> to vector<128xf32>
    %40 = vector.shape_cast %39 : vector<128xf32> to vector<128x1xf32>
    %cst_29 = arith.constant 3.200000e+01 : f32
    %41 = vector.broadcast %cst_29 : f32 to vector<128x1xf32>
    %42 = arith.divf %40, %41 : vector<128x1xf32>
    %43 = arith.mulf %38, %38 : vector<128x32xf32>
    %cst_30 = arith.constant dense<0.000000e+00> : vector<128xf32>
    %44 = vector.multi_reduction <add>, %43, %cst_30 [1] : vector<128x32xf32> to vector<128xf32>
    %45 = vector.shape_cast %44 : vector<128xf32> to vector<128x1xf32>
    %cst_31 = arith.constant 3.200000e+01 : f32
    %46 = vector.broadcast %cst_31 : f32 to vector<128x1xf32>
    %47 = arith.divf %45, %46 : vector<128x1xf32>
    %48 = arith.mulf %42, %42 : vector<128x1xf32>
    %49 = arith.subf %47, %48 : vector<128x1xf32>
    %cst_32 = arith.constant 0.000000e+00 : f32
    %50 = vector.broadcast %cst_32 : f32 to vector<128x1xf32>
    %51 = arith.maximumf %49, %50 : vector<128x1xf32>
    %52 = vector.broadcast %42 : vector<128x1xf32> to vector<128x32xf32>
    %53 = arith.subf %38, %52 : vector<128x32xf32>
    %cst_33 = arith.constant 9.99999997E-7 : f32
    %54 = vector.broadcast %cst_33 : f32 to vector<128x1xf32>
    %55 = arith.addf %51, %54 : vector<128x1xf32>
    %56 = math.rsqrt %55 : vector<128x1xf32>
    %57 = vector.broadcast %56 : vector<128x1xf32> to vector<128x32xf32>
    %58 = arith.mulf %53, %57 : vector<128x32xf32>
    %59 = vector.broadcast %14 : vector<1x32xf32> to vector<128x32xf32>
    %60 = arith.mulf %58, %59 : vector<128x32xf32>
    %61 = vector.broadcast %16 : vector<1x32xf32> to vector<128x32xf32>
    %62 = arith.addf %60, %61 : vector<128x32xf32>
    %c0_34 = arith.constant 0 : index
    %c0_35 = arith.constant 0 : index
    %c0_36 = arith.constant 0 : index
    %63 = vector.load %arg6[%c0_34, %c0_35, %c0_36] : memref<1x1x32xf32, #tpu.memory_space<vmem>>, vector<1x1x32xf32>
    %64 = vector.shape_cast %63 : vector<1x1x32xf32> to vector<1x32xf32>
    %c0_37 = arith.constant 0 : index
    %c0_38 = arith.constant 0 : index
    %c0_39 = arith.constant 0 : index
    %65 = vector.load %arg7[%c0_37, %c0_38, %c0_39] : memref<1x1x32xf32, #tpu.memory_space<vmem>>, vector<1x1x32xf32>
    %66 = vector.shape_cast %65 : vector<1x1x32xf32> to vector<1x32xf32>
    %67 = arith.truncf %62 : vector<128x32xf32> to vector<128x32xbf16>
    %c0_40 = arith.constant 0 : index
    %c0_41 = arith.constant 0 : index
    %c0_42 = arith.constant 0 : index
    %c0_43 = arith.constant 0 : index
    %68 = vector.load %arg3[%c0_40, %c0_41, %c0_42, %c0_43] : memref<1x4x32x8xbf16, #tpu.memory_space<vmem>>, vector<1x1x32x8xbf16>
    %69 = vector.shape_cast %68 : vector<1x1x32x8xbf16> to vector<32x8xbf16>
    %cst_44 = arith.constant dense<0.000000e+00> : vector<128x8xf32>
    %70 = tpu.matmul %67, %69, %cst_44 {dimension_numbers = #tpu.dot_dimension_numbers<[1], [0], [0], [1], [0, 0, 1, 1], [], []>} : vector<128x32xbf16>, vector<32x8xbf16>, vector<128x8xf32> -> vector<128x8xf32>
    %cst_45 = arith.constant 0.353553385 : f32
    %71 = vector.broadcast %cst_45 : f32 to vector<128x8xf32>
    %72 = arith.mulf %70, %71 : vector<128x8xf32>
    %73 = vector.shape_cast %72 : vector<128x8xf32> to vector<1x128x8xf32>
    %c0_46 = arith.constant 0 : index
    %c0_47 = arith.constant 0 : index
    %c0_48 = arith.constant 0 : index
    %c0_49 = arith.constant 0 : index
    %74 = vector.load %arg4[%c0_46, %c0_47, %c0_48, %c0_49] : memref<1x4x32x8xbf16, #tpu.memory_space<vmem>>, vector<1x1x32x8xbf16>
    %75 = vector.shape_cast %74 : vector<1x1x32x8xbf16> to vector<32x8xbf16>
    %cst_50 = arith.constant dense<0.000000e+00> : vector<128x8xf32>
    %76 = tpu.matmul %67, %75, %cst_50 {dimension_numbers = #tpu.dot_dimension_numbers<[1], [0], [0], [1], [0, 0, 1, 1], [], []>} : vector<128x32xbf16>, vector<32x8xbf16>, vector<128x8xf32> -> vector<128x8xf32>
    %77 = vector.shape_cast %76 : vector<128x8xf32> to vector<1x128x8xf32>
    %c0_51 = arith.constant 0 : index
    %c0_52 = arith.constant 0 : index
    %c0_53 = arith.constant 0 : index
    %c0_54 = arith.constant 0 : index
    %78 = vector.load %arg5[%c0_51, %c0_52, %c0_53, %c0_54] : memref<1x4x32x8xbf16, #tpu.memory_space<vmem>>, vector<1x1x32x8xbf16>
    %79 = vector.shape_cast %78 : vector<1x1x32x8xbf16> to vector<32x8xbf16>
    %cst_55 = arith.constant dense<0.000000e+00> : vector<128x8xf32>
    %80 = tpu.matmul %67, %79, %cst_55 {dimension_numbers = #tpu.dot_dimension_numbers<[1], [0], [0], [1], [0, 0, 1, 1], [], []>} : vector<128x32xbf16>, vector<32x8xbf16>, vector<128x8xf32> -> vector<128x8xf32>
    %81 = vector.shape_cast %80 : vector<128x8xf32> to vector<1x128x8xf32>
    %82 = arith.truncf %73 : vector<1x128x8xf32> to vector<1x128x8xbf16>
    %83 = arith.truncf %77 : vector<1x128x8xf32> to vector<1x128x8xbf16>
    "tpu.trace_start"() <{level = 10 : i32, message = "bqd,bkd->bqk"}> : () -> ()
    %cst_56 = arith.constant dense<0.000000e+00> : vector<1x128x128xf32>
    %84 = tpu.matmul %82, %83, %cst_56 {dimension_numbers = #tpu.dot_dimension_numbers<[2], [2], [1], [1], [0, 0, 0, 1, 1, 1], [0], [0]>} : vector<1x128x8xbf16>, vector<1x128x8xbf16>, vector<1x128x128xf32> -> vector<1x128x128xf32>
    "tpu.trace_stop"() : () -> ()
    %85 = arith.addf %84, %4 : vector<1x128x128xf32>
    %cst_57 = arith.constant dense<0xFF800000> : vector<1x128xf32>
    %86 = vector.multi_reduction <maximumf>, %85, %cst_57 [2] : vector<1x128x128xf32> to vector<1x128xf32>
    %87 = vector.shape_cast %86 : vector<1x128xf32> to vector<1x128x1xf32>
    %88 = vector.broadcast %87 : vector<1x128x1xf32> to vector<1x128x128xf32>
    %89 = arith.subf %85, %88 : vector<1x128x128xf32>
    %90 = math.exp %89 : vector<1x128x128xf32>
    %cst_58 = arith.constant dense<0.000000e+00> : vector<1x128xf32>
    %91 = vector.multi_reduction <add>, %90, %cst_58 [2] : vector<1x128x128xf32> to vector<1x128xf32>
    %92 = vector.shape_cast %91 : vector<1x128xf32> to vector<1x128x1xf32>
    %cst_59 = arith.constant 1.000000e+00 : f32
    %93 = vector.broadcast %cst_59 : f32 to vector<1x128x1xf32>
    %94 = arith.divf %93, %92 : vector<1x128x1xf32>
    %95 = vector.broadcast %94 : vector<1x128x1xf32> to vector<1x128x128xf32>
    %96 = arith.mulf %90, %95 : vector<1x128x128xf32>
    %c0_60 = arith.constant 0 : index
    %c0_61 = arith.constant 0 : index
    %c0_62 = arith.constant 0 : index
    %c0_63 = arith.constant 0 : index
    %c0_64 = arith.constant 0 : index
    %97 = vector.load %arg14[%c0_60, %c0_61, %c0_62, %c0_63, %c0_64] : memref<1x1x4x128x128xf32, #tpu.memory_space<vmem>>, vector<1x1x1x128x128xf32>
    %98 = vector.shape_cast %97 : vector<1x1x1x128x128xf32> to vector<1x128x128xf32>
    %99 = vector.shape_cast %96 : vector<1x128x128xf32> to vector<1x1x1x128x128xf32>
    tpu.vector_store %arg14[%c0_60, %c0_61, %c0_62, %c0_63, %c0_64], %99 {strides = array<i32>} : memref<1x1x4x128x128xf32, #tpu.memory_space<vmem>>, vector<1x1x1x128x128xf32>,
    %100 = arith.truncf %96 : vector<1x128x128xf32> to vector<1x128x128xbf16>
    %101 = arith.truncf %81 : vector<1x128x8xf32> to vector<1x128x8xbf16>
    "tpu.trace_start"() <{level = 10 : i32, message = "bqk,bkd->bqd"}> : () -> ()
    %cst_65 = arith.constant dense<0.000000e+00> : vector<1x128x8xf32>
    %102 = tpu.matmul %100, %101, %cst_65 {dimension_numbers = #tpu.dot_dimension_numbers<[2], [1], [1], [2], [0, 0, 0, 1, 1, 2], [0], [0]>} : vector<1x128x128xbf16>, vector<1x128x8xbf16>, vector<1x128x8xf32> -> vector<1x128x8xf32>
    "tpu.trace_stop"() : () -> ()
    %c0_66 = arith.constant 0 : index
    %c1 = arith.constant 1 : index
    %c0_67 = arith.constant 0 : index
    %c0_68 = arith.constant 0 : index
    %103 = vector.load %arg3[%c0_66, %c1, %c0_67, %c0_68] : memref<1x4x32x8xbf16, #tpu.memory_space<vmem>>, vector<1x1x32x8xbf16>
    %104 = vector.shape_cast %103 : vector<1x1x32x8xbf16> to vector<32x8xbf16>
    %cst_69 = arith.constant dense<0.000000e+00> : vector<128x8xf32>
    %105 = tpu.matmul %67, %104, %cst_69 {dimension_numbers = #tpu.dot_dimension_numbers<[1], [0], [0], [1], [0, 0, 1, 1], [], []>} : vector<128x32xbf16>, vector<32x8xbf16>, vector<128x8xf32> -> vector<128x8xf32>
    %cst_70 = arith.constant 0.353553385 : f32
    %106 = vector.broadcast %cst_70 : f32 to vector<128x8xf32>
    %107 = arith.mulf %105, %106 : vector<128x8xf32>
    %108 = vector.shape_cast %107 : vector<128x8xf32> to vector<1x128x8xf32>
    %c0_71 = arith.constant 0 : index
    %c1_72 = arith.constant 1 : index
    %c0_73 = arith.constant 0 : index
    %c0_74 = arith.constant 0 : index
    %109 = vector.load %arg4[%c0_71, %c1_72, %c0_73, %c0_74] : memref<1x4x32x8xbf16, #tpu.memory_space<vmem>>, vector<1x1x32x8xbf16>
    %110 = vector.shape_cast %109 : vector<1x1x32x8xbf16> to vector<32x8xbf16>
    %cst_75 = arith.constant dense<0.000000e+00> : vector<128x8xf32>
    %111 = tpu.matmul %67, %110, %cst_75 {dimension_numbers = #tpu.dot_dimension_numbers<[1], [0], [0], [1], [0, 0, 1, 1], [], []>} : vector<128x32xbf16>, vector<32x8xbf16>, vector<128x8xf32> -> vector<128x8xf32>
    %112 = vector.shape_cast %111 : vector<128x8xf32> to vector<1x128x8xf32>
    %c0_76 = arith.constant 0 : index
    %c1_77 = arith.constant 1 : index
    %c0_78 = arith.constant 0 : index
    %c0_79 = arith.constant 0 : index
    %113 = vector.load %arg5[%c0_76, %c1_77, %c0_78, %c0_79] : memref<1x4x32x8xbf16, #tpu.memory_space<vmem>>, vector<1x1x32x8xbf16>
    %114 = vector.shape_cast %113 : vector<1x1x32x8xbf16> to vector<32x8xbf16>
    %cst_80 = arith.constant dense<0.000000e+00> : vector<128x8xf32>
    %115 = tpu.matmul %67, %114, %cst_80 {dimension_numbers = #tpu.dot_dimension_numbers<[1], [0], [0], [1], [0, 0, 1, 1], [], []>} : vector<128x32xbf16>, vector<32x8xbf16>, vector<128x8xf32> -> vector<128x8xf32>
    %116 = vector.shape_cast %115 : vector<128x8xf32> to vector<1x128x8xf32>
    %117 = arith.truncf %108 : vector<1x128x8xf32> to vector<1x128x8xbf16>
    %118 = arith.truncf %112 : vector<1x128x8xf32> to vector<1x128x8xbf16>
    "tpu.trace_start"() <{level = 10 : i32, message = "bqd,bkd->bqk"}> : () -> ()
    %cst_81 = arith.constant dense<0.000000e+00> : vector<1x128x128xf32>
    %119 = tpu.matmul %117, %118, %cst_81 {dimension_numbers = #tpu.dot_dimension_numbers<[2], [2], [1], [1], [0, 0, 0, 1, 1, 1], [0], [0]>} : vector<1x128x8xbf16>, vector<1x128x8xbf16>, vector<1x128x128xf32> -> vector<1x128x128xf32>
    "tpu.trace_stop"() : () -> ()
    %120 = arith.addf %119, %4 : vector<1x128x128xf32>
    %cst_82 = arith.constant dense<0xFF800000> : vector<1x128xf32>
    %121 = vector.multi_reduction <maximumf>, %120, %cst_82 [2] : vector<1x128x128xf32> to vector<1x128xf32>
    %122 = vector.shape_cast %121 : vector<1x128xf32> to vector<1x128x1xf32>
    %123 = vector.broadcast %122 : vector<1x128x1xf32> to vector<1x128x128xf32>
    %124 = arith.subf %120, %123 : vector<1x128x128xf32>
    %125 = math.exp %124 : vector<1x128x128xf32>
    %cst_83 = arith.constant dense<0.000000e+00> : vector<1x128xf32>
    %126 = vector.multi_reduction <add>, %125, %cst_83 [2] : vector<1x128x128xf32> to vector<1x128xf32>
    %127 = vector.shape_cast %126 : vector<1x128xf32> to vector<1x128x1xf32>
    %cst_84 = arith.constant 1.000000e+00 : f32
    %128 = vector.broadcast %cst_84 : f32 to vector<1x128x1xf32>
    %129 = arith.divf %128, %127 : vector<1x128x1xf32>
    %130 = vector.broadcast %129 : vector<1x128x1xf32> to vector<1x128x128xf32>
    %131 = arith.mulf %125, %130 : vector<1x128x128xf32>
    %c0_85 = arith.constant 0 : index
    %c0_86 = arith.constant 0 : index
    %c1_87 = arith.constant 1 : index
    %c0_88 = arith.constant 0 : index
    %c0_89 = arith.constant 0 : index
    %132 = vector.load %arg14[%c0_85, %c0_86, %c1_87, %c0_88, %c0_89] : memref<1x1x4x128x128xf32, #tpu.memory_space<vmem>>, vector<1x1x1x128x128xf32>
    %133 = vector.shape_cast %132 : vector<1x1x1x128x128xf32> to vector<1x128x128xf32>
    %134 = vector.shape_cast %131 : vector<1x128x128xf32> to vector<1x1x1x128x128xf32>
    tpu.vector_store %arg14[%c0_85, %c0_86, %c1_87, %c0_88, %c0_89], %134 {strides = array<i32>} : memref<1x1x4x128x128xf32, #tpu.memory_space<vmem>>, vector<1x1x1x128x128xf32>,
    %135 = arith.truncf %131 : vector<1x128x128xf32> to vector<1x128x128xbf16>
    %136 = arith.truncf %116 : vector<1x128x8xf32> to vector<1x128x8xbf16>
    "tpu.trace_start"() <{level = 10 : i32, message = "bqk,bkd->bqd"}> : () -> ()
    %cst_90 = arith.constant dense<0.000000e+00> : vector<1x128x8xf32>
    %137 = tpu.matmul %135, %136, %cst_90 {dimension_numbers = #tpu.dot_dimension_numbers<[2], [1], [1], [2], [0, 0, 0, 1, 1, 2], [0], [0]>} : vector<1x128x128xbf16>, vector<1x128x8xbf16>, vector<1x128x8xf32> -> vector<1x128x8xf32>
    "tpu.trace_stop"() : () -> ()
    %c0_91 = arith.constant 0 : index
    %c2 = arith.constant 2 : index
    %c0_92 = arith.constant 0 : index
    %c0_93 = arith.constant 0 : index
    %138 = vector.load %arg3[%c0_91, %c2, %c0_92, %c0_93] : memref<1x4x32x8xbf16, #tpu.memory_space<vmem>>, vector<1x1x32x8xbf16>
    %139 = vector.shape_cast %138 : vector<1x1x32x8xbf16> to vector<32x8xbf16>
    %cst_94 = arith.constant dense<0.000000e+00> : vector<128x8xf32>
    %140 = tpu.matmul %67, %139, %cst_94 {dimension_numbers = #tpu.dot_dimension_numbers<[1], [0], [0], [1], [0, 0, 1, 1], [], []>} : vector<128x32xbf16>, vector<32x8xbf16>, vector<128x8xf32> -> vector<128x8xf32>
    %cst_95 = arith.constant 0.353553385 : f32
    %141 = vector.broadcast %cst_95 : f32 to vector<128x8xf32>
    %142 = arith.mulf %140, %141 : vector<128x8xf32>
    %143 = vector.shape_cast %142 : vector<128x8xf32> to vector<1x128x8xf32>
    %c0_96 = arith.constant 0 : index
    %c2_97 = arith.constant 2 : index
    %c0_98 = arith.constant 0 : index
    %c0_99 = arith.constant 0 : index
    %144 = vector.load %arg4[%c0_96, %c2_97, %c0_98, %c0_99] : memref<1x4x32x8xbf16, #tpu.memory_space<vmem>>, vector<1x1x32x8xbf16>
    %145 = vector.shape_cast %144 : vector<1x1x32x8xbf16> to vector<32x8xbf16>
    %cst_100 = arith.constant dense<0.000000e+00> : vector<128x8xf32>
    %146 = tpu.matmul %67, %145, %cst_100 {dimension_numbers = #tpu.dot_dimension_numbers<[1], [0], [0], [1], [0, 0, 1, 1], [], []>} : vector<128x32xbf16>, vector<32x8xbf16>, vector<128x8xf32> -> vector<128x8xf32>
    %147 = vector.shape_cast %146 : vector<128x8xf32> to vector<1x128x8xf32>
    %c0_101 = arith.constant 0 : index
    %c2_102 = arith.constant 2 : index
    %c0_103 = arith.constant 0 : index
    %c0_104 = arith.constant 0 : index
    %148 = vector.load %arg5[%c0_101, %c2_102, %c0_103, %c0_104] : memref<1x4x32x8xbf16, #tpu.memory_space<vmem>>, vector<1x1x32x8xbf16>
    %149 = vector.shape_cast %148 : vector<1x1x32x8xbf16> to vector<32x8xbf16>
    %cst_105 = arith.constant dense<0.000000e+00> : vector<128x8xf32>
    %150 = tpu.matmul %67, %149, %cst_105 {dimension_numbers = #tpu.dot_dimension_numbers<[1], [0], [0], [1], [0, 0, 1, 1], [], []>} : vector<128x32xbf16>, vector<32x8xbf16>, vector<128x8xf32> -> vector<128x8xf32>
    %151 = vector.shape_cast %150 : vector<128x8xf32> to vector<1x128x8xf32>
    %152 = arith.truncf %143 : vector<1x128x8xf32> to vector<1x128x8xbf16>
    %153 = arith.truncf %147 : vector<1x128x8xf32> to vector<1x128x8xbf16>
    "tpu.trace_start"() <{level = 10 : i32, message = "bqd,bkd->bqk"}> : () -> ()
    %cst_106 = arith.constant dense<0.000000e+00> : vector<1x128x128xf32>
    %154 = tpu.matmul %152, %153, %cst_106 {dimension_numbers = #tpu.dot_dimension_numbers<[2], [2], [1], [1], [0, 0, 0, 1, 1, 1], [0], [0]>} : vector<1x128x8xbf16>, vector<1x128x8xbf16>, vector<1x128x128xf32> -> vector<1x128x128xf32>
    "tpu.trace_stop"() : () -> ()
    %155 = arith.addf %154, %4 : vector<1x128x128xf32>
    %cst_107 = arith.constant dense<0xFF800000> : vector<1x128xf32>
    %156 = vector.multi_reduction <maximumf>, %155, %cst_107 [2] : vector<1x128x128xf32> to vector<1x128xf32>
    %157 = vector.shape_cast %156 : vector<1x128xf32> to vector<1x128x1xf32>
    %158 = vector.broadcast %157 : vector<1x128x1xf32> to vector<1x128x128xf32>
    %159 = arith.subf %155, %158 : vector<1x128x128xf32>
    %160 = math.exp %159 : vector<1x128x128xf32>
    %cst_108 = arith.constant dense<0.000000e+00> : vector<1x128xf32>
    %161 = vector.multi_reduction <add>, %160, %cst_108 [2] : vector<1x128x128xf32> to vector<1x128xf32>
    %162 = vector.shape_cast %161 : vector<1x128xf32> to vector<1x128x1xf32>
    %cst_109 = arith.constant 1.000000e+00 : f32
    %163 = vector.broadcast %cst_109 : f32 to vector<1x128x1xf32>
    %164 = arith.divf %163, %162 : vector<1x128x1xf32>
    %165 = vector.broadcast %164 : vector<1x128x1xf32> to vector<1x128x128xf32>
    %166 = arith.mulf %160, %165 : vector<1x128x128xf32>
    %c0_110 = arith.constant 0 : index
    %c0_111 = arith.constant 0 : index
    %c2_112 = arith.constant 2 : index
    %c0_113 = arith.constant 0 : index
    %c0_114 = arith.constant 0 : index
    %167 = vector.load %arg14[%c0_110, %c0_111, %c2_112, %c0_113, %c0_114] : memref<1x1x4x128x128xf32, #tpu.memory_space<vmem>>, vector<1x1x1x128x128xf32>
    %168 = vector.shape_cast %167 : vector<1x1x1x128x128xf32> to vector<1x128x128xf32>
    %169 = vector.shape_cast %166 : vector<1x128x128xf32> to vector<1x1x1x128x128xf32>
    tpu.vector_store %arg14[%c0_110, %c0_111, %c2_112, %c0_113, %c0_114], %169 {strides = array<i32>} : memref<1x1x4x128x128xf32, #tpu.memory_space<vmem>>, vector<1x1x1x128x128xf32>,
    %170 = arith.truncf %166 : vector<1x128x128xf32> to vector<1x128x128xbf16>
    %171 = arith.truncf %151 : vector<1x128x8xf32> to vector<1x128x8xbf16>
    "tpu.trace_start"() <{level = 10 : i32, message = "bqk,bkd->bqd"}> : () -> ()
    %cst_115 = arith.constant dense<0.000000e+00> : vector<1x128x8xf32>
    %172 = tpu.matmul %170, %171, %cst_115 {dimension_numbers = #tpu.dot_dimension_numbers<[2], [1], [1], [2], [0, 0, 0, 1, 1, 2], [0], [0]>} : vector<1x128x128xbf16>, vector<1x128x8xbf16>, vector<1x128x8xf32> -> vector<1x128x8xf32>
    "tpu.trace_stop"() : () -> ()
    %c0_116 = arith.constant 0 : index
    %c3 = arith.constant 3 : index
    %c0_117 = arith.constant 0 : index
    %c0_118 = arith.constant 0 : index
    %173 = vector.load %arg3[%c0_116, %c3, %c0_117, %c0_118] : memref<1x4x32x8xbf16, #tpu.memory_space<vmem>>, vector<1x1x32x8xbf16>
    %174 = vector.shape_cast %173 : vector<1x1x32x8xbf16> to vector<32x8xbf16>
    %cst_119 = arith.constant dense<0.000000e+00> : vector<128x8xf32>
    %175 = tpu.matmul %67, %174, %cst_119 {dimension_numbers = #tpu.dot_dimension_numbers<[1], [0], [0], [1], [0, 0, 1, 1], [], []>} : vector<128x32xbf16>, vector<32x8xbf16>, vector<128x8xf32> -> vector<128x8xf32>
    %cst_120 = arith.constant 0.353553385 : f32
    %176 = vector.broadcast %cst_120 : f32 to vector<128x8xf32>
    %177 = arith.mulf %175, %176 : vector<128x8xf32>
    %178 = vector.shape_cast %177 : vector<128x8xf32> to vector<1x128x8xf32>
    %c0_121 = arith.constant 0 : index
    %c3_122 = arith.constant 3 : index
    %c0_123 = arith.constant 0 : index
    %c0_124 = arith.constant 0 : index
    %179 = vector.load %arg4[%c0_121, %c3_122, %c0_123, %c0_124] : memref<1x4x32x8xbf16, #tpu.memory_space<vmem>>, vector<1x1x32x8xbf16>
    %180 = vector.shape_cast %179 : vector<1x1x32x8xbf16> to vector<32x8xbf16>
    %cst_125 = arith.constant dense<0.000000e+00> : vector<128x8xf32>
    %181 = tpu.matmul %67, %180, %cst_125 {dimension_numbers = #tpu.dot_dimension_numbers<[1], [0], [0], [1], [0, 0, 1, 1], [], []>} : vector<128x32xbf16>, vector<32x8xbf16>, vector<128x8xf32> -> vector<128x8xf32>
    %182 = vector.shape_cast %181 : vector<128x8xf32> to vector<1x128x8xf32>
    %c0_126 = arith.constant 0 : index
    %c3_127 = arith.constant 3 : index
    %c0_128 = arith.constant 0 : index
    %c0_129 = arith.constant 0 : index
    %183 = vector.load %arg5[%c0_126, %c3_127, %c0_128, %c0_129] : memref<1x4x32x8xbf16, #tpu.memory_space<vmem>>, vector<1x1x32x8xbf16>
    %184 = vector.shape_cast %183 : vector<1x1x32x8xbf16> to vector<32x8xbf16>
    %cst_130 = arith.constant dense<0.000000e+00> : vector<128x8xf32>
    %185 = tpu.matmul %67, %184, %cst_130 {dimension_numbers = #tpu.dot_dimension_numbers<[1], [0], [0], [1], [0, 0, 1, 1], [], []>} : vector<128x32xbf16>, vector<32x8xbf16>, vector<128x8xf32> -> vector<128x8xf32>
    %186 = vector.shape_cast %185 : vector<128x8xf32> to vector<1x128x8xf32>
    %187 = arith.truncf %178 : vector<1x128x8xf32> to vector<1x128x8xbf16>
    %188 = arith.truncf %182 : vector<1x128x8xf32> to vector<1x128x8xbf16>
    "tpu.trace_start"() <{level = 10 : i32, message = "bqd,bkd->bqk"}> : () -> ()
    %cst_131 = arith.constant dense<0.000000e+00> : vector<1x128x128xf32>
    %189 = tpu.matmul %187, %188, %cst_131 {dimension_numbers = #tpu.dot_dimension_numbers<[2], [2], [1], [1], [0, 0, 0, 1, 1, 1], [0], [0]>} : vector<1x128x8xbf16>, vector<1x128x8xbf16>, vector<1x128x128xf32> -> vector<1x128x128xf32>
    "tpu.trace_stop"() : () -> ()
    %190 = arith.addf %189, %4 : vector<1x128x128xf32>
    %cst_132 = arith.constant dense<0xFF800000> : vector<1x128xf32>
    %191 = vector.multi_reduction <maximumf>, %190, %cst_132 [2] : vector<1x128x128xf32> to vector<1x128xf32>
    %192 = vector.shape_cast %191 : vector<1x128xf32> to vector<1x128x1xf32>
    %193 = vector.broadcast %192 : vector<1x128x1xf32> to vector<1x128x128xf32>
    %194 = arith.subf %190, %193 : vector<1x128x128xf32>
    %195 = math.exp %194 : vector<1x128x128xf32>
    %cst_133 = arith.constant dense<0.000000e+00> : vector<1x128xf32>
    %196 = vector.multi_reduction <add>, %195, %cst_133 [2] : vector<1x128x128xf32> to vector<1x128xf32>
    %197 = vector.shape_cast %196 : vector<1x128xf32> to vector<1x128x1xf32>
    %cst_134 = arith.constant 1.000000e+00 : f32
    %198 = vector.broadcast %cst_134 : f32 to vector<1x128x1xf32>
    %199 = arith.divf %198, %197 : vector<1x128x1xf32>
    %200 = vector.broadcast %199 : vector<1x128x1xf32> to vector<1x128x128xf32>
    %201 = arith.mulf %195, %200 : vector<1x128x128xf32>
    %c0_135 = arith.constant 0 : index
    %c0_136 = arith.constant 0 : index
    %c3_137 = arith.constant 3 : index
    %c0_138 = arith.constant 0 : index
    %c0_139 = arith.constant 0 : index
    %202 = vector.load %arg14[%c0_135, %c0_136, %c3_137, %c0_138, %c0_139] : memref<1x1x4x128x128xf32, #tpu.memory_space<vmem>>, vector<1x1x1x128x128xf32>
    %203 = vector.shape_cast %202 : vector<1x1x1x128x128xf32> to vector<1x128x128xf32>
    %204 = vector.shape_cast %201 : vector<1x128x128xf32> to vector<1x1x1x128x128xf32>
    tpu.vector_store %arg14[%c0_135, %c0_136, %c3_137, %c0_138, %c0_139], %204 {strides = array<i32>} : memref<1x1x4x128x128xf32, #tpu.memory_space<vmem>>, vector<1x1x1x128x128xf32>,
    %205 = arith.truncf %201 : vector<1x128x128xf32> to vector<1x128x128xbf16>
    %206 = arith.truncf %186 : vector<1x128x8xf32> to vector<1x128x8xbf16>
    "tpu.trace_start"() <{level = 10 : i32, message = "bqk,bkd->bqd"}> : () -> ()
    %cst_140 = arith.constant dense<0.000000e+00> : vector<1x128x8xf32>
    %207 = tpu.matmul %205, %206, %cst_140 {dimension_numbers = #tpu.dot_dimension_numbers<[2], [1], [1], [2], [0, 0, 0, 1, 1, 2], [0], [0]>} : vector<1x128x128xbf16>, vector<1x128x8xbf16>, vector<1x128x8xf32> -> vector<1x128x8xf32>
    "tpu.trace_stop"() : () -> ()
    %208 = tpu.concatenate %102, %137, %172, %207 in 2 : vector<1x128x8xf32>, vector<1x128x8xf32>, vector<1x128x8xf32>, vector<1x128x8xf32> -> vector<1x128x32xf32>
    %209 = vector.shape_cast %208 : vector<1x128x32xf32> to vector<128x32xf32>
    %210 = arith.addf %209, %62 : vector<128x32xf32>
    %cst_141 = arith.constant dense<0.000000e+00> : vector<128xf32>
    %211 = vector.multi_reduction <add>, %210, %cst_141 [1] : vector<128x32xf32> to vector<128xf32>
    %212 = vector.shape_cast %211 : vector<128xf32> to vector<128x1xf32>
    %cst_142 = arith.constant 3.200000e+01 : f32
    %213 = vector.broadcast %cst_142 : f32 to vector<128x1xf32>
    %214 = arith.divf %212, %213 : vector<128x1xf32>
    %215 = arith.mulf %210, %210 : vector<128x32xf32>
    %cst_143 = arith.constant dense<0.000000e+00> : vector<128xf32>
    %216 = vector.multi_reduction <add>, %215, %cst_143 [1] : vector<128x32xf32> to vector<128xf32>
    %217 = vector.shape_cast %216 : vector<128xf32> to vector<128x1xf32>
    %cst_144 = arith.constant 3.200000e+01 : f32
    %218 = vector.broadcast %cst_144 : f32 to vector<128x1xf32>
    %219 = arith.divf %217, %218 : vector<128x1xf32>
    %220 = arith.mulf %214, %214 : vector<128x1xf32>
    %221 = arith.subf %219, %220 : vector<128x1xf32>
    %cst_145 = arith.constant 0.000000e+00 : f32
    %222 = vector.broadcast %cst_145 : f32 to vector<128x1xf32>
    %223 = arith.maximumf %221, %222 : vector<128x1xf32>
    %224 = vector.broadcast %214 : vector<128x1xf32> to vector<128x32xf32>
    %225 = arith.subf %210, %224 : vector<128x32xf32>
    %cst_146 = arith.constant 9.99999997E-7 : f32
    %226 = vector.broadcast %cst_146 : f32 to vector<128x1xf32>
    %227 = arith.addf %223, %226 : vector<128x1xf32>
    %228 = math.rsqrt %227 : vector<128x1xf32>
    %229 = vector.broadcast %228 : vector<128x1xf32> to vector<128x32xf32>
    %230 = arith.mulf %225, %229 : vector<128x32xf32>
    %231 = vector.broadcast %64 : vector<1x32xf32> to vector<128x32xf32>
    %232 = arith.mulf %230, %231 : vector<128x32xf32>
    %233 = vector.broadcast %66 : vector<1x32xf32> to vector<128x32xf32>
    %234 = arith.addf %232, %233 : vector<128x32xf32>
    %c1_147 = arith.constant 1 : index
    %c0_148 = arith.constant 0 : index
    %c0_149 = arith.constant 0 : index
    %235 = vector.load %arg8[%c1_147, %c0_148, %c0_149] : memref<2x32x64xbf16, #tpu.memory_space<vmem>>, vector<1x32x64xbf16>
    %236 = vector.shape_cast %235 : vector<1x32x64xbf16> to vector<32x64xbf16>
    %c1_150 = arith.constant 1 : index
    %c0_151 = arith.constant 0 : index
    %c0_152 = arith.constant 0 : index
    %237 = vector.load %arg9[%c1_150, %c0_151, %c0_152] : memref<2x1x64xf32, #tpu.memory_space<vmem>>, vector<1x1x64xf32>
    %238 = vector.shape_cast %237 : vector<1x1x64xf32> to vector<1x64xf32>
    %c1_153 = arith.constant 1 : index
    %c0_154 = arith.constant 0 : index
    %c0_155 = arith.constant 0 : index
    %239 = vector.load %arg10[%c1_153, %c0_154, %c0_155] : memref<2x64x32xbf16, #tpu.memory_space<vmem>>, vector<1x64x32xbf16>
    %240 = vector.shape_cast %239 : vector<1x64x32xbf16> to vector<64x32xbf16>
    %c1_156 = arith.constant 1 : index
    %c0_157 = arith.constant 0 : index
    %c0_158 = arith.constant 0 : index
    %241 = vector.load %arg11[%c1_156, %c0_157, %c0_158] : memref<2x1x32xf32, #tpu.memory_space<vmem>>, vector<1x1x32xf32>
    %242 = vector.shape_cast %241 : vector<1x1x32xf32> to vector<1x32xf32>
    %c1_159 = arith.constant 1 : index
    %c0_160 = arith.constant 0 : index
    %c0_161 = arith.constant 0 : index
    %243 = vector.load %arg12[%c1_159, %c0_160, %c0_161] : memref<2x1x32xf32, #tpu.memory_space<vmem>>, vector<1x1x32xf32>
    %244 = vector.shape_cast %243 : vector<1x1x32xf32> to vector<1x32xf32>
    %c1_162 = arith.constant 1 : index
    %c0_163 = arith.constant 0 : index
    %c0_164 = arith.constant 0 : index
    %245 = vector.load %arg13[%c1_162, %c0_163, %c0_164] : memref<2x1x32xf32, #tpu.memory_space<vmem>>, vector<1x1x32xf32>
    %246 = vector.shape_cast %245 : vector<1x1x32xf32> to vector<1x32xf32>
    %247 = arith.truncf %234 : vector<128x32xf32> to vector<128x32xbf16>
    %cst_165 = arith.constant dense<0.000000e+00> : vector<128x64xf32>
    %248 = tpu.matmul %247, %236, %cst_165 {dimension_numbers = #tpu.dot_dimension_numbers<[1], [0], [0], [1], [0, 0, 1, 1], [], []>} : vector<128x32xbf16>, vector<32x64xbf16>, vector<128x64xf32> -> vector<128x64xf32>
    %249 = vector.broadcast %238 : vector<1x64xf32> to vector<128x64xf32>
    %250 = arith.addf %248, %249 : vector<128x64xf32>
    %cst_166 = arith.constant 5.000000e-01 : f32
    %251 = vector.broadcast %cst_166 : f32 to vector<128x64xf32>
    %252 = arith.mulf %251, %250 : vector<128x64xf32>
    %cst_167 = arith.constant 4.471500e-02 : f32
    %253 = vector.broadcast %cst_167 : f32 to vector<128x64xf32>
    %254 = arith.mulf %253, %250 : vector<128x64xf32>
    %255 = arith.mulf %254, %250 : vector<128x64xf32>
    %256 = arith.mulf %255, %250 : vector<128x64xf32>
    %257 = arith.addf %250, %256 : vector<128x64xf32>
    %cst_168 = arith.constant 0.797884583 : f32
    %258 = vector.broadcast %cst_168 : f32 to vector<128x64xf32>
    %259 = arith.mulf %258, %257 : vector<128x64xf32>
    %260 = math.tanh %259 : vector<128x64xf32>
    %cst_169 = arith.constant 1.000000e+00 : f32
    %261 = vector.broadcast %cst_169 : f32 to vector<128x64xf32>
    %262 = arith.addf %261, %260 : vector<128x64xf32>
    %263 = arith.mulf %252, %262 : vector<128x64xf32>
    %264 = arith.truncf %263 : vector<128x64xf32> to vector<128x64xbf16>
    %cst_170 = arith.constant dense<0.000000e+00> : vector<128x32xf32>
    %265 = tpu.matmul %264, %240, %cst_170 {dimension_numbers = #tpu.dot_dimension_numbers<[1], [0], [0], [1], [0, 0, 1, 1], [], []>} : vector<128x64xbf16>, vector<64x32xbf16>, vector<128x32xf32> -> vector<128x32xf32>
    %266 = vector.broadcast %242 : vector<1x32xf32> to vector<128x32xf32>
    %267 = arith.addf %265, %266 : vector<128x32xf32>
    %268 = arith.addf %234, %267 : vector<128x32xf32>
    %cst_171 = arith.constant dense<0.000000e+00> : vector<128xf32>
    %269 = vector.multi_reduction <add>, %268, %cst_171 [1] : vector<128x32xf32> to vector<128xf32>
    %270 = vector.shape_cast %269 : vector<128xf32> to vector<128x1xf32>
    %cst_172 = arith.constant 3.200000e+01 : f32
    %271 = vector.broadcast %cst_172 : f32 to vector<128x1xf32>
    %272 = arith.divf %270, %271 : vector<128x1xf32>
    %273 = arith.mulf %268, %268 : vector<128x32xf32>
    %cst_173 = arith.constant dense<0.000000e+00> : vector<128xf32>
    %274 = vector.multi_reduction <add>, %273, %cst_173 [1] : vector<128x32xf32> to vector<128xf32>
    %275 = vector.shape_cast %274 : vector<128xf32> to vector<128x1xf32>
    %cst_174 = arith.constant 3.200000e+01 : f32
    %276 = vector.broadcast %cst_174 : f32 to vector<128x1xf32>
    %277 = arith.divf %275, %276 : vector<128x1xf32>
    %278 = arith.mulf %272, %272 : vector<128x1xf32>
    %279 = arith.subf %277, %278 : vector<128x1xf32>
    %cst_175 = arith.constant 0.000000e+00 : f32
    %280 = vector.broadcast %cst_175 : f32 to vector<128x1xf32>
    %281 = arith.maximumf %279, %280 : vector<128x1xf32>
    %282 = vector.broadcast %272 : vector<128x1xf32> to vector<128x32xf32>
    %283 = arith.subf %268, %282 : vector<128x32xf32>
    %cst_176 = arith.constant 9.99999997E-7 : f32
    %284 = vector.broadcast %cst_176 : f32 to vector<128x1xf32>
    %285 = arith.addf %281, %284 : vector<128x1xf32>
    %286 = math.rsqrt %285 : vector<128x1xf32>
    %287 = vector.broadcast %286 : vector<128x1xf32> to vector<128x32xf32>
    %288 = arith.mulf %283, %287 : vector<128x32xf32>
    %289 = vector.broadcast %244 : vector<1x32xf32> to vector<128x32xf32>
    %290 = arith.mulf %288, %289 : vector<128x32xf32>
    %291 = vector.broadcast %246 : vector<1x32xf32> to vector<128x32xf32>
    %292 = arith.addf %290, %291 : vector<128x32xf32>
    %293 = vector.shape_cast %292 : vector<128x32xf32> to vector<1x128x32xf32>
    %c0_177 = arith.constant 0 : index
    %c0_178 = arith.constant 0 : index
    %c0_179 = arith.constant 0 : index
    %294 = vector.load %arg15[%c0_177, %c0_178, %c0_179] : memref<1x128x32xf32, #tpu.memory_space<vmem>>, vector<1x128x32xf32>
    tpu.vector_store %arg15[%c0_177, %c0_178, %c0_179], %293 {strides = array<i32>} : memref<1x128x32xf32, #tpu.memory_space<vmem>>, vector<1x128x32xf32>,
    return
  }
  func.func @transform_0(%arg0: i32) -> (i32, i32, i32) {
    %c0_i32 = arith.constant 0 : i32
    %c0_i32_0 = arith.constant 0 : i32
    %c0_i32_1 = arith.constant 0 : i32
    return %arg0, %c0_i32, %c0_i32_0 : i32, i32, i32
  }
  func.func @transform_1(%arg0: i32) -> (i32, i32, i32) {
    %c0_i32 = arith.constant 0 : i32
    %c0_i32_0 = arith.constant 0 : i32
    %c0_i32_1 = arith.constant 0 : i32
    return %arg0, %c0_i32, %c0_i32_0 : i32, i32, i32
  }
  func.func @transform_2(%arg0: i32) -> (i32, i32, i32, i32) {
    %c0_i32 = arith.constant 0 : i32
    %c0_i32_0 = arith.constant 0 : i32
    %c0_i32_1 = arith.constant 0 : i32
    %c0_i32_2 = arith.constant 0 : i32
    %c0_i32_3 = arith.constant 0 : i32
    return %c0_i32, %c0_i32_0, %c0_i32_1, %c0_i32_2 : i32, i32, i32, i32
  }
  func.func @transform_3(%arg0: i32) -> (i32, i32, i32, i32) {
    %c0_i32 = arith.constant 0 : i32
    %c0_i32_0 = arith.constant 0 : i32
    %c0_i32_1 = arith.constant 0 : i32
    %c0_i32_2 = arith.constant 0 : i32
    %c0_i32_3 = arith.constant 0 : i32
    return %c0_i32, %c0_i32_0, %c0_i32_1, %c0_i32_2 : i32, i32, i32, i32
  }
  func.func @transform_4(%arg0: i32) -> (i32, i32, i32, i32) {
    %c0_i32 = arith.constant 0 : i32
    %c0_i32_0 = arith.constant 0 : i32
    %c0_i32_1 = arith.constant 0 : i32
    %c0_i32_2 = arith.constant 0 : i32
    %c0_i32_3 = arith.constant 0 : i32
    return %c0_i32, %c0_i32_0, %c0_i32_1, %c0_i32_2 : i32, i32, i32, i32
  }
  func.func @transform_5(%arg0: i32) -> (i32, i32, i32) {
    %c0_i32 = arith.constant 0 : i32
    %c0_i32_0 = arith.constant 0 : i32
    %c0_i32_1 = arith.constant 0 : i32
    %c0_i32_2 = arith.constant 0 : i32
    return %c0_i32, %c0_i32_0, %c0_i32_1 : i32, i32, i32
  }
  func.func @transform_6(%arg0: i32) -> (i32, i32, i32) {
    %c0_i32 = arith.constant 0 : i32
    %c0_i32_0 = arith.constant 0 : i32
    %c0_i32_1 = arith.constant 0 : i32
    %c0_i32_2 = arith.constant 0 : i32
    return %c0_i32, %c0_i32_0, %c0_i32_1 : i32, i32, i32
  }
  func.func @transform_7(%arg0: i32) -> (i32, i32, i32) {
    %c0_i32 = arith.constant 0 : i32
    %c0_i32_0 = arith.constant 0 : i32
    %c0_i32_1 = arith.constant 0 : i32
    %c0_i32_2 = arith.constant 0 : i32
    return %c0_i32, %c0_i32_0, %c0_i32_1 : i32, i32, i32
  }
  func.func @transform_8(%arg0: i32) -> (i32, i32, i32) {
    %c0_i32 = arith.constant 0 : i32
    %c0_i32_0 = arith.constant 0 : i32
    %c0_i32_1 = arith.constant 0 : i32
    %c0_i32_2 = arith.constant 0 : i32
    return %c0_i32, %c0_i32_0, %c0_i32_1 : i32, i32, i32
  }
  func.func @transform_9(%arg0: i32) -> (i32, i32, i32) {
    %c0_i32 = arith.constant 0 : i32
    %c0_i32_0 = arith.constant 0 : i32
    %c0_i32_1 = arith.constant 0 : i32
    %c0_i32_2 = arith.constant 0 : i32
    return %c0_i32, %c0_i32_0, %c0_i32_1 : i32, i32, i32
  }
  func.func @transform_10(%arg0: i32) -> (i32, i32, i32) {
    %c0_i32 = arith.constant 0 : i32
    %c0_i32_0 = arith.constant 0 : i32
    %c0_i32_1 = arith.constant 0 : i32
    %c0_i32_2 = arith.constant 0 : i32
    return %c0_i32, %c0_i32_0, %c0_i32_1 : i32, i32, i32
  }
  func.func @transform_11(%arg0: i32) -> (i32, i32, i32) {
    %c0_i32 = arith.constant 0 : i32
    %c0_i32_0 = arith.constant 0 : i32
    %c0_i32_1 = arith.constant 0 : i32
    %c0_i32_2 = arith.constant 0 : i32
    return %c0_i32, %c0_i32_0, %c0_i32_1 : i32, i32, i32
  }
  func.func @transform_12(%arg0: i32) -> (i32, i32, i32) {
    %c0_i32 = arith.constant 0 : i32
    %c0_i32_0 = arith.constant 0 : i32
    %c0_i32_1 = arith.constant 0 : i32
    %c0_i32_2 = arith.constant 0 : i32
    return %c0_i32, %c0_i32_0, %c0_i32_1 : i32, i32, i32
  }
  func.func @transform_13(%arg0: i32) -> (i32, i32, i32, i32, i32) {
    %c0_i32 = arith.constant 0 : i32
    %c0_i32_0 = arith.constant 0 : i32
    %c0_i32_1 = arith.constant 0 : i32
    %c0_i32_2 = arith.constant 0 : i32
    %c0_i32_3 = arith.constant 0 : i32
    return %c0_i32, %arg0, %c0_i32_0, %c0_i32_1, %c0_i32_2 : i32, i32, i32, i32, i32
  }
  func.func @transform_14(%arg0: i32) -> (i32, i32, i32) {
    %c0_i32 = arith.constant 0 : i32
    %c0_i32_0 = arith.constant 0 : i32
    %c0_i32_1 = arith.constant 0 : i32
    return %arg0, %c0_i32, %c0_i32_0 : i32, i32, i32
  }
}

</mosaic_0001>

<bundles_post_ra>
// kernel: global_reactivity_attention_gnn_forward.1
= control target key start
LH: loop header
LB: loop body
LE: loop exit
PB: predicated region body
PF: predicated region fallthrough
CT: control target
= control target key end

     0   :  { %s7811_s29 = smov 0   ;;  %s10510_s0 = inlined_call_operand.vmem [shape: f32[2,128,32], index: 0, kind: input, shape index: {}]   ;;  %s10511_s1 = inlined_call_operand.vmem [shape: f32[2,1,128], index: 1, kind: input, shape index: {}]   ;;  %s10512_s2 = inlined_call_operand.vmem [shape: bf16[1,4,32,8], index: 2, kind: input, shape index: {}]   ;;  %s10513_s3 = inlined_call_operand.vmem [shape: bf16[1,4,32,8], index: 3, kind: input, shape index: {}]   ;;  %s10514_s4 = inlined_call_operand.vmem [shape: bf16[1,4,32,8], index: 4, kind: input, shape index: {}]   ;;  %s10515_s5 = inlined_call_operand.vmem [shape: f32[1,1,32], index: 5, kind: input, shape index: {}]   ;;  %s10516_s6 = inlined_call_operand.vmem [shape: f32[1,1,32], index: 6, kind: input, shape index: {}]   ;;  %s10517_s7 = inlined_call_operand.vmem [shape: bf16[2,32,64], index: 7, kind: input, shape index: {}]   ;;  %s10518_s8 = inlined_call_operand.vmem [shape: f32[2,1,64], index: 8, kind: input, shape index: {}]   ;;  %s10519_s9 = inlined_call_operand.vmem [shape: bf16[2,64,32], index: 9, kind: input, shape index: {}]   ;;  %s10520_s10 = inlined_call_operand.vmem [shape: f32[2,1,32], index: 10, kind: input, shape index: {}]   ;;  %s10521_s11 = inlined_call_operand.vmem [shape: f32[2,1,32], index: 11, kind: input, shape index: {}]   ;;  %s10522_s12 = inlined_call_operand.vmem [shape: f32[2,1,32], index: 12, kind: input, shape index: {}]   ;;  %s10523_s13 = inlined_call_operand.vmem [shape: f32[1,2,4,128,128], index: 13, kind: output, shape index: {0}]   ;;  %s10524_s14 = inlined_call_operand.vmem [shape: f32[2,128,32], index: 14, kind: output, shape index: {1}]  }
   0x1 LB: > { %s6030_s30 = sadd.s32 4294967295, %s7731_s29   ;;  %p6034_p0 = scmp.ge.s32.totalorder %s7731_s29, 1  ;;  %s7731_s29 = sphi %s7811_s29, %s25_s29  }
   0x2   : > { %p423_p1 = scmp.lt.s32.totalorder %s7731_s29, 3 }
   0x4   : > { %p424_p2 = pnand %p6034_p0, %p423_p1 }
   0x6   : > { %427 = sbr.rel (%p424_p2) target bundleno = 4881 (0x1311), region = 72 }
   0xb   : > { %v7272_v0 = vld [vmem:[%s10517_s7 + $0x8] sm:$0xff]   ;;  %p477_p3 = scmp.lt.s32.totalorder %s6030_s30, 1  ;;  %v7273_v1 = vld [vmem:[%s10517_s7] sm:$0xff]   ;;  %vm561_vm0 = vcmask 261120   ;;  %v7274_v26 = vld [vmem:[%s10519_s9 + $0x18] sm:$0xff]   ;;  %vm865_vm1 = vcmask 523264  }
   0xc   : > { %6645 = vmatprep.subr.bf16.mxu0 %v7272_v0  ;;  %6665 = vmatprep.subr.bf16.mxu1 %v7274_v26  ;;  %v7275_v27 = vld [vmem:[%s10519_s9 + $0x10] sm:$0xff]   ;;  %v7276_v28 = vld [vmem:[%s10519_s9 + $0x8] sm:$0xff]   ;;  %v7277_v29 = vld [vmem:[%s10519_s9] sm:$0xff]   ;;  %vm1709_vm2 = vcmask 64512   ;;  %s7733_s20 = smov 8   ;;  %vm4796_vm3 = vcmask 195584  }
   0xd   : > { %s10612_s30 = smov (!%p477_p3, %s6030_s30), 1  ;;  %6646 = vmatpush3.bf16.msra.mxu0 %v7272_v0  ;;  %6666 = vmatpush3.bf16.msra.mxu1 %v7274_v26  ;;  %v7904_v30 = vld [vmem:[%s10518_s8] ss:$0 sm:$0xff]  ;;  %vm4779_vm4 = vcmask 130048  }
   0xe   : > { %6647 = vmatprep.subr.bf16.mxu0 %v7273_v1  ;;  %s6350_s19 = sshll.u32 %s10612_s30, 7  ;;  %6667 = vmatprep.subr.bf16.mxu1 %v7275_v27  ;;  %s8580_s17 = scalar_lea.vmem %s10511_s1, %s10612_s30 }
   0xf   : > { %s481_s22 = scalar_lea.vmem %s10510_s0, %s6350_s19  ;;  %s6351_s21 = sshll.u32 %s10612_s30, 9 }
  0x10   : > { %v7833_v2 = vld [vmem:[%s481_s22] sm:$0xff]  ;;  %v7835_v3 = vld [vmem:[%s481_s22 + $0x8] sm:$0xff]  ;;  %v7837_v4 = vld [vmem:[%s481_s22 + $0x10] sm:$0xff]  ;;  %s8736_s24 = scalar_lea.vmem %s10523_s13, %s6351_s21  ;;  %s7734_s21 = smov 16  }
  0x11   : > { %6648 = vmatpush3.bf16.msra.mxu0 %v7273_v1  ;;  %v535_v5 = vpack.c.bf16 %v7835_v3, %v7833_v2  ;;  %v7841_v6 = vld [vmem:[%s481_s22 + $0x18] sm:$0xff]  ;;  %v7843_v7 = vld [vmem:[%s481_s22 + $0x20] sm:$0xff]  ;;  %v7845_v8 = vld [vmem:[%s481_s22 + $0x28] sm:$0xff]  ;;  %6668 = vmatpush3.bf16.msra.mxu1 %v7275_v27 }
  0x12   : > { %v536_v9 = vpack.c.bf16 %v7841_v6, %v7837_v4  ;;  %v537_v10 = vpack.c.bf16 %v7845_v8, %v7843_v7  ;;  %v7853_v11 = vld [vmem:[%s481_s22 + $0x30] sm:$0xff]  ;;  %v7855_v12 = vld [vmem:[%s481_s22 + $0x38] sm:$0xff]  ;;  %v7857_v13 = vld [vmem:[%s481_s22 + $0x40] sm:$0xff]  ;;  %6669 = vmatprep.subr.bf16.mxu1 %v7276_v28 }
  0x13   : > { %6649 = vmatprep.mubr.msk.bf16.mxu0 %vm561_vm0, %v535_v5  ;;  %v7860_v14 = vld [vmem:[%s481_s22 + $0x48] sm:$0xff]  ;;  %v538_v15 = vpack.c.bf16 %v7855_v12, %v7853_v11  ;;  %v7866_v17 = vld [vmem:[%s481_s22 + $0x50] sm:$0xff]  ;;  %v7868_v18 = vld [vmem:[%s481_s22 + $0x58] sm:$0xff] }
  0x14   : > { %6650 = vmatmul.mubr.msk.bf16.vlgmr.msra.gmra.mxu0 %vm561_vm0, %v536_v9  ;;  %v539_v16 = vpack.c.bf16 %v7860_v14, %v7857_v13  ;;  %v7871_v19 = vld [vmem:[%s481_s22 + $0x60] sm:$0xff]  ;;  %v7873_v20 = vld [vmem:[%s481_s22 + $0x68] sm:$0xff]  ;;  %v540_v21 = vpack.c.bf16 %v7868_v18, %v7866_v17  ;;  %v7880_v23 = vld [vmem:[%s481_s22 + $0x70] sm:$0xff] }
  0x15   : > { %6653 = vmatprep.mubr.msk.bf16.mxu0 %vm561_vm0, %v537_v10  ;;  %v541_v22 = vpack.c.bf16 %v7873_v20, %v7871_v19  ;;  %v7882_v24 = vld [vmem:[%s481_s22 + $0x78] sm:$0xff]  ;;  %6670 = vmatpush3.bf16.msra.mxu1 %v7276_v28  ;;  %s7735_s22 = smov 24  }
  0x16   : > { %v542_v25 = vpack.c.bf16 %v7882_v24, %v7880_v23  ;;  %6671 = vmatprep.subr.bf16.mxu1 %v7277_v29 }
  0x19   : > { %6672 = vmatpush3.bf16.msra.mxu1 %v7277_v29 }
  0x1c   : > { %6654 = vmatmul.mubr.msk.bf16.gmra.mxu0 %vm561_vm0, %v538_v15 }
  0x1d   : > { %6657 = vmatprep.mubr.msk.bf16.mxu0 %vm561_vm0, %v539_v16 }
  0x24   : > { %6658 = vmatmul.mubr.msk.bf16.gmra.mxu0 %vm561_vm0, %v540_v21 }
  0x25   : > { %6661 = vmatprep.mubr.msk.bf16.mxu0 %vm561_vm0, %v541_v22 }
  0x2c   : > { %6662 = vmatmul.mubr.msk.bf16.gmra.mxu0 %vm561_vm0, %v542_v25 }
  0xd4   : > { %v6651_v31 = vpop.f32.mrf.mxu0 }
  0xd5   : > { %v7907_v32 = vadd.f32 %v6651_v31, %v7904_v30 }
  0xd6   : > { %v620_v33 = vpop.f32.mrf.mxu0 }
  0xd7   : > { %v701_v34 = vmul.f32 0.044715, %v7907_v32  ;;  %v7911_v35 = vadd.f32 %v7904_v30, %v620_v33 }
  0xd8   : > { %v6652_v36 = vpop.f32.mrf.mxu0 }
  0xd9   : > { %v717_v37 = vmul.f32 %v701_v34, %v7907_v32  ;;  %v699_v38 = vmul.f32 0.044715, %v7911_v35  ;;  %v7916_v39 = vadd.f32 %v6652_v36, %v7904_v30 }
  0xda   : > { %v623_v40 = vpop.f32.mrf.mxu0 }
  0xdb   : > { %v733_v41 = vmul.f32 %v717_v37, %v7907_v32  ;;  %v715_v42 = vmul.f32 %v699_v38, %v7911_v35  ;;  %v702_v43 = vmul.f32 0.044715, %v7916_v39  ;;  %v7922_v44 = vadd.f32 %v7904_v30, %v623_v40 }
  0xdc   : > { %v6655_v45 = vpop.f32.mrf.mxu0 }
  0xdd   : > { %v749_v46 = vadd.f32 %v733_v41, %v7907_v32  ;;  %v718_v47 = vmul.f32 %v702_v43, %v7916_v39  ;;  %v700_v48 = vmul.f32 0.044715, %v7922_v44  ;;  %v7928_v49 = vadd.f32 %v6655_v45, %v7904_v30 }
  0xde   : > { %v636_v50 = vpop.f32.mrf.mxu0  ;;  %v731_v51 = vmul.f32 %v715_v42, %v7911_v35 }
  0xdf   : > { %v765_v52 = vmul.f32 0.7978846, %v749_v46  ;;  %v734_v53 = vmul.f32 %v718_v47, %v7916_v39  ;;  %v705_v54 = vmul.f32 0.044715, %v7928_v49  ;;  %v7934_v55 = vadd.f32 %v7904_v30, %v636_v50 }
  0xe0   : > { %v6656_v56 = vpop.f32.mrf.mxu0  ;;  %v716_v57 = vmul.f32 %v700_v48, %v7922_v44  ;;  %v747_v58 = vadd.f32 %v731_v51, %v7911_v35 }
  0xe1   : > { %v750_v59 = vadd.f32 %v734_v53, %v7916_v39  ;;  %v721_v60 = vmul.f32 %v705_v54, %v7928_v49  ;;  %v703_v61 = vmul.f32 0.044715, %v7934_v55  ;;  %7308 = vtanh.f32 %v765_v52 }
  0xe2   : > { %v7942_v62 = vadd.f32 %v6656_v56, %v7904_v30  ;;  %v639_v63 = vpop.f32.mrf.mxu0  ;;  %v732_v0 = vmul.f32 %v716_v57, %v7922_v44  ;;  %v763_v1 = vmul.f32 0.7978846, %v747_v58 }
  0xe3   : > { %v766_v5 = vmul.f32 0.7978846, %v750_v59  ;;  %v737_v9 = vmul.f32 %v721_v60, %v7928_v49  ;;  %v719_v10 = vmul.f32 %v703_v61, %v7934_v55  ;;  %v7948_v15 = vadd.f32 %v7904_v30, %v639_v63 }
  0xe4   : > { %v706_v16 = vmul.f32 0.044715, %v7942_v62  ;;  %v6659_v21 = vpop.f32.mrf.mxu0  ;;  %v748_v22 = vadd.f32 %v732_v0, %v7922_v44  ;;  %7310 = vtanh.f32 %v763_v1 }
  0xe5   : > { %7312 = vtanh.f32 %v766_v5  ;;  %v753_v25 = vadd.f32 %v737_v9, %v7928_v49  ;;  %v735_v26 = vmul.f32 %v719_v10, %v7934_v55  ;;  %v704_v27 = vmul.f32 0.044715, %v7948_v15 }
  0xe6   : > { %v722_v28 = vmul.f32 %v706_v16, %v7942_v62  ;;  %v7957_v29 = vadd.f32 %v6659_v21, %v7904_v30  ;;  %v652_v31 = vpop.f32.mrf.mxu0  ;;  %v764_v33 = vmul.f32 0.7978846, %v748_v22 }
  0xe7   : > { %v751_v34 = vadd.f32 %v735_v26, %v7934_v55  ;;  %v720_v36 = vmul.f32 %v704_v27, %v7948_v15  ;;  %v7962_v37 = vadd.f32 %v7904_v30, %v652_v31  ;;  %v769_v38 = vmul.f32 0.7978846, %v753_v25 }
  0xe8   : > { %v738_v40 = vmul.f32 %v722_v28, %v7942_v62  ;;  %v709_v41 = vmul.f32 0.044715, %v7957_v29  ;;  %v6660_v42 = vpop.f32.mrf.mxu0  ;;  %7314 = vtanh.f32 %v764_v33  ;;  %v685_v28 = vmul.f32 0.5, %v7907_v32 }
  0xe9   : > { %v767_v43 = vmul.f32 0.7978846, %v751_v34  ;;  %v736_v45 = vmul.f32 %v720_v36, %v7948_v15  ;;  %v707_v46 = vmul.f32 0.044715, %v7962_v37  ;;  %v7971_v50 = vadd.f32 %v6660_v42, %v7904_v30 }
  0xea   : > { %v754_v47 = vadd.f32 %v738_v40, %v7942_v62  ;;  %v725_v48 = vmul.f32 %v709_v41, %v7957_v29  ;;  %v655_v51 = vpop.f32.mrf.mxu0  ;;  %v686_v32 = vmul.f32 0.5, %v7916_v39 }
  0xeb   : > { %7316 = vtanh.f32 %v767_v43  ;;  %v752_v52 = vadd.f32 %v736_v45, %v7948_v15  ;;  %v723_v53 = vmul.f32 %v707_v46, %v7962_v37  ;;  %v7976_v54 = vadd.f32 %v7904_v30, %v655_v51 }
  0xec   : > { %7318 = vtanh.f32 %v769_v38  ;;  %v770_v56 = vmul.f32 0.7978846, %v754_v47  ;;  %v741_v57 = vmul.f32 %v725_v48, %v7957_v29  ;;  %v710_v58 = vmul.f32 0.044715, %v7971_v50  ;;  %v6663_v59 = vpop.f32.mrf.mxu0 }
  0xed   : > { %v768_v60 = vmul.f32 0.7978846, %v752_v52  ;;  %v739_v61 = vmul.f32 %v723_v53, %v7962_v37  ;;  %v708_v63 = vmul.f32 0.044715, %v7976_v54  ;;  %v7983_v0 = vadd.f32 %v6663_v59, %v7904_v30 }
  0xee   : > { %7320 = vtanh.f32 %v770_v56  ;;  %v757_v1 = vadd.f32 %v741_v57, %v7957_v29  ;;  %v726_v5 = vmul.f32 %v710_v58, %v7971_v50  ;;  %v668_v9 = vpop.f32.mrf.mxu0  ;;  %v7309_v10 = vpop.eup %7308  ;;  %v683_v38 = vmul.f32 0.5, %v7911_v35 }
  0xef   : > { %v755_v16 = vadd.f32 %v739_v61, %v7962_v37  ;;  %v724_v21 = vmul.f32 %v708_v63, %v7976_v54  ;;  %v713_v22 = vmul.f32 0.044715, %v7983_v0  ;;  %v7991_v25 = vadd.f32 %v7904_v30, %v668_v9 }
  0xf0   : > { %v742_v26 = vmul.f32 %v726_v5, %v7971_v50  ;;  %v6664_v27 = vpop.f32.mrf.mxu0  ;;  %7322 = vtanh.f32 %v768_v60  ;;  %v773_v46 = vmul.f32 0.7978846, %v757_v1  ;;  %v684_v48 = vmul.f32 0.5, %v7922_v44 }
  0xf1   : > { %v7311_v31 = vpop.eup %7310  ;;  %v740_v33 = vmul.f32 %v724_v21, %v7976_v54  ;;  %v729_v34 = vmul.f32 %v713_v22, %v7983_v0  ;;  %v711_v36 = vmul.f32 0.044715, %v7991_v25  ;;  %v771_v41 = vmul.f32 0.7978846, %v755_v16 }
  0xf2   : > { %v7313_v40 = vpop.eup %7312  ;;  %v758_v42 = vadd.f32 %v742_v26, %v7971_v50  ;;  %v8001_v43 = vadd.f32 %v6664_v27, %v7904_v30  ;;  %v671_v45 = vpop.f32.mrf.mxu0  ;;  %v795_v51 = vadd.f32 1.0, %v7311_v31  ;;  %v797_v39 = vadd.f32 1.0, %v7309_v10 }
  0xf3   : > { %v727_v47 = vmul.f32 %v711_v36, %v7991_v25  ;;  %v756_v35 = vadd.f32 %v740_v33, %v7976_v54  ;;  %v8009_v56 = vadd.f32 %v7904_v30, %v671_v45  ;;  %v745_v58 = vmul.f32 %v729_v34, %v7983_v0 }
  0xf4   : > { %v774_v52 = vmul.f32 0.7978846, %v758_v42  ;;  %v714_v53 = vmul.f32 0.044715, %v8001_v43  ;;  %v798_v60 = vadd.f32 1.0, %v7313_v40  ;;  %7324 = vtanh.f32 %v771_v41 }
  0xf5   : > { %v7315_v57 = vpop.eup %7314  ;;  %v743_v59 = vmul.f32 %v727_v47, %v7991_v25  ;;  %v712_v44 = vmul.f32 0.044715, %v8009_v56  ;;  %v811_v5 = vmul.f32 %v795_v51, %v683_v38  ;;  %v772_v16 = vmul.f32 0.7978846, %v756_v35 }
  0xf6   : > { %v730_v61 = vmul.f32 %v714_v53, %v8001_v43  ;;  %v796_v63 = vadd.f32 1.0, %v7315_v57  ;;  %7326 = vtanh.f32 %v774_v52  ;;  %v814_v9 = vmul.f32 %v798_v60, %v686_v32 }
  0xf7   : > { %v759_v1 = vadd.f32 %v743_v59, %v7991_v25  ;;  %v728_v22 = vmul.f32 %v712_v44, %v8009_v56  ;;  %7328 = vtanh.f32 %v773_v46  ;;  %v761_v27 = vadd.f32 %v745_v58, %v7983_v0 }
  0xf8   : > { %v7317_v30 = vpop.eup %7316  ;;  %v746_v21 = vmul.f32 %v730_v61, %v8001_v43  ;;  %v812_v26 = vmul.f32 %v796_v63, %v684_v48  ;;  %v813_v33 = vmul.f32 %v797_v39, %v685_v28  ;;  %v690_v28 = vmul.f32 0.5, %v7942_v62 }
  0xf9   : > { %v7319_v10 = vpop.eup %7318  ;;  %v775_v31 = vmul.f32 0.7978846, %v759_v1  ;;  %v744_v36 = vmul.f32 %v728_v22, %v8009_v56  ;;  %v799_v42 = vadd.f32 1.0, %v7317_v30  ;;  %v777_v48 = vmul.f32 0.7978846, %v761_v27 }
  0xfa   : > { %v762_v34 = vadd.f32 %v746_v21, %v8001_v43  ;;  %v827_v40 = vpack.c.bf16 %v812_v26, %v811_v5  ;;  %v828_v41 = vpack.c.bf16 %v814_v9, %v813_v33  ;;  %v801_v51 = vadd.f32 1.0, %v7319_v10 }
  0xfb   : > { %v7321_v38 = vpop.eup %7320  ;;  %7330 = vtanh.f32 %v775_v31  ;;  %v760_v32 = vadd.f32 %v744_v36, %v8009_v56  ;;  %v687_v35 = vmul.f32 0.5, %v7934_v55  ;;  %v688_v53 = vmul.f32 0.5, %v7948_v15 }
  0xfc   : > { %v778_v45 = vmul.f32 0.7978846, %v762_v34  ;;  %6673 = vmatprep.mubr.msk.bf16.mxu1 %vm865_vm1, %v827_v40  ;;  %v802_v47 = vadd.f32 1.0, %v7321_v38  ;;  %7332 = vtanh.f32 %v772_v16  ;;  %v689_v58 = vmul.f32 0.5, %v7928_v49 }
  0xfd   : > { %v7323_v46 = vpop.eup %7322  ;;  %6674 = vmatmul.mubr.msk.bf16.vlgmr.msra.gmra.mxu1 %vm865_vm1, %v828_v41  ;;  %v776_v52 = vmul.f32 0.7978846, %v760_v32  ;;  %v815_v39 = vmul.f32 %v799_v42, %v687_v35  ;;  %v694_v49 = vmul.f32 0.5, %v7971_v50  ;;  %v691_v21 = vmul.f32 0.5, %v7962_v37  ;;  %v8045_v35 = vld [vmem:[%s10520_s10] ss:$0 sm:$0xff] }
  0xfe   : > { %v800_v57 = vadd.f32 1.0, %v7323_v46  ;;  %7334 = vtanh.f32 %v778_v45  ;;  %v818_v59 = vmul.f32 %v802_v47, %v690_v28  ;;  %v817_v61 = vmul.f32 %v801_v51, %v689_v58 }
  0xff   : > { %7336 = vtanh.f32 %v776_v52  ;;  %v692_v22 = vmul.f32 0.5, %v7976_v54  ;;  %v693_v10 = vmul.f32 0.5, %v7957_v29  ;;  %v695_v45 = vmul.f32 0.5, %v7991_v25 }
 0x100   : > { %v816_v60 = vmul.f32 %v800_v57, %v688_v53  ;;  %7338 = vtanh.f32 %v777_v48  ;;  %v830_v1 = vpack.c.bf16 %v818_v59, %v817_v61  ;;  %v696_v50 = vmul.f32 0.5, %v8009_v56 }
 0x101   : > { %v7325_v63 = vpop.eup %7324  ;;  %v698_v46 = vmul.f32 0.5, %v8001_v43  ;;  %v697_v51 = vmul.f32 0.5, %v7983_v0 }
 0x102   : > { %v829_v44 = vpack.c.bf16 %v816_v60, %v815_v39  ;;  %v803_v9 = vadd.f32 1.0, %v7325_v63 }
 0x103   : > { %v7327_v62 = vpop.eup %7326 }
 0x104   : > { %6677 = vmatprep.mubr.msk.bf16.mxu1 %vm865_vm1, %v829_v44  ;;  %v7329_v55 = vpop.eup %7328  ;;  %v806_v15 = vadd.f32 1.0, %v7327_v62  ;;  %v819_v33 = vmul.f32 %v803_v9, %v691_v21 }
 0x105   : > { %6678 = vmatmul.mubr.msk.bf16.gmra.mxu1 %vm865_vm1, %v830_v1  ;;  %v805_v16 = vadd.f32 1.0, %v7329_v55 }
 0x106   : > { %v822_v27 = vmul.f32 %v806_v15, %v694_v49 }
 0x107   : > { %v821_v38 = vmul.f32 %v805_v16, %v693_v10 }
 0x108   : > { %v7331_v5 = vpop.eup %7330 }
 0x109   : > { %v7333_v30 = vpop.eup %7332  ;;  %v807_v36 = vadd.f32 1.0, %v7331_v5  ;;  %v832_v37 = vpack.c.bf16 %v822_v27, %v821_v38 }
 0x10a   : > { %v804_v26 = vadd.f32 1.0, %v7333_v30 }
 0x10b   : > { %v7335_v31 = vpop.eup %7334  ;;  %v823_v54 = vmul.f32 %v807_v36, %v695_v45 }
 0x10c   : > { %v820_v34 = vmul.f32 %v804_v26, %v692_v22  ;;  %v7337_v40 = vpop.eup %7336  ;;  %v810_v47 = vadd.f32 1.0, %v7335_v31 }
 0x10d   : > { %v7339_v41 = vpop.eup %7338  ;;  %v808_v32 = vadd.f32 1.0, %v7337_v40 }
 0x10e   : > { %v831_v42 = vpack.c.bf16 %v820_v34, %v819_v33  ;;  %v809_v48 = vadd.f32 1.0, %v7339_v41  ;;  %v826_v52 = vmul.f32 %v810_v47, %v698_v46 }
 0x10f   : > { %v824_v29 = vmul.f32 %v808_v32, %v696_v50 }
 0x110   : > { %6681 = vmatprep.mubr.msk.bf16.mxu1 %vm865_vm1, %v831_v42  ;;  %v825_v25 = vmul.f32 %v809_v48, %v697_v51 }
 0x111   : > { %6682 = vmatmul.mubr.msk.bf16.gmra.mxu1 %vm865_vm1, %v832_v37  ;;  %v833_v28 = vpack.c.bf16 %v824_v29, %v823_v54 }
 0x112   : > { %v834_v56 = vpack.c.bf16 %v826_v52, %v825_v25 }
 0x113   : > { %6685 = vmatprep.mubr.msk.bf16.mxu1 %vm865_vm1, %v833_v28 }
 0x119   : > { %6686 = vmatmul.mubr.msk.bf16.gmra.mxu1 %vm865_vm1, %v834_v56 }
 0x1bd   : > { %v6675_v53 = vpop.f32.mrf.mxu1 }
 0x1be   : > { %v933_v57 = vadd.f32 %v6675_v53, %v8045_v35 }
 0x1bf   : > { %v924_v43 = vpop.f32.mrf.mxu1 }
 0x1c0   : > { %v8049_v58 = vadd.f32 %v933_v57, %v7837_v4  ;;  %v925_v0 = vadd.f32 %v8045_v35, %v924_v43 }
 0x1c1   : > { %v6676_v59 = vpop.f32.mrf.mxu1 }
 0x1c2   : > { %v8053_v39 = vadd.f32 %v925_v0, %v7833_v2  ;;  %v936_v60 = vadd.f32 %v6676_v59, %v8045_v35  ;;  %v1009_v61 = vsel %vm561_vm0, %v8049_v58, 0.0  ;;  %v1070_v62 = vmul.f32 %v8049_v58, %v8049_v58 }
 0x1c3   : > { %1010 = vadd.xlane.f32.xlu1 %v1009_v61  ;;  %v927_v44 = vpop.f32.mrf.mxu1 }
 0x1c4   : > { %v8059_v63 = vadd.f32 %v936_v60, %v7841_v6  ;;  %v928_v1 = vadd.f32 %v8045_v35, %v927_v44  ;;  %v1003_v4 = vsel %vm561_vm0, %v8053_v39, 0.0  ;;  %v1090_v9 = vsel %vm561_vm0, %v1070_v62, 0.0 }
 0x1c5   : > { %v6679_v2 = vpop.f32.mrf.mxu1  ;;  %1004 = vadd.xlane.f32.xlu0 %v1003_v4  ;;  %v1068_v30 = vmul.f32 %v8053_v39, %v8053_v39 }
 0x1c6   : > { %v8067_v55 = vadd.f32 %v928_v1, %v7835_v3  ;;  %v1012_v15 = vsel %vm561_vm0, %v8059_v63, 0.0  ;;  %v1071_v6 = vmul.f32 %v8059_v63, %v8059_v63  ;;  %v949_v26 = vadd.f32 %v6679_v2, %v8045_v35 }
 0x1c7   : > { %1013 = vadd.xlane.f32.xlu1 %v1012_v15  ;;  %v940_v5 = vpop.f32.mrf.mxu1  ;;  %v1084_v10 = vsel %vm561_vm0, %v1068_v30, 0.0 }
 0x1c8   : > { %v1093_v3 = vsel %vm561_vm0, %v1071_v6, 0.0  ;;  %v1069_v21 = vmul.f32 %v8067_v55, %v8067_v55  ;;  %v8088_v34 = vadd.f32 %v949_v26, %v7853_v11  ;;  %v941_v36 = vadd.f32 %v8045_v35, %v940_v5 }
 0x1c9   : > { %v6680_v49 = vpop.f32.mrf.mxu1  ;;  %1091 = vadd.xlane.f32.xlu0 %v1090_v9  ;;  %v1006_v40 = vsel %vm561_vm0, %v8067_v55, 0.0 }
 0x1ca   : > { %v952_v16 = vadd.f32 %v6680_v49, %v8045_v35  ;;  %v1087_v33 = vsel %vm561_vm0, %v1069_v21, 0.0  ;;  %v8099_v45 = vadd.f32 %v941_v36, %v7843_v7  ;;  %v1021_v11 = vsel %vm561_vm0, %v8088_v34, 0.0 }
 0x1cb   : > { %1094 = vadd.xlane.f32.xlu1 %v1093_v3  ;;  %v943_v22 = vpop.f32.mrf.mxu1  ;;  %v1074_v47 = vmul.f32 %v8088_v34, %v8088_v34 }
 0x1cc   : > { %v8083_v27 = vadd.f32 %v952_v16, %v7855_v12  ;;  %v944_v31 = vadd.f32 %v8045_v35, %v943_v22  ;;  %v1015_v37 = vsel %vm561_vm0, %v8099_v45, 0.0  ;;  %v1072_v51 = vmul.f32 %v8099_v45, %v8099_v45 }
 0x1cd   : > { %1085 = vadd.xlane.f32.xlu0 %v1084_v10  ;;  %v1102_v28 = vsel %vm561_vm0, %v1074_v47, 0.0  ;;  %v8206_v47 = vld [vmem:[%s10514_s4 + $0x8] sm:$0xff]  }
 0x1ce   : > { %v8094_v41 = vadd.f32 %v944_v31, %v7845_v8  ;;  %v1024_v12 = vsel %vm561_vm0, %v8083_v27, 0.0  ;;  %v1075_v32 = vmul.f32 %v8083_v27, %v8083_v27  ;;  %v1096_v0 = vsel %vm561_vm0, %v1072_v51, 0.0 }
 0x1cf   : > { %1088 = vadd.xlane.f32.xlu1 %v1087_v33 }
 0x1d0   : > { %v1018_v50 = vsel %vm561_vm0, %v8094_v41, 0.0  ;;  %v1105_v54 = vsel %vm561_vm0, %v1075_v32, 0.0  ;;  %v1073_v29 = vmul.f32 %v8094_v41, %v8094_v41 }
 0x1d1   : > { %v6683_v38 = vpop.f32.mrf.mxu1  ;;  %1007 = vadd.xlane.f32.xlu0 %v1006_v40 }
 0x1d2   : > { %v965_v48 = vadd.f32 %v6683_v38, %v8045_v35  ;;  %v1099_v56 = vsel %vm561_vm0, %v1073_v29, 0.0 }
 0x1d3   : > { %v956_v42 = vpop.f32.mrf.mxu1  ;;  %1025 = vadd.xlane.f32.xlu1 %v1024_v12 }
 0x1d4   : > { %v8125_v57 = vadd.f32 %v965_v48, %v7866_v17  ;;  %v957_v43 = vadd.f32 %v8045_v35, %v956_v42  ;;  %v7280_v42 = vld [vmem:[%s10512_s2] sm:$0xff]  }
 0x1d5   : > { %1022 = vadd.xlane.f32.xlu0 %v1021_v11  ;;  %v6684_v8 = vpop.f32.mrf.mxu1  ;;  %v7281_v11 = vld [vmem:[%s10513_s3] sm:$0xff]  }
 0x1d6   : > { %v968_v7 = vadd.f32 %v6684_v8, %v8045_v35  ;;  %v8135_v61 = vadd.f32 %v957_v43, %v7857_v13  ;;  %v1033_v17 = vsel %vm561_vm0, %v8125_v57, 0.0  ;;  %v1078_v62 = vmul.f32 %v8125_v57, %v8125_v57 }
 0x1d7   : > { %1019 = vadd.xlane.f32.xlu1 %v1018_v50  ;;  %v959_v46 = vpop.f32.mrf.mxu1 }
 0x1d8   : > { %v8120_v52 = vadd.f32 %v968_v7, %v7868_v18  ;;  %v960_v25 = vadd.f32 %v8045_v35, %v959_v46  ;;  %v1027_v4 = vsel %vm561_vm0, %v8135_v61, 0.0  ;;  %v1114_v9 = vsel %vm561_vm0, %v1078_v62, 0.0 }
 0x1d9   : > { %1016 = vadd.xlane.f32.xlu0 %v1015_v37  ;;  %v6687_v53 = vpop.f32.mrf.mxu1  ;;  %v1076_v30 = vmul.f32 %v8135_v61, %v8135_v61 }
 0x1da   : > { %v8130_v59 = vadd.f32 %v960_v25, %v7860_v14  ;;  %v1036_v18 = vsel %vm561_vm0, %v8120_v52, 0.0  ;;  %v1079_v1 = vmul.f32 %v8120_v52, %v8120_v52  ;;  %v981_v5 = vadd.f32 %v6687_v53, %v8045_v35 }
 0x1db   : > { %1106 = vadd.xlane.f32.xlu1 %v1105_v54  ;;  %v972_v60 = vpop.f32.mrf.mxu1  ;;  %v1108_v26 = vsel %vm561_vm0, %v1076_v30, 0.0 }
 0x1dc   : > { %v1030_v44 = vsel %vm561_vm0, %v8130_v59, 0.0  ;;  %v1117_v2 = vsel %vm561_vm0, %v1079_v1, 0.0  ;;  %v1077_v15 = vmul.f32 %v8130_v59, %v8130_v59  ;;  %v8161_v21 = vadd.f32 %v981_v5, %v7880_v23 }
 0x1dd   : > { %1103 = vadd.xlane.f32.xlu0 %v1102_v28  ;;  %v6688_v14 = vpop.f32.mrf.mxu1  ;;  %v973_v22 = vadd.f32 %v8045_v35, %v972_v60 }
 0x1de   : > { %v984_v13 = vadd.f32 %v6688_v14, %v8045_v35  ;;  %v1111_v3 = vsel %vm561_vm0, %v1077_v15, 0.0  ;;  %v1045_v33 = vsel %vm561_vm0, %v8161_v21, 0.0  ;;  %v1082_v32 = vmul.f32 %v8161_v21, %v8161_v21 }
 0x1df   : > { %1100 = vadd.xlane.f32.xlu1 %v1099_v56  ;;  %v975_v6 = vpop.f32.mrf.mxu1  ;;  %v8171_v31 = vadd.f32 %v973_v22, %v7871_v19  ;;  %v7279_v19 = vld [vmem:[%s10512_s2 + $0x8] sm:$0xff]  }
 0x1e0   : > { %v8156_v49 = vadd.f32 %v984_v13, %v7882_v24  ;;  %v976_v16 = vadd.f32 %v8045_v35, %v975_v6  ;;  %6689 = vmatprep.subr.bf16.mxu0 %v7279_v19  ;;  %v1126_v37 = vsel %vm561_vm0, %v1082_v32, 0.0 }
 0x1e1   : > { %1097 = vadd.xlane.f32.xlu0 %v1096_v0  ;;  %v1039_v36 = vsel %vm561_vm0, %v8171_v31, 0.0  ;;  %v1080_v40 = vmul.f32 %v8171_v31, %v8171_v31  ;;  %6690 = vmatpush3.bf16.msra.mxu0 %v7279_v19 }
 0x1e2   : > { %v8166_v10 = vadd.f32 %v976_v16, %v7873_v20  ;;  %v1048_v24 = vsel %vm561_vm0, %v8156_v49, 0.0  ;;  %v7278_v20 = vld [vmem:[%s10513_s3 + $0x8] sm:$0xff]   ;;  %v1083_v12 = vmul.f32 %v8156_v49, %v8156_v49  ;;  %6691 = vmatprep.subr.bf16.mxu0 %v7280_v42 }
 0x1e3   : > { %1037 = vadd.xlane.f32.xlu1 %v1036_v18  ;;  %6709 = vmatprep.subr.bf16.mxu1 %v7278_v20  ;;  %v1120_v50 = vsel %vm561_vm0, %v1080_v40, 0.0 }
 0x1e4   : > { %v1042_v23 = vsel %vm561_vm0, %v8166_v10, 0.0  ;;  %v1081_v35 = vmul.f32 %v8166_v10, %v8166_v10  ;;  %6710 = vmatpush3.bf16.msra.mxu1 %v7278_v20  ;;  %v1129_v8 = vsel %vm561_vm0, %v1083_v12, 0.0 }
 0x1e5   : > { %1034 = vadd.xlane.f32.xlu0 %v1033_v17  ;;  %6711 = vmatprep.subr.bf16.mxu1 %v7281_v11 }
 0x1e6   : > { %v1123_v38 = vsel %vm561_vm0, %v1081_v35, 0.0  ;;  %6692 = vmatpush3.bf16.msra.mxu0 %v7280_v42 }
 0x1e7   : > { %1031 = vadd.xlane.f32.xlu1 %v1030_v44  ;;  %6729 = vmatprep.subr.bf16.mxu0 %v8206_v47 }
 0x1e8   : > { %6712 = vmatpush3.bf16.msra.mxu1 %v7281_v11 }
 0x1e9   : > { %1028 = vadd.xlane.f32.xlu0 %v1027_v4 }
 0x1eb   : > { %1118 = vadd.xlane.f32.xlu1 %v1117_v2 }
 0x1ed   : > { %1115 = vadd.xlane.f32.xlu0 %v1114_v9 }
 0x1ef   : > { %1112 = vadd.xlane.f32.xlu1 %v1111_v3 }
 0x1f1   : > { %1109 = vadd.xlane.f32.xlu0 %v1108_v26 }
 0x1f3   : > { %1049 = vadd.xlane.f32.xlu1 %v1048_v24 }
 0x1f5   : > { %1046 = vadd.xlane.f32.xlu0 %v1045_v33 }
 0x1f7   : > { %1043 = vadd.xlane.f32.xlu1 %v1042_v23 }
 0x1f9   : > { %1040 = vadd.xlane.f32.xlu0 %v1039_v36 }
 0x1fb   : > { %1124 = vadd.xlane.f32.xlu1 %v1123_v38 }
 0x1fd   : > { %1121 = vadd.xlane.f32.xlu0 %v1120_v50 }
 0x1ff   : > { %1130 = vadd.xlane.f32.xlu1 %v1129_v8 }
 0x201   : > { %1127 = vadd.xlane.f32.xlu0 %v1126_v37 }
 0x24c   : > { %v1011_v7 = vpop.xlane.xlu1 %1010 }
 0x24d   : > { %v8209_v29 = vmul.f32 0.03125, %v1011_v7 }
 0x24e   : > { %v1005_v54 = vpop.xlane.xlu0 %1004 }
 0x24f   : > { %v1150_v51 = vmul.f32 %v8209_v29, %v8209_v29  ;;  %v8215_v25 = vmul.f32 0.03125, %v1005_v54 }
 0x250   : > { %v1014_v46 = vpop.xlane.xlu1 %1013 }
 0x251   : > { %v8211_v48 = vmul.f32 0.03125, %v1014_v46  ;;  %v1148_v17 = vmul.f32 %v8215_v25, %v8215_v25 }
 0x252   : > { %v1092_v28 = vpop.xlane.xlu0 %1091 }
 0x253   : > { %v1134_v56 = vmul.f32 0.03125, %v1092_v28  ;;  %v1151_v43 = vmul.f32 %v8211_v48, %v8211_v48 }
 0x254   : > { %v1095_v53 = vpop.xlane.xlu1 %1094 }
 0x255   : > { %v1166_v0 = vsub.f32 %v1134_v56, %v1150_v51  ;;  %v1135_v18 = vmul.f32 0.03125, %v1095_v53 }
 0x256   : > { %v1086_v60 = vpop.xlane.xlu0 %1085 }
 0x257   : > { %v1167_v44 = vsub.f32 %v1135_v18, %v1151_v43  ;;  %v1132_v1 = vmul.f32 0.03125, %v1086_v60  ;;  %v1182_v14 = vmax.f32 %v1166_v0, 0.0  ;;  %v1199_v43 = vsub.f32 %v8059_v63, %v8211_v48 }
 0x258   : > { %v1089_v4 = vpop.xlane.xlu1 %1088 }
 0x259   : > { %v1183_v62 = vmax.f32 %v1167_v44, 0.0  ;;  %v1164_v13 = vsub.f32 %v1132_v1, %v1148_v17  ;;  %v1214_v9 = vadd.f32 1e-06, %v1182_v14  ;;  %v1133_v3 = vmul.f32 0.03125, %v1089_v4 }
 0x25a   : > { %v1008_v2 = vpop.xlane.xlu0 %1007  ;;  %v1196_v17 = vsub.f32 %v8053_v39, %v8215_v25 }
 0x25b   : > { %v1215_v15 = vadd.f32 1e-06, %v1183_v62  ;;  %v1180_v6 = vmax.f32 %v1164_v13, 0.0  ;;  %v8221_v5 = vmul.f32 0.03125, %v1008_v2  ;;  %v1198_v13 = vsub.f32 %v8049_v58, %v8209_v29 }
 0x25c   : > { %v1026_v30 = vpop.xlane.xlu1 %1025 }
 0x25d   : > { %7340 = vrsqrt.f32 %v1215_v15  ;;  %v1212_v16 = vadd.f32 1e-06, %v1180_v6  ;;  %v1149_v22 = vmul.f32 %v8221_v5, %v8221_v5  ;;  %v8225_v35 = vmul.f32 0.03125, %v1026_v30 }
 0x25e   : > { %v1023_v26 = vpop.xlane.xlu0 %1022  ;;  %v1197_v58 = vsub.f32 %v8067_v55, %v8221_v5  ;;  %v8266_v55 = vld [vmem:[%s10522_s12] ss:$0 sm:$0xff] }
 0x25f   : > { %7342 = vrsqrt.f32 %v1212_v16  ;;  %v1165_v24 = vsub.f32 %v1133_v3, %v1149_v22  ;;  %v8227_v36 = vmul.f32 0.03125, %v1023_v26  ;;  %v1155_v38 = vmul.f32 %v8225_v35, %v8225_v35  ;;  %v8250_v3 = vld [vmem:[%s10521_s11] ss:$0 sm:$0xff] }
 0x260   : > { %7344 = vrsqrt.f32 %v1214_v9  ;;  %v1020_v33 = vpop.xlane.xlu1 %1019 }
 0x261   : > { %v1181_v23 = vmax.f32 %v1165_v24, 0.0  ;;  %v8231_v42 = vmul.f32 0.03125, %v1020_v33  ;;  %v1154_v50 = vmul.f32 %v8227_v36, %v8227_v36 }
 0x262   : > { %v1017_v20 = vpop.xlane.xlu0 %1016 }
 0x263   : > { %v1213_v19 = vadd.f32 1e-06, %v1181_v23  ;;  %v8235_v37 = vmul.f32 0.03125, %v1017_v20  ;;  %v1153_v56 = vmul.f32 %v8231_v42, %v8231_v42 }
 0x264   : > { %v1107_v40 = vpop.xlane.xlu1 %1106 }
 0x265   : > { %7346 = vrsqrt.f32 %v1213_v19  ;;  %v1139_v12 = vmul.f32 0.03125, %v1107_v40  ;;  %v1152_v44 = vmul.f32 %v8235_v37, %v8235_v37 }
 0x266   : > { %v1104_v11 = vpop.xlane.xlu0 %1103 }
 0x267   : > { %v1171_v32 = vsub.f32 %v1139_v12, %v1155_v38  ;;  %v1138_v8 = vmul.f32 0.03125, %v1104_v11 }
 0x268   : > { %v1101_v7 = vpop.xlane.xlu1 %1100 }
 0x269   : > { %v1187_v54 = vmax.f32 %v1171_v32, 0.0  ;;  %v1170_v46 = vsub.f32 %v1138_v8, %v1154_v50  ;;  %v1137_v28 = vmul.f32 0.03125, %v1101_v7 }
 0x26a   : > { %v7341_v51 = vpop.eup %7340  ;;  %v1098_v53 = vpop.xlane.xlu0 %1097 }
 0x26b   : > { %v1219_v0 = vadd.f32 1e-06, %v1187_v54  ;;  %v1186_v18 = vmax.f32 %v1170_v46, 0.0  ;;  %v1169_v1 = vsub.f32 %v1137_v28, %v1153_v56  ;;  %v1136_v14 = vmul.f32 0.03125, %v1098_v53 }
 0x26c   : > { %v7343_v60 = vpop.eup %7342  ;;  %v1038_v4 = vpop.xlane.xlu1 %1037  ;;  %v1247_v2 = vmul.f32 %v7341_v51, %v1199_v43 }
 0x26d   : > { %v7345_v62 = vpop.eup %7344  ;;  %v1244_v15 = vmul.f32 %v7343_v60, %v1196_v17  ;;  %v1218_v6 = vadd.f32 1e-06, %v1186_v18  ;;  %v1185_v63 = vmax.f32 %v1169_v1, 0.0  ;;  %v1168_v48 = vsub.f32 %v1136_v14, %v1152_v44 }
 0x26e   : > { %v1035_v9 = vpop.xlane.xlu0 %1034  ;;  %7348 = vrsqrt.f32 %v1219_v0  ;;  %v1246_v30 = vmul.f32 %v7345_v62, %v1198_v13  ;;  %v8254_v29 = vmul.f32 0.03125, %v1038_v4  ;;  %v1269_v26 = vmul.f32 %v8250_v3, %v1247_v2  ;;  %v7283_v4 = vld [vmem:[%s10514_s4] sm:$0xff]  }
 0x26f   : > { %7350 = vrsqrt.f32 %v1218_v6  ;;  %v1217_v39 = vadd.f32 1e-06, %v1185_v63  ;;  %v1184_v25 = vmax.f32 %v1168_v48, 0.0  ;;  %v1266_v24 = vmul.f32 %v8250_v3, %v1244_v15 }
 0x270   : > { %v1032_v16 = vpop.xlane.xlu1 %1031  ;;  %v8258_v19 = vmul.f32 0.03125, %v1035_v9  ;;  %v1268_v40 = vmul.f32 %v8250_v3, %v1246_v30  ;;  %v1159_v11 = vmul.f32 %v8254_v29, %v8254_v29  ;;  %v8272_v32 = vadd.f32 %v8266_v55, %v1269_v26 }
 0x271   : > { %7352 = vrsqrt.f32 %v1217_v39  ;;  %v1216_v33 = vadd.f32 1e-06, %v1184_v25  ;;  %v8261_v38 = vmul.f32 0.03125, %v1032_v16  ;;  %v8275_v8 = vadd.f32 %v8266_v55, %v1266_v24 }
 0x272   : > { %v7347_v22 = vpop.eup %7346  ;;  %v1029_v23 = vpop.xlane.xlu0 %1028  ;;  %10541 = vst [vmem:[#allocation2_spill] sm:$0xff] %v8272_v32  ;;  %v1158_v46 = vmul.f32 %v8258_v19, %v8258_v19  ;;  %v8283_v56 = vadd.f32 %v8266_v55, %v1268_v40  ;;  %v1202_v6 = vsub.f32 %v8088_v34, %v8227_v36  ;;  %v1203_v39 = vsub.f32 %v8083_v27, %v8225_v35 }
 0x273   : > { %v1245_v20 = vmul.f32 %v7347_v22, %v1197_v58  ;;  %7354 = vrsqrt.f32 %v1216_v33  ;;  %10542 = vst [vmem:[#allocation3_spill] sm:$0xff] %v8275_v8  ;;  %v1157_v53 = vmul.f32 %v8261_v38, %v8261_v38  ;;  %v8287_v43 = vmul.f32 0.03125, %v1029_v23 }
 0x274   : > { %v1119_v12 = vpop.xlane.xlu1 %1118  ;;  %10544 = vst [vmem:[#allocation5_spill] sm:$0xff] %v8283_v56  ;;  %v8295_v1 = vpack.c.bf16 %v8272_v32, %v8283_v56  ;;  %v1201_v34 = vsub.f32 %v8094_v41, %v8231_v42  ;;  %v1200_v23 = vsub.f32 %v8099_v45, %v8235_v37 }
 0x275   : > { %v1267_v5 = vmul.f32 %v8250_v3, %v1245_v20  ;;  %v1143_v50 = vmul.f32 0.03125, %v1119_v12  ;;  %v1156_v63 = vmul.f32 %v8287_v43, %v8287_v43 }
 0x276   : > { %v1116_v7 = vpop.xlane.xlu0 %1115 }
 0x277   : > { %v8278_v54 = vadd.f32 %v8266_v55, %v1267_v5  ;;  %v1175_v28 = vsub.f32 %v1143_v50, %v1159_v11  ;;  %v1142_v51 = vmul.f32 0.03125, %v1116_v7 }
 0x278   : > { %v1113_v0 = vpop.xlane.xlu1 %1112 }
 0x279   : > { %10543 = vst [vmem:[#allocation4_spill] sm:$0xff] %v8278_v54  ;;  %v8291_v18 = vpack.c.bf16 %v8278_v54, %v8275_v8  ;;  %v1191_v60 = vmax.f32 %v1175_v28, 0.0  ;;  %v1174_v17 = vsub.f32 %v1142_v51, %v1158_v46  ;;  %v1141_v44 = vmul.f32 0.03125, %v1113_v0 }
 0x27a   : > { %v1110_v14 = vpop.xlane.xlu0 %1109 }
 0x27b   : > { %v1223_v62 = vadd.f32 1e-06, %v1191_v60  ;;  %v1190_v13 = vmax.f32 %v1174_v17, 0.0  ;;  %v1173_v2 = vsub.f32 %v1141_v44, %v1157_v53  ;;  %6693 = vmatprep.mubr.msk.bf16.mxu0 %vm561_vm0, %v8291_v18  ;;  %6713 = vmatprep.mubr.msk.bf16.mxu1 %vm561_vm0, %v8291_v18  ;;  %v7349_v15 = vpop.eup %7348  ;;  %v1140_v48 = vmul.f32 0.03125, %v1110_v14 }
 0x27c   : > { %v1050_v9 = vpop.xlane.xlu1 %1049  ;;  %6694 = vmatmul.mubr.msk.bf16.vlgmr.msra.gmra.mxu0 %vm561_vm0, %v8295_v1  ;;  %6714 = vmatmul.mubr.msk.bf16.vlgmr.msra.gmra.mxu1 %vm561_vm0, %v8295_v1  ;;  %v7351_v30 = vpop.eup %7350  ;;  %v1251_v24 = vmul.f32 %v7349_v15, %v1203_v39 }
 0x27d   : > { %v1222_v25 = vadd.f32 1e-06, %v1190_v13  ;;  %v1189_v16 = vmax.f32 %v1173_v2, 0.0  ;;  %6730 = vmatpush3.bf16.msra.mxu0 %v8206_v47  ;;  %v1250_v36 = vmul.f32 %v7351_v30, %v1202_v6  ;;  %7356 = vrsqrt.f32 %v1223_v62 }
 0x27e   : > { %v1172_v58 = vsub.f32 %v1140_v48, %v1156_v63  ;;  %v1047_v22 = vpop.xlane.xlu0 %1046  ;;  %6731 = vmatprep.subr.bf16.mxu0 %v7283_v4  ;;  %v7353_v26 = vpop.eup %7352  ;;  %v1273_v11 = vmul.f32 %v8250_v3, %v1251_v24  ;;  %v8330_v28 = vmul.f32 0.03125, %v1050_v9 }
 0x27f   : > { %7358 = vrsqrt.f32 %v1222_v25  ;;  %v1221_v33 = vadd.f32 1e-06, %v1189_v16  ;;  %v1249_v27 = vmul.f32 %v7353_v26, %v1201_v34  ;;  %v1272_v47 = vmul.f32 %v8250_v3, %v1250_v36 }
 0x280   : > { %v1188_v35 = vmax.f32 %v1172_v58, 0.0  ;;  %v1044_v20 = vpop.xlane.xlu1 %1043  ;;  %v7355_v40 = vpop.eup %7354  ;;  %v8341_v44 = vadd.f32 %v8266_v55, %v1273_v11  ;;  %v8349_v13 = vmul.f32 0.03125, %v1047_v22  ;;  %v1163_v63 = vmul.f32 %v8330_v28, %v8330_v28 }
 0x281   : > { %7360 = vrsqrt.f32 %v1221_v33  ;;  %6732 = vmatpush3.bf16.msra.mxu0 %v7283_v4  ;;  %v1271_v41 = vmul.f32 %v8250_v3, %v1249_v27  ;;  %v1248_v42 = vmul.f32 %v7355_v40, %v1200_v23  ;;  %v8322_v50 = vmul.f32 0.03125, %v1044_v20 }
 0x282   : > { %v1220_v12 = vadd.f32 1e-06, %v1188_v35  ;;  %v1041_v5 = vpop.xlane.xlu0 %1040  ;;  %v8328_v46 = vadd.f32 %v8266_v55, %v1272_v47  ;;  %10548 = vst [vmem:[#allocation9_spill] sm:$0xff] %v8341_v44  ;;  %v1206_v16 = vsub.f32 %v8125_v57, %v8258_v19  ;;  %v1207_v26 = vsub.f32 %v8120_v52, %v8254_v29 }
 0x283   : > { %v8324_v7 = vmul.f32 0.03125, %v1041_v5  ;;  %v1270_v45 = vmul.f32 %v8250_v3, %v1248_v42  ;;  %v8333_v51 = vadd.f32 %v8266_v55, %v1271_v41  ;;  %v1161_v0 = vmul.f32 %v8322_v50, %v8322_v50 }
 0x284   : > { %7362 = vrsqrt.f32 %v1220_v12  ;;  %v1125_v37 = vpop.xlane.xlu1 %1124  ;;  %10545 = vst [vmem:[#allocation6_spill] sm:$0xff] %v8328_v46  ;;  %v8353_v6 = vpack.c.bf16 %v8341_v44, %v8328_v46  ;;  %v1162_v24 = vmul.f32 %v8349_v13, %v8349_v13  ;;  %v1205_v57 = vsub.f32 %v8130_v59, %v8261_v38 }
 0x285   : > { %10546 = vst [vmem:[#allocation7_spill] sm:$0xff] %v8333_v51  ;;  %v8336_v53 = vadd.f32 %v8266_v55, %v1270_v45  ;;  %v1145_v60 = vmul.f32 0.03125, %v1125_v37  ;;  %v1160_v14 = vmul.f32 %v8324_v7, %v8324_v7  ;;  %v1204_v41 = vsub.f32 %v8135_v61, %v8287_v43 }
 0x286   : > { %v1122_v17 = vpop.xlane.xlu0 %1121 }
 0x287   : > { %10547 = vst [vmem:[#allocation8_spill] sm:$0xff] %v8336_v53  ;;  %v1144_v4 = vmul.f32 0.03125, %v1122_v17  ;;  %v8347_v62 = vpack.c.bf16 %v8333_v51, %v8336_v53  ;;  %v1177_v2 = vsub.f32 %v1145_v60, %v1161_v0 }
 0x288   : > { %v1131_v15 = vpop.xlane.xlu1 %1130 }
 0x289   : > { %v1176_v48 = vsub.f32 %v1144_v4, %v1160_v14  ;;  %v1147_v9 = vmul.f32 0.03125, %v1131_v15  ;;  %v1193_v30 = vmax.f32 %v1177_v2, 0.0  ;;  %6697 = vmatprep.mubr.msk.bf16.mxu0 %vm561_vm0, %v8347_v62  ;;  %6717 = vmatprep.mubr.msk.bf16.mxu1 %vm561_vm0, %v8347_v62  ;;  %v1209_v14 = vsub.f32 %v8166_v10, %v8322_v50 }
 0x28a   : > { %v1128_v39 = vpop.xlane.xlu0 %1127  ;;  %v7357_v25 = vpop.eup %7356  ;;  %6698 = vmatmul.mubr.msk.bf16.gmra.mxu0 %vm561_vm0, %v8353_v6  ;;  %6718 = vmatmul.mubr.msk.bf16.gmra.mxu1 %vm561_vm0, %v8353_v6  ;;  %v1208_v2 = vsub.f32 %v8171_v31, %v8324_v7  ;;  %v1211_v10 = vsub.f32 %v8156_v49, %v8330_v28  ;;  %v1210_v31 = vsub.f32 %v8161_v21, %v8349_v13 }
 0x28b   : > { %v1192_v34 = vmax.f32 %v1176_v48, 0.0  ;;  %v1179_v36 = vsub.f32 %v1147_v9, %v1163_v63  ;;  %v1146_v58 = vmul.f32 0.03125, %v1128_v39  ;;  %v1225_v33 = vadd.f32 1e-06, %v1193_v30 }
 0x28c   : > { %v7359_v22 = vpop.eup %7358  ;;  %v1255_v40 = vmul.f32 %v7357_v25, %v1207_v26 }
 0x28d   : > { %v1254_v19 = vmul.f32 %v7359_v22, %v1206_v16  ;;  %v1224_v23 = vadd.f32 1e-06, %v1192_v34  ;;  %v1195_v27 = vmax.f32 %v1179_v36, 0.0  ;;  %7364 = vrsqrt.f32 %v1225_v33 }
 0x28e   : > { %v7361_v35 = vpop.eup %7360  ;;  %v1178_v20 = vsub.f32 %v1146_v58, %v1162_v24  ;;  %v1277_v11 = vmul.f32 %v8250_v3, %v1255_v40 }
 0x28f   : > { %v1253_v47 = vmul.f32 %v7361_v35, %v1205_v57  ;;  %7366 = vrsqrt.f32 %v1224_v23  ;;  %v1227_v52 = vadd.f32 1e-06, %v1195_v27  ;;  %v1276_v12 = vmul.f32 %v8250_v3, %v1254_v19 }
 0x290   : > { %v1194_v29 = vmax.f32 %v1178_v20, 0.0  ;;  %v8389_v0 = vadd.f32 %v8266_v55, %v1277_v11 }
 0x291   : > { %v7363_v42 = vpop.eup %7362  ;;  %v1275_v5 = vmul.f32 %v8250_v3, %v1253_v47  ;;  %7368 = vrsqrt.f32 %v1227_v52  ;;  %v8380_v37 = vadd.f32 %v8266_v55, %v1276_v12 }
 0x292   : > { %v1252_v59 = vmul.f32 %v7363_v42, %v1204_v41  ;;  %v1226_v38 = vadd.f32 1e-06, %v1194_v29  ;;  %10552 = vst [vmem:[#allocation13_spill] sm:$0xff] %v8389_v0 }
 0x293   : > { %10549 = vst [vmem:[#allocation10_spill] sm:$0xff] %v8380_v37  ;;  %v8383_v61 = vadd.f32 %v8266_v55, %v1275_v5  ;;  %v8397_v17 = vpack.c.bf16 %v8389_v0, %v8380_v37 }
 0x294   : > { %v1274_v45 = vmul.f32 %v8250_v3, %v1252_v59  ;;  %7370 = vrsqrt.f32 %v1226_v38 }
 0x295   : > { %10550 = vst [vmem:[#allocation11_spill] sm:$0xff] %v8383_v61 }
 0x296   : > { %v8386_v43 = vadd.f32 %v8266_v55, %v1274_v45 }
 0x298   : > { %10551 = vst [vmem:[#allocation12_spill] sm:$0xff] %v8386_v43  ;;  %v8393_v60 = vpack.c.bf16 %v8383_v61, %v8386_v43 }
 0x29a   : > { %6701 = vmatprep.mubr.msk.bf16.mxu0 %vm561_vm0, %v8393_v60  ;;  %6721 = vmatprep.mubr.msk.bf16.mxu1 %vm561_vm0, %v8393_v60  ;;  %v7365_v4 = vpop.eup %7364 }
 0x29b   : > { %6702 = vmatmul.mubr.msk.bf16.gmra.mxu0 %vm561_vm0, %v8397_v17  ;;  %6722 = vmatmul.mubr.msk.bf16.gmra.mxu1 %vm561_vm0, %v8397_v17  ;;  %v1257_v63 = vmul.f32 %v7365_v4, %v1209_v14 }
 0x29c   : > { %v7367_v15 = vpop.eup %7366 }
 0x29d   : > { %v1256_v48 = vmul.f32 %v7367_v15, %v1208_v2  ;;  %v1279_v50 = vmul.f32 %v8250_v3, %v1257_v63 }
 0x29e   : > { %v7369_v9 = vpop.eup %7368 }
 0x29f   : > { %v1278_v30 = vmul.f32 %v8250_v3, %v1256_v48  ;;  %v1259_v7 = vmul.f32 %v7369_v9, %v1211_v10  ;;  %v8418_v25 = vadd.f32 %v8266_v55, %v1279_v50 }
 0x2a1   : > { %v7371_v39 = vpop.eup %7370  ;;  %10553 = vst [vmem:[#allocation14_spill] sm:$0xff] %v8418_v25  ;;  %v8421_v16 = vadd.f32 %v8266_v55, %v1278_v30  ;;  %v1281_v34 = vmul.f32 %v8250_v3, %v1259_v7 }
 0x2a2   : > { %v1258_v36 = vmul.f32 %v7371_v39, %v1210_v31 }
 0x2a3   : > { %10554 = vst [vmem:[#allocation15_spill] sm:$0xff] %v8421_v16  ;;  %v8426_v49 = vpack.c.bf16 %v8418_v25, %v8421_v16  ;;  %v8434_v21 = vadd.f32 %v8266_v55, %v1281_v34 }
 0x2a4   : > { %v1280_v28 = vmul.f32 %v8250_v3, %v1258_v36 }
 0x2a5   : > { %6705 = vmatprep.mubr.msk.bf16.mxu0 %vm561_vm0, %v8426_v49  ;;  %6725 = vmatprep.mubr.msk.bf16.mxu1 %vm561_vm0, %v8426_v49  ;;  %10555 = vst [vmem:[#allocation16_spill] sm:$0xff] %v8434_v21 }
 0x2a6   : > { %v8437_v13 = vadd.f32 %v8266_v55, %v1280_v28 }
 0x2a8   : > { %10556 = vst [vmem:[#allocation17_spill] sm:$0xff] %v8437_v13  ;;  %v8441_v58 = vpack.c.bf16 %v8434_v21, %v8437_v13 }
 0x2aa   : > { %6706 = vmatmul.mubr.msk.bf16.gmra.mxu0 %vm561_vm0, %v8441_v58  ;;  %6726 = vmatmul.mubr.msk.bf16.gmra.mxu1 %vm561_vm0, %v8441_v58 }
 0x2ab   : > { %6733 = vmatprep.mubr.msk.bf16.mxu0 %vm561_vm0, %v8291_v18 }
 0x2b2   : > { %6734 = vmatmul.mubr.msk.bf16.vlgmr.msra.gmra.mxu0 %vm561_vm0, %v8295_v1 }
 0x2b3   : > { %6737 = vmatprep.mubr.msk.bf16.mxu0 %vm561_vm0, %v8347_v62 }
 0x2ba   : > { %6738 = vmatmul.mubr.msk.bf16.gmra.mxu0 %vm561_vm0, %v8353_v6 }
 0x2bb   : > { %6741 = vmatprep.mubr.msk.bf16.mxu0 %vm561_vm0, %v8393_v60 }
 0x2c2   : > { %6742 = vmatmul.mubr.msk.bf16.gmra.mxu0 %vm561_vm0, %v8397_v17 }
 0x2c3   : > { %6745 = vmatprep.mubr.msk.bf16.mxu0 %vm561_vm0, %v8426_v49 }
 0x2ca   : > { %6746 = vmatmul.mubr.msk.bf16.gmra.mxu0 %vm561_vm0, %v8441_v58 }
 0x33c   : > { %v6695_v3 = vpop.f32.mrf.mxu0  ;;  %v6715_v55 = vpop.f32.mrf.mxu1 }
 0x33d   : > { %v8465_v57 = vmul.f32 0.35355338, %v6695_v3 }
 0x33e   : > { %v1388_v22 = vpop.f32.mrf.mxu0  ;;  %v8463_v26 = vpop.f32.mrf.mxu1 }
 0x33f   : > { %v1451_v35 = vmul.f32 0.35355338, %v1388_v22 }
 0x340   : > { %v6696_v24 = vpop.f32.mrf.mxu0  ;;  %v6716_v33 = vpop.f32.mrf.mxu1 }
 0x341   : > { %v8467_v19 = vmul.f32 0.35355338, %v6696_v24  ;;  %v8469_v23 = vpack.c.bf16 %v6716_v33, %v6715_v55 }
 0x342   : > { %v1391_v27 = vpop.f32.mrf.mxu0  ;;  %v8474_v52 = vpop.f32.mrf.mxu1 }
 0x343   : > { %v1452_v40 = vmul.f32 0.35355338, %v1391_v27 }
 0x345   : > { %v1693_v47 = vpack.c.bf16 %v1452_v40, %v1451_v35 }
 0x347   : > { %6765 = vmatprep.mubr.msk.bf16.mxu1 %vm1709_vm2, %v1693_v47 }
 0x34a   : > { %v6699_v41 = vpop.f32.mrf.mxu0  ;;  %v6719_v42 = vpop.f32.mrf.mxu1 }
 0x34b   : > { %v8478_v5 = vmul.f32 0.35355338, %v6699_v41 }
 0x34c   : > { %v8476_v29 = vpop.f32.mrf.mxu0  ;;  %v8482_v38 = vpop.f32.mrf.mxu1 }
 0x34e   : > { %v6700_v12 = vpop.f32.mrf.mxu0  ;;  %v6720_v45 = vpop.f32.mrf.mxu1 }
 0x34f   : > { %v8480_v59 = vmul.f32 0.35355338, %v6700_v12 }
 0x350   : > { %v8486_v14 = vpop.f32.mrf.mxu0  ;;  %v1536_v4 = vpop.f32.mrf.mxu1 }
 0x35b   : > { %v6703_v2 = vpop.f32.mrf.mxu0  ;;  %v6723_v15 = vpop.f32.mrf.mxu1 }
 0x35c   : > { %v8490_v10 = vmul.f32 0.35355338, %v6703_v2 }
 0x35d   : > { %v8488_v63 = vpop.f32.mrf.mxu0  ;;  %v1549_v50 = vpop.f32.mrf.mxu1 }
 0x35f   : > { %v6704_v48 = vpop.f32.mrf.mxu0  ;;  %v6724_v31 = vpop.f32.mrf.mxu1 }
 0x360   : > { %v8492_v9 = vmul.f32 0.35355338, %v6704_v48  ;;  %v1706_v30 = vpack.c.bf16 %v6724_v31, %v6723_v15  ;;  %v1704_v15 = vpack.c.bf16 %v6720_v45, %v6719_v42 }
 0x361   : > { %v8496_v7 = vpop.f32.mrf.mxu0  ;;  %v1552_v39 = vpop.f32.mrf.mxu1 }
 0x36a   : > { %v6707_v34 = vpop.f32.mrf.mxu0  ;;  %v6727_v36 = vpop.f32.mrf.mxu1 }
 0x36b   : > { %v8500_v24 = vmul.f32 0.35355338, %v6707_v34 }
 0x36c   : > { %v8498_v28 = vpop.f32.mrf.mxu0  ;;  %v1565_v3 = vpop.f32.mrf.mxu1 }
 0x36e   : > { %v6708_v55 = vpop.f32.mrf.mxu0  ;;  %v6728_v22 = vpop.f32.mrf.mxu1 }
 0x36f   : > { %v8502_v33 = vmul.f32 0.35355338, %v6708_v55  ;;  %v1708_v27 = vpack.c.bf16 %v6728_v22, %v6727_v36 }
 0x370   : > { %v8504_v35 = vpop.f32.mrf.mxu0  ;;  %v1568_v40 = vpop.f32.mrf.mxu1 }
 0x371   : > { %v1756_v41 = vsel %vm1709_vm2, %v1708_v27, 0  ;;  %v1707_v12 = vpack.c.bf16 %v1568_v40, %v1565_v3  ;;  %7229 = vmatprep.subr.msk.bf16.mxu1 %vm1709_vm2, %v1708_v27  ;;  %v1750_v3 = vsel %vm1709_vm2, %v1706_v30, 0  ;;  %v1705_v27 = vpack.c.bf16 %v1552_v39, %v1549_v50 }
 0x372   : > { %v6735_v2 = vpop.f32.mrf.mxu0  ;;  %6750 = vmatpush3.bf16.xpose.msra.mxu1 %v1756_v41  ;;  %v1744_v50 = vsel %vm1709_vm2, %v1704_v15, 0 }
 0x373   : > { %7230 = vmatprep.subr.msk.bf16.mxu1 %vm1709_vm2, %v1707_v12  ;;  %v1753_v36 = vsel %vm1709_vm2, %v1707_v12, 0  ;;  %v1747_v31 = vsel %vm1709_vm2, %v1705_v27, 0 }
 0x374   : > { %v1630_v48 = vpop.f32.mrf.mxu0 }
 0x376   : > { %v6736_v34 = vpop.f32.mrf.mxu0 }
 0x378   : > { %v1633_v55 = vpop.f32.mrf.mxu0 }
 0x37a   : > { %v6739_v22 = vpop.f32.mrf.mxu0  ;;  %6752 = vmatpush3.bf16.xpose.msra.mxu1 %v1753_v36 }
 0x37b   : > { %7231 = vmatprep.subr.msk.bf16.mxu1 %vm1709_vm2, %v1706_v30  ;;  %v1703_v30 = vpack.c.bf16 %v1536_v4, %v8482_v38  ;;  %v7284_v38 = vld [vmem:[%s10513_s3 + $0x18] sm:$0xff]  }
 0x37c   : > { %v1646_v47 = vpop.f32.mrf.mxu0 }
 0x37e   : > { %v6740_v11 = vpop.f32.mrf.mxu0 }
 0x380   : > { %v1649_v20 = vpop.f32.mrf.mxu0 }
 0x382   : > { %v6743_v40 = vpop.f32.mrf.mxu0  ;;  %6754 = vmatpush3.bf16.xpose.msra.mxu1 %v1750_v3  ;;  %v1741_v3 = vsel %vm1709_vm2, %v1703_v30, 0 }
 0x383   : > { %7232 = vmatprep.subr.msk.bf16.mxu1 %vm1709_vm2, %v1705_v27 }
 0x384   : > { %v1662_v41 = vpop.f32.mrf.mxu0 }
 0x386   : > { %v6744_v25 = vpop.f32.mrf.mxu0 }
 0x387   : > { %v2044_v42 = vpack.c.bf16 %v6744_v25, %v6743_v40  ;;  %v1701_v25 = vpack.c.bf16 %v8474_v52, %v8463_v26  ;;  %v1456_v26 = vmul.f32 0.35355338, %v8486_v14  ;;  %v1459_v14 = vmul.f32 0.35355338, %v8488_v63  ;;  %v8583_v63 = vld [vmem:[%s8580_s17] ss:$0 sm:$0xff] }
 0x388   : > { %v1665_v16 = vpop.f32.mrf.mxu0 }
 0x389   : > { %v2043_v45 = vpack.c.bf16 %v1665_v16, %v1662_v41  ;;  %v2040_v16 = vpack.c.bf16 %v6736_v34, %v6735_v2  ;;  %v1735_v4 = vsel %vm1709_vm2, %v1701_v25, 0  ;;  %v1460_v2 = vmul.f32 0.35355338, %v8496_v7 }
 0x38a   : > { %v6747_v12 = vpop.f32.mrf.mxu0  ;;  %6756 = vmatpush3.bf16.xpose.msra.mxu1 %v1747_v31  ;;  %v10559_v7 = vpack.c.bf16 %v8492_v9, %v8490_v10 }
 0x38b   : > { %7233 = vmatprep.subr.msk.bf16.mxu1 %vm1709_vm2, %v1704_v15 }
 0x38c   : > { %v1678_v36 = vpop.f32.mrf.mxu0 }
 0x38e   : > { %v6748_v21 = vpop.f32.mrf.mxu0 }
 0x38f   : > { %v2046_v13 = vpack.c.bf16 %v6748_v21, %v6747_v12  ;;  %v2042_v21 = vpack.c.bf16 %v6740_v11, %v6739_v22  ;;  %v2039_v11 = vpack.c.bf16 %v1633_v55, %v1630_v48  ;;  %v10558_v48 = vpack.c.bf16 %v8480_v59, %v8478_v5 }
 0x390   : > { %v1681_v61 = vpop.f32.mrf.mxu0  ;;  %v10560_v5 = vpack.c.bf16 %v8502_v33, %v8500_v24 }
 0x391   : > { %v2045_v39 = vpack.c.bf16 %v1681_v61, %v1678_v36  ;;  %6781 = vmatprep.subr.bf16.mxu0 %v2046_v13  ;;  %v1738_v61 = vsel %vm1709_vm2, %v8469_v23, 0 }
 0x392   : > { %6758 = vmatpush3.bf16.xpose.msra.mxu1 %v1744_v50  ;;  %6782 = vmatpush3.bf16.msra.mxu0 %v2046_v13  ;;  %v2041_v13 = vpack.c.bf16 %v1649_v20, %v1646_v47  ;;  %v7285_v20 = vld [vmem:[%s10513_s3 + $0x10] sm:$0xff]   ;;  %v10557_v47 = vpack.c.bf16 %v8467_v19, %v8465_v57  ;;  %v1464_v57 = vmul.f32 0.35355338, %v8504_v35  ;;  %v1463_v19 = vmul.f32 0.35355338, %v8498_v28 }
 0x393   : > { %7234 = vmatprep.subr.msk.bf16.mxu1 %vm1709_vm2, %v1703_v30  ;;  %6783 = vmatprep.subr.bf16.mxu0 %v2045_v39 }
 0x394   : > { %v1699_v34 = vpack.c.bf16 %v1464_v57, %v1463_v19 }
 0x396   : > { %6784 = vmatpush3.bf16.msra.mxu0 %v2045_v39 }
 0x397   : > { %6785 = vmatprep.subr.bf16.mxu0 %v2044_v42 }
 0x39a   : > { %6760 = vmatpush3.bf16.xpose.msra.mxu1 %v1741_v3  ;;  %6786 = vmatpush3.bf16.msra.mxu0 %v2044_v42 }
 0x39b   : > { %7235 = vmatprep.subr.msk.bf16.mxu1 %vm1709_vm2, %v8469_v23  ;;  %6787 = vmatprep.subr.bf16.mxu0 %v2043_v45  ;;  %v1455_v23 = vmul.f32 0.35355338, %v8476_v29  ;;  %v1697_v29 = vpack.c.bf16 %v1460_v2, %v1459_v14 }
 0x39d   : > { %v1695_v52 = vpack.c.bf16 %v1456_v26, %v1455_v23 }
 0x39e   : > { %6788 = vmatpush3.bf16.msra.mxu0 %v2043_v45 }
 0x39f   : > { %6789 = vmatprep.subr.bf16.mxu0 %v2042_v21 }
 0x3a2   : > { %6762 = vmatpush3.bf16.xpose.msra.mxu1 %v1738_v61  ;;  %6790 = vmatpush3.bf16.msra.mxu0 %v2042_v21 }
 0x3a3   : > { %7236 = vmatprep.subr.msk.bf16.mxu1 %vm1709_vm2, %v1701_v25  ;;  %6791 = vmatprep.subr.bf16.mxu0 %v2041_v13 }
 0x3a6   : > { %6792 = vmatpush3.bf16.msra.mxu0 %v2041_v13 }
 0x3a7   : > { %6793 = vmatprep.subr.bf16.mxu0 %v2040_v16 }
 0x3aa   : > { %6764 = vmatpush3.bf16.xpose.msra.mxu1 %v1735_v4  ;;  %6794 = vmatpush3.bf16.msra.mxu0 %v2040_v16 }
 0x3ab   : > { %6795 = vmatprep.subr.bf16.mxu0 %v2039_v11  ;;  %6833 = vmatprep.subr.bf16.mxu1 %v7284_v38 }
 0x3ae   : > { %6796 = vmatpush3.bf16.msra.mxu0 %v2039_v11 }
 0x3b1   : > { %6766 = vmatmul.mubr.msk.bf16.vlgmr.msra.gmra.mxu1 %vm1709_vm2, %v10557_v47 }
 0x3b2   : > { %6769 = vmatprep.mubr.msk.bf16.mxu1 %vm1709_vm2, %v1695_v52  ;;  %6834 = vmatpush3.bf16.msra.mxu1 %v7284_v38 }
 0x3b3   : > { %6835 = vmatprep.subr.bf16.mxu1 %v7285_v20 }
 0x3b6   : > { %6836 = vmatpush3.bf16.msra.mxu1 %v7285_v20 }
 0x3b9   : > { %6770 = vmatmul.mubr.msk.bf16.gmra.mxu1 %vm1709_vm2, %v10558_v48 }
 0x3ba   : > { %6773 = vmatprep.mubr.msk.bf16.mxu1 %vm1709_vm2, %v1697_v29 }
 0x3c1   : > { %6774 = vmatmul.mubr.msk.bf16.gmra.mxu1 %vm1709_vm2, %v10559_v7 }
 0x3c2   : > { %6777 = vmatprep.mubr.msk.bf16.mxu1 %vm1709_vm2, %v1699_v34 }
 0x3c9   : > { %6778 = vmatmul.mubr.msk.bf16.gmra.mxu1 %vm1709_vm2, %v10560_v5 }
 0x3ca   : > { %6837 = vmatprep.mubr.msk.bf16.mxu1 %vm561_vm0, %v8291_v18 }
 0x3d1   : > { %6838 = vmatmul.mubr.msk.bf16.vlgmr.msra.gmra.mxu1 %vm561_vm0, %v8295_v1 }
 0x3d2   : > { %6841 = vmatprep.mubr.msk.bf16.mxu1 %vm561_vm0, %v8347_v62 }
 0x3d9   : > { %6842 = vmatmul.mubr.msk.bf16.gmra.mxu1 %vm561_vm0, %v8353_v6 }
 0x3da   : > { %6845 = vmatprep.mubr.msk.bf16.mxu1 %vm561_vm0, %v8393_v60 }
 0x3e1   : > { %6846 = vmatmul.mubr.msk.bf16.gmra.mxu1 %vm561_vm0, %v8397_v17 }
 0x3e2   : > { %6849 = vmatprep.mubr.msk.bf16.mxu1 %vm561_vm0, %v8426_v49 }
 0x3e9   : > { %6850 = vmatmul.mubr.msk.bf16.gmra.mxu1 %vm561_vm0, %v8441_v58 }
 0x471   : > { %v6767_v59 = vpop.f32.mrf.mxu1 }
 0x472   : > { %v8590_v33 = vadd.f32 %v6767_v59, %v8583_v63 }
 0x473   : > { %v1792_v10 = vpop.f32.mrf.mxu1 }
 0x474   : > { %v8586_v9 = vadd.f32 %v8583_v63, %v1792_v10 }
 0x475   : > { %v6768_v28 = vpop.f32.mrf.mxu1 }
 0x476   : > { %1855 = vmax.xlane.f32.xlu0 %v8586_v9  ;;  %v8598_v27 = vadd.f32 %v6768_v28, %v8583_v63 }
 0x477   : > { %v1795_v24 = vpop.f32.mrf.mxu1 }
 0x478   : > { %v8593_v35 = vadd.f32 %v8583_v63, %v1795_v24 }
 0x479   : > { %v6771_v55 = vpop.f32.mrf.mxu1 }
 0x47a   : > { %1857 = vmax.xlane.f32.xlu1 %v8593_v35  ;;  %1859 = vmax.xlane.f32.xlu0 %v8590_v33  ;;  %v8606_v31 = vadd.f32 %v6771_v55, %v8583_v63 }
 0x47b   : > { %v1808_v22 = vpop.f32.mrf.mxu1 }
 0x47c   : > { %v8601_v40 = vadd.f32 %v8583_v63, %v1808_v22 }
 0x47d   : > { %v6772_v41 = vpop.f32.mrf.mxu1 }
 0x47e   : > { %1861 = vmax.xlane.f32.xlu1 %v8598_v27  ;;  %1863 = vmax.xlane.f32.xlu0 %v8601_v40  ;;  %v8614_v30 = vadd.f32 %v6772_v41, %v8583_v63 }
 0x47f   : > { %v1811_v15 = vpop.f32.mrf.mxu1 }
 0x480   : > { %v8609_v12 = vadd.f32 %v8583_v63, %v1811_v15 }
 0x481   : > { %v6775_v36 = vpop.f32.mrf.mxu1 }
 0x482   : > { %1865 = vmax.xlane.f32.xlu1 %v8609_v12  ;;  %1867 = vmax.xlane.f32.xlu0 %v8606_v31  ;;  %v8622_v3 = vadd.f32 %v6775_v36, %v8583_v63 }
 0x483   : > { %v1824_v50 = vpop.f32.mrf.mxu1 }
 0x484   : > { %v8617_v39 = vadd.f32 %v8583_v63, %v1824_v50 }
 0x485   : > { %v6776_v42 = vpop.f32.mrf.mxu1 }
 0x486   : > { %1869 = vmax.xlane.f32.xlu1 %v8614_v30  ;;  %1871 = vmax.xlane.f32.xlu0 %v8617_v39  ;;  %v8630_v13 = vadd.f32 %v6776_v42, %v8583_v63 }
 0x487   : > { %v1827_v45 = vpop.f32.mrf.mxu1 }
 0x488   : > { %v8625_v21 = vadd.f32 %v8583_v63, %v1827_v45 }
 0x489   : > { %v6779_v61 = vpop.f32.mrf.mxu1 }
 0x48a   : > { %1873 = vmax.xlane.f32.xlu1 %v8625_v21  ;;  %1875 = vmax.xlane.f32.xlu0 %v8622_v3  ;;  %v8638_v4 = vadd.f32 %v6779_v61, %v8583_v63 }
 0x48b   : > { %v1840_v25 = vpop.f32.mrf.mxu1 }
 0x48c   : > { %v8633_v16 = vadd.f32 %v8583_v63, %v1840_v25 }
 0x48d   : > { %v6780_v38 = vpop.f32.mrf.mxu1 }
 0x48e   : > { %1877 = vmax.xlane.f32.xlu1 %v8630_v13  ;;  %1879 = vmax.xlane.f32.xlu0 %v8633_v16  ;;  %v8646_v52 = vadd.f32 %v6780_v38, %v8583_v63 }
 0x48f   : > { %v1843_v11 = vpop.f32.mrf.mxu1 }
 0x490   : > { %v8641_v26 = vadd.f32 %v8583_v63, %v1843_v11 }
 0x491   : > { %v6839_v23 = vpop.f32.mrf.mxu1 }
 0x492   : > { %1881 = vmax.xlane.f32.xlu1 %v8641_v26  ;;  %1883 = vmax.xlane.f32.xlu0 %v8638_v4 }
 0x493   : > { %v2325_v20 = vpop.f32.mrf.mxu1 }
 0x495   : > { %v6840_v47 = vpop.f32.mrf.mxu1 }
 0x496   : > { %v2511_v2 = vpack.c.bf16 %v6840_v47, %v6839_v23  ;;  %1885 = vmax.xlane.f32.xlu1 %v8646_v52 }
 0x497   : > { %v2328_v14 = vpop.f32.mrf.mxu1 }
 0x498   : > { %v2510_v29 = vpack.c.bf16 %v2328_v14, %v2325_v20  ;;  %v2546_v47 = vsel %vm1709_vm2, %v2511_v2, 0 }
 0x499   : > { %v6843_v48 = vpop.f32.mrf.mxu1 }
 0x49a   : > { %v2543_v14 = vsel %vm1709_vm2, %v2510_v29, 0 }
 0x49b   : > { %v2341_v57 = vpop.f32.mrf.mxu1 }
 0x49d   : > { %v6844_v19 = vpop.f32.mrf.mxu1 }
 0x49e   : > { %v2513_v25 = vpack.c.bf16 %v6844_v19, %v6843_v48 }
 0x49f   : > { %v2344_v34 = vpop.f32.mrf.mxu1 }
 0x4a0   : > { %v2552_v11 = vsel %vm1709_vm2, %v2513_v25, 0  ;;  %v2512_v23 = vpack.c.bf16 %v2344_v34, %v2341_v57 }
 0x4a1   : > { %v6847_v7 = vpop.f32.mrf.mxu1 }
 0x4a2   : > { %v2549_v20 = vsel %vm1709_vm2, %v2512_v23, 0 }
 0x4a3   : > { %v2357_v5 = vpop.f32.mrf.mxu1 }
 0x4a5   : > { %v6848_v59 = vpop.f32.mrf.mxu1 }
 0x4a6   : > { %v2515_v50 = vpack.c.bf16 %v6848_v59, %v6847_v7 }
 0x4a7   : > { %v2360_v10 = vpop.f32.mrf.mxu1 }
 0x4a8   : > { %v2558_v45 = vsel %vm1709_vm2, %v2515_v50, 0  ;;  %v2514_v61 = vpack.c.bf16 %v2360_v10, %v2357_v5 }
 0x4a9   : > { %v6851_v28 = vpop.f32.mrf.mxu1 }
 0x4aa   : > { %v2555_v38 = vsel %vm1709_vm2, %v2514_v61, 0 }
 0x4ab   : > { %v2373_v24 = vpop.f32.mrf.mxu1 }
 0x4ad   : > { %v6852_v55 = vpop.f32.mrf.mxu1 }
 0x4ae   : > { %v2517_v22 = vpack.c.bf16 %v6852_v55, %v6851_v28 }
 0x4af   : > { %v2376_v41 = vpop.f32.mrf.mxu1 }
 0x4b0   : > { %v2564_v15 = vsel %vm1709_vm2, %v2517_v22, 0  ;;  %v2516_v36 = vpack.c.bf16 %v2376_v41, %v2373_v24  ;;  %7237 = vmatprep.subr.msk.bf16.mxu1 %vm1709_vm2, %v2517_v22 }
 0x4b1   : > { %6874 = vmatpush3.bf16.xpose.msra.mxu1 %v2564_v15 }
 0x4b2   : > { %7238 = vmatprep.subr.msk.bf16.mxu1 %vm1709_vm2, %v2516_v36  ;;  %v2561_v42 = vsel %vm1709_vm2, %v2516_v36, 0 }
 0x4b9   : > { %6876 = vmatpush3.bf16.xpose.msra.mxu1 %v2561_v42 }
 0x4ba   : > { %7239 = vmatprep.subr.msk.bf16.mxu1 %vm1709_vm2, %v2515_v50 }
 0x4c1   : > { %6878 = vmatpush3.bf16.xpose.msra.mxu1 %v2558_v45 }
 0x4c2   : > { %7240 = vmatprep.subr.msk.bf16.mxu1 %vm1709_vm2, %v2514_v61 }
 0x4c9   : > { %6880 = vmatpush3.bf16.xpose.msra.mxu1 %v2555_v38 }
 0x4ca   : > { %7241 = vmatprep.subr.msk.bf16.mxu1 %vm1709_vm2, %v2513_v25 }
 0x4d1   : > { %6882 = vmatpush3.bf16.xpose.msra.mxu1 %v2552_v11 }
 0x4d2   : > { %7242 = vmatprep.subr.msk.bf16.mxu1 %vm1709_vm2, %v2512_v23 }
 0x4d9   : > { %6884 = vmatpush3.bf16.xpose.msra.mxu1 %v2549_v20 }
 0x4da   : > { %7243 = vmatprep.subr.msk.bf16.mxu1 %vm1709_vm2, %v2511_v2 }
 0x4e1   : > { %6886 = vmatpush3.bf16.xpose.msra.mxu1 %v2546_v47 }
 0x4e2   : > { %7244 = vmatprep.subr.msk.bf16.mxu1 %vm1709_vm2, %v2510_v29 }
 0x4e9   : > { %6888 = vmatpush3.bf16.xpose.msra.mxu1 %v2543_v14 }
 0x4ff   : > { %v1856_v48 = vpop.xlane.xlu0 %1855 }
 0x500   : > { %v1887_v19 = vsub.f32 %v8586_v9, %v1856_v48 }
 0x502   : > { %v1903_v57 = vmul.f32 1.442695, %v1887_v19 }
 0x503   : > { %v1858_v34 = vpop.xlane.xlu1 %1857  ;;  %v1860_v7 = vpop.xlane.xlu0 %1859 }
 0x504   : > { %7372 = vpow2.f32 %v1903_v57  ;;  %v1888_v5 = vsub.f32 %v8593_v35, %v1858_v34  ;;  %v1889_v59 = vsub.f32 %v8590_v33, %v1860_v7 }
 0x506   : > { %v1905_v10 = vmul.f32 1.442695, %v1888_v5  ;;  %v1907_v28 = vmul.f32 1.442695, %v1889_v59 }
 0x507   : > { %v1862_v2 = vpop.xlane.xlu1 %1861  ;;  %v1864_v24 = vpop.xlane.xlu0 %1863 }
 0x508   : > { %7374 = vpow2.f32 %v1905_v10  ;;  %v1890_v55 = vsub.f32 %v8598_v27, %v1862_v2  ;;  %v1891_v29 = vsub.f32 %v8601_v40, %v1864_v24 }
 0x509   : > { %7376 = vpow2.f32 %v1907_v28 }
 0x50a   : > { %v1909_v22 = vmul.f32 1.442695, %v1890_v55  ;;  %v1911_v9 = vmul.f32 1.442695, %v1891_v29 }
 0x50b   : > { %v1866_v41 = vpop.xlane.xlu1 %1865  ;;  %v1868_v15 = vpop.xlane.xlu0 %1867 }
 0x50c   : > { %7378 = vpow2.f32 %v1909_v22  ;;  %v1892_v36 = vsub.f32 %v8609_v12, %v1866_v41  ;;  %v1893_v35 = vsub.f32 %v8606_v31, %v1868_v15 }
 0x50d   : > { %7380 = vpow2.f32 %v1911_v9 }
 0x50e   : > { %v1913_v33 = vmul.f32 1.442695, %v1892_v36  ;;  %v1915_v50 = vmul.f32 1.442695, %v1893_v35 }
 0x50f   : > { %v1870_v42 = vpop.xlane.xlu1 %1869  ;;  %v1872_v45 = vpop.xlane.xlu0 %1871 }
 0x510   : > { %7382 = vpow2.f32 %v1913_v33  ;;  %v1894_v27 = vsub.f32 %v8614_v30, %v1870_v42  ;;  %v1895_v40 = vsub.f32 %v8617_v39, %v1872_v45 }
 0x511   : > { %v8674_v61 = vpop.eup %7372  ;;  %7384 = vpow2.f32 %v1915_v50  ;;  %v7286_v50 = vld [vmem:[%s10512_s2 + $0x18] sm:$0xff]  }
 0x512   : > { %v1917_v25 = vmul.f32 1.442695, %v1894_v27  ;;  %v1919_v38 = vmul.f32 1.442695, %v1895_v40  ;;  %1935 = vadd.xlane.f32.xlu0 %v8674_v61  ;;  %6813 = vmatprep.subr.bf16.mxu0 %v7286_v50 }
 0x513   : > { %v1874_v12 = vpop.xlane.xlu1 %1873  ;;  %v1876_v11 = vpop.xlane.xlu0 %1875 }
 0x514   : > { %7386 = vpow2.f32 %v1917_v25  ;;  %v1896_v31 = vsub.f32 %v8625_v21, %v1874_v12  ;;  %v1897_v23 = vsub.f32 %v8622_v3, %v1876_v11 }
 0x515   : > { %v8679_v20 = vpop.eup %7374  ;;  %7388 = vpow2.f32 %v1919_v38 }
 0x516   : > { %v8681_v30 = vpop.eup %7376  ;;  %v1921_v39 = vmul.f32 1.442695, %v1896_v31  ;;  %v1923_v47 = vmul.f32 1.442695, %v1897_v23  ;;  %1937 = vadd.xlane.f32.xlu1 %v8679_v20 }
 0x517   : > { %1939 = vadd.xlane.f32.xlu0 %v8681_v30  ;;  %v1878_v14 = vpop.xlane.xlu1 %1877  ;;  %v1880_v48 = vpop.xlane.xlu0 %1879 }
 0x518   : > { %7390 = vpow2.f32 %v1921_v39  ;;  %v1898_v19 = vsub.f32 %v8630_v13, %v1878_v14  ;;  %v1899_v21 = vsub.f32 %v8633_v16, %v1880_v48 }
 0x519   : > { %v8687_v57 = vpop.eup %7378  ;;  %7392 = vpow2.f32 %v1923_v47 }
 0x51a   : > { %v8689_v3 = vpop.eup %7380  ;;  %v1925_v34 = vmul.f32 1.442695, %v1898_v19  ;;  %v1927_v7 = vmul.f32 1.442695, %v1899_v21  ;;  %1941 = vadd.xlane.f32.xlu1 %v8687_v57 }
 0x51b   : > { %1943 = vadd.xlane.f32.xlu0 %v8689_v3  ;;  %v1882_v5 = vpop.xlane.xlu1 %1881  ;;  %v1884_v59 = vpop.xlane.xlu0 %1883 }
 0x51c   : > { %7394 = vpow2.f32 %v1925_v34  ;;  %v1900_v10 = vsub.f32 %v8641_v26, %v1882_v5  ;;  %v1901_v13 = vsub.f32 %v8638_v4, %v1884_v59 }
 0x51d   : > { %v8695_v28 = vpop.eup %7382  ;;  %7396 = vpow2.f32 %v1927_v7 }
 0x51e   : > { %v8697_v16 = vpop.eup %7384  ;;  %v1929_v2 = vmul.f32 1.442695, %v1900_v10  ;;  %v1931_v24 = vmul.f32 1.442695, %v1901_v13  ;;  %1945 = vadd.xlane.f32.xlu1 %v8695_v28 }
 0x51f   : > { %1947 = vadd.xlane.f32.xlu0 %v8697_v16  ;;  %v1886_v55 = vpop.xlane.xlu1 %1885 }
 0x520   : > { %7398 = vpow2.f32 %v1929_v2  ;;  %v1902_v29 = vsub.f32 %v8646_v52, %v1886_v55  ;;  %v7287_v2 = vld [vmem:[%s10512_s2 + $0x10] sm:$0xff]  }
 0x521   : > { %v8702_v22 = vpop.eup %7386  ;;  %7400 = vpow2.f32 %v1931_v24 }
 0x522   : > { %v8704_v26 = vpop.eup %7388  ;;  %v1933_v4 = vmul.f32 1.442695, %v1902_v29  ;;  %1949 = vadd.xlane.f32.xlu1 %v8702_v22 }
 0x523   : > { %1951 = vadd.xlane.f32.xlu0 %v8704_v26 }
 0x524   : > { %7402 = vpow2.f32 %v1933_v4 }
 0x525   : > { %v8708_v9 = vpop.eup %7390 }
 0x526   : > { %v8710_v41 = vpop.eup %7392  ;;  %1953 = vadd.xlane.f32.xlu1 %v8708_v9 }
 0x527   : > { %1955 = vadd.xlane.f32.xlu0 %v8710_v41 }
 0x529   : > { %v8714_v52 = vpop.eup %7394 }
 0x52a   : > { %v8716_v15 = vpop.eup %7396  ;;  %1957 = vadd.xlane.f32.xlu1 %v8714_v52 }
 0x52b   : > { %1959 = vadd.xlane.f32.xlu0 %v8716_v15 }
 0x52d   : > { %v8720_v36 = vpop.eup %7398 }
 0x52e   : > { %v8722_v35 = vpop.eup %7400  ;;  %1961 = vadd.xlane.f32.xlu1 %v8720_v36 }
 0x52f   : > { %1963 = vadd.xlane.f32.xlu0 %v8722_v35 }
 0x531   : > { %v8726_v33 = vpop.eup %7402 }
 0x532   : > { %1965 = vadd.xlane.f32.xlu1 %v8726_v33 }
 0x59b   : > { %v1936_v42 = vpop.xlane.xlu0 %1935 }
 0x59c   : > { %7404 = vrcp.f32 %v1936_v42 }
 0x59f   : > { %v1938_v45 = vpop.xlane.xlu1 %1937 }
 0x5a0   : > { %7406 = vrcp.f32 %v1938_v45  ;;  %v1940_v27 = vpop.xlane.xlu0 %1939  ;;  %v7288_v45 = vld [vmem:[%s10514_s4 + $0x18] sm:$0xff]  }
 0x5a1   : > { %7408 = vrcp.f32 %v1940_v27 }
 0x5a3   : > { %v1942_v40 = vpop.xlane.xlu1 %1941 }
 0x5a4   : > { %7410 = vrcp.f32 %v1942_v40  ;;  %v1944_v25 = vpop.xlane.xlu0 %1943 }
 0x5a5   : > { %7412 = vrcp.f32 %v1944_v25 }
 0x5a7   : > { %v1946_v38 = vpop.xlane.xlu1 %1945 }
 0x5a8   : > { %7414 = vrcp.f32 %v1946_v38  ;;  %v1948_v12 = vpop.xlane.xlu0 %1947 }
 0x5a9   : > { %v7405_v11 = vpop.eup %7404  ;;  %7416 = vrcp.f32 %v1948_v12 }
 0x5aa   : > { %v1999_v31 = vmul.f32 %v7405_v11, %v8674_v61 }
 0x5ab   : > { %v1950_v23 = vpop.xlane.xlu1 %1949 }
 0x5ac   : > { %7418 = vrcp.f32 %v1950_v23  ;;  %v1952_v39 = vpop.xlane.xlu0 %1951  ;;  %2015 = vst [vmem:[%s8736_s24] sm:$0xff] %v1999_v31 }
 0x5ad   : > { %v7407_v47 = vpop.eup %7406  ;;  %7420 = vrcp.f32 %v1952_v39 }
 0x5ae   : > { %v7409_v14 = vpop.eup %7408  ;;  %v2000_v48 = vmul.f32 %v7407_v47, %v8679_v20 }
 0x5af   : > { %v1954_v19 = vpop.xlane.xlu1 %1953  ;;  %v2001_v21 = vmul.f32 %v7409_v14, %v8681_v30 }
 0x5b0   : > { %7422 = vrcp.f32 %v1954_v19  ;;  %v1956_v34 = vpop.xlane.xlu0 %1955  ;;  %2016 = vst [vmem:[%s8736_s24 + $0x8] sm:$0xff] %v2000_v48  ;;  %v2031_v7 = vpack.c.bf16 %v2000_v48, %v1999_v31 }
 0x5b1   : > { %v7411_v61 = vpop.eup %7410  ;;  %7424 = vrcp.f32 %v1956_v34  ;;  %2017 = vst [vmem:[%s8736_s24 + $0x10] sm:$0xff] %v2001_v21 }
 0x5b2   : > { %v7413_v5 = vpop.eup %7412  ;;  %6797 = vmatprep.mubr.bf16.mxu0 %v2031_v7  ;;  %v2002_v59 = vmul.f32 %v7411_v61, %v8687_v57 }
 0x5b3   : > { %v1958_v10 = vpop.xlane.xlu1 %1957  ;;  %v2003_v13 = vmul.f32 %v7413_v5, %v8689_v3 }
 0x5b4   : > { %7426 = vrcp.f32 %v1958_v10  ;;  %v1960_v20 = vpop.xlane.xlu0 %1959  ;;  %2018 = vst [vmem:[%s8736_s24 + $0x18] sm:$0xff] %v2002_v59  ;;  %v2032_v30 = vpack.c.bf16 %v2002_v59, %v2001_v21 }
 0x5b5   : > { %v7415_v24 = vpop.eup %7414  ;;  %7428 = vrcp.f32 %v1960_v20  ;;  %2019 = vst [vmem:[%s8736_s24 + $0x20] sm:$0xff] %v2003_v13 }
 0x5b6   : > { %v7417_v55 = vpop.eup %7416  ;;  %6798 = vmatmul.mubr.bf16.vlgmr.msra.gmra.mxu0 %v2032_v30  ;;  %v2004_v57 = vmul.f32 %v7415_v24, %v8695_v28 }
 0x5b7   : > { %6814 = vmatpush3.bf16.msra.mxu0 %v7286_v50  ;;  %v1962_v29 = vpop.xlane.xlu1 %1961  ;;  %v2005_v3 = vmul.f32 %v7417_v55, %v8697_v16 }
 0x5b8   : > { %7430 = vrcp.f32 %v1962_v29  ;;  %v1964_v4 = vpop.xlane.xlu0 %1963  ;;  %2020 = vst [vmem:[%s8736_s24 + $0x28] sm:$0xff] %v2004_v57  ;;  %v2033_v42 = vpack.c.bf16 %v2004_v57, %v2003_v13  ;;  %6815 = vmatprep.subr.bf16.mxu0 %v7287_v2 }
 0x5b9   : > { %v7419_v27 = vpop.eup %7418  ;;  %7432 = vrcp.f32 %v1964_v4  ;;  %2021 = vst [vmem:[%s8736_s24 + $0x30] sm:$0xff] %v2005_v3 }
 0x5ba   : > { %v7421_v40 = vpop.eup %7420  ;;  %6801 = vmatprep.mubr.bf16.mxu0 %v2033_v42  ;;  %v2006_v28 = vmul.f32 %v7419_v27, %v8702_v22 }
 0x5bb   : > { %v1966_v16 = vpop.xlane.xlu1 %1965  ;;  %v2007_v50 = vmul.f32 %v7421_v40, %v8704_v26  ;;  %6816 = vmatpush3.bf16.msra.mxu0 %v7287_v2 }
 0x5bc   : > { %7434 = vrcp.f32 %v1966_v16  ;;  %2022 = vst [vmem:[%s8736_s24 + $0x38] sm:$0xff] %v2006_v28  ;;  %v2034_v25 = vpack.c.bf16 %v2006_v28, %v2005_v3  ;;  %6853 = vmatprep.subr.bf16.mxu0 %v7288_v45 }
 0x5bd   : > { %v7423_v38 = vpop.eup %7422  ;;  %2023 = vst [vmem:[%s8736_s24 + $0x40] sm:$0xff] %v2007_v50 }
 0x5be   : > { %v7425_v12 = vpop.eup %7424  ;;  %6802 = vmatmul.mubr.bf16.gmra.mxu0 %v2034_v25  ;;  %v2008_v11 = vmul.f32 %v7423_v38, %v8708_v9 }
 0x5bf   : > { %v2009_v31 = vmul.f32 %v7425_v12, %v8710_v41 }
 0x5c0   : > { %2024 = vst [vmem:[%s8736_s24 + $0x48] sm:$0xff] %v2008_v11  ;;  %v2035_v22 = vpack.c.bf16 %v2008_v11, %v2007_v50 }
 0x5c1   : > { %v7427_v23 = vpop.eup %7426  ;;  %2025 = vst [vmem:[%s8736_s24 + $0x50] sm:$0xff] %v2009_v31 }
 0x5c2   : > { %v7429_v26 = vpop.eup %7428  ;;  %6805 = vmatprep.mubr.bf16.mxu0 %v2035_v22  ;;  %v2010_v39 = vmul.f32 %v7427_v23, %v8714_v52  ;;  %v7291_v22 = vld [vmem:[%s10513_s3 + $0x20] sm:$0xff]  }
 0x5c3   : > { %v2011_v47 = vmul.f32 %v7429_v26, %v8716_v15  ;;  %v7289_v15 = vld [vmem:[%s10514_s4 + $0x10] sm:$0xff]  }
 0x5c4   : > { %2026 = vst [vmem:[%s8736_s24 + $0x58] sm:$0xff] %v2010_v39  ;;  %v2036_v14 = vpack.c.bf16 %v2010_v39, %v2009_v31 }
 0x5c5   : > { %v7431_v48 = vpop.eup %7430  ;;  %2027 = vst [vmem:[%s8736_s24 + $0x60] sm:$0xff] %v2011_v47 }
 0x5c6   : > { %v7433_v9 = vpop.eup %7432  ;;  %6806 = vmatmul.mubr.bf16.gmra.mxu0 %v2036_v14  ;;  %v2012_v41 = vmul.f32 %v7431_v48, %v8720_v36  ;;  %v7290_v36 = vld [vmem:[%s10513_s3 + $0x28] sm:$0xff]  }
 0x5c7   : > { %v2013_v19 = vmul.f32 %v7433_v9, %v8722_v35  ;;  %6957 = vmatprep.subr.bf16.mxu1 %v7290_v36 }
 0x5c8   : > { %2028 = vst [vmem:[%s8736_s24 + $0x68] sm:$0xff] %v2012_v41  ;;  %v2037_v21 = vpack.c.bf16 %v2012_v41, %v2011_v47 }
 0x5c9   : > { %v7435_v34 = vpop.eup %7434  ;;  %2029 = vst [vmem:[%s8736_s24 + $0x70] sm:$0xff] %v2013_v19 }
 0x5ca   : > { %6809 = vmatprep.mubr.bf16.mxu0 %v2037_v21  ;;  %v2014_v52 = vmul.f32 %v7435_v34, %v8726_v33 }
 0x5cc   : > { %2030 = vst [vmem:[%s8736_s24 + $0x78] sm:$0xff] %v2014_v52  ;;  %v2038_v7 = vpack.c.bf16 %v2014_v52, %v2013_v19 }
 0x5ce   : > { %6810 = vmatmul.mubr.bf16.gmra.mxu0 %v2038_v7 }
 0x5cf   : > { %6817 = vmatprep.mubr.msk.bf16.mxu0 %vm561_vm0, %v8291_v18 }
 0x5d6   : > { %6818 = vmatmul.mubr.msk.bf16.vlgmr.msra.gmra.mxu0 %vm561_vm0, %v8295_v1 }
 0x5d7   : > { %6821 = vmatprep.mubr.msk.bf16.mxu0 %vm561_vm0, %v8347_v62  ;;  %6854 = vmatpush3.bf16.msra.mxu0 %v7288_v45 }
 0x5d8   : > { %6855 = vmatprep.subr.bf16.mxu0 %v7289_v15 }
 0x5db   : > { %6856 = vmatpush3.bf16.msra.mxu0 %v7289_v15 }
 0x5de   : > { %6822 = vmatmul.mubr.msk.bf16.gmra.mxu0 %vm561_vm0, %v8353_v6 }
 0x5df   : > { %6825 = vmatprep.mubr.msk.bf16.mxu0 %vm561_vm0, %v8393_v60 }
 0x5e6   : > { %6826 = vmatmul.mubr.msk.bf16.gmra.mxu0 %vm561_vm0, %v8397_v17 }
 0x5e7   : > { %6829 = vmatprep.mubr.msk.bf16.mxu0 %vm561_vm0, %v8426_v49 }
 0x5ee   : > { %6830 = vmatmul.mubr.msk.bf16.gmra.mxu0 %vm561_vm0, %v8441_v58 }
 0x5ef   : > { %6857 = vmatprep.mubr.msk.bf16.mxu0 %vm561_vm0, %v8291_v18 }
 0x5f6   : > { %6858 = vmatmul.mubr.msk.bf16.vlgmr.msra.gmra.mxu0 %vm561_vm0, %v8295_v1 }
 0x5f7   : > { %6861 = vmatprep.mubr.msk.bf16.mxu0 %vm561_vm0, %v8347_v62 }
 0x5fe   : > { %6862 = vmatmul.mubr.msk.bf16.gmra.mxu0 %vm561_vm0, %v8353_v6 }
 0x5ff   : > { %6865 = vmatprep.mubr.msk.bf16.mxu0 %vm561_vm0, %v8393_v60 }
 0x606   : > { %6866 = vmatmul.mubr.msk.bf16.gmra.mxu0 %vm561_vm0, %v8397_v17 }
 0x607   : > { %6869 = vmatprep.mubr.msk.bf16.mxu0 %vm561_vm0, %v8426_v49 }
 0x60e   : > { %6870 = vmatmul.mubr.msk.bf16.gmra.mxu0 %vm561_vm0, %v8441_v58 }
 0x676   : > { %v8814_v35 = vpop.f32.mrf.mxu0 }
 0x677   : > { %10561 = vst [vmem:[#allocation18_spill] sm:$0xff] %v8814_v35 }
 0x678   : > { %v8816_v33 = vpop.f32.mrf.mxu0 }
 0x679   : > { %10562 = vst [vmem:[#allocation19_spill] sm:$0xff] %v8816_v33 }
 0x67a   : > { %v8818_v61 = vpop.f32.mrf.mxu0 }
 0x67b   : > { %10563 = vst [vmem:[#allocation20_spill] sm:$0xff] %v8818_v61 }
 0x67c   : > { %v8820_v5 = vpop.f32.mrf.mxu0 }
 0x67d   : > { %10564 = vst [vmem:[#allocation21_spill] sm:$0xff] %v8820_v5 }
 0x67e   : > { %v8822_v59 = vpop.f32.mrf.mxu0 }
 0x67f   : > { %10565 = vst [vmem:[#allocation22_spill] sm:$0xff] %v8822_v59 }
 0x680   : > { %v8824_v10 = vpop.f32.mrf.mxu0 }
 0x681   : > { %10566 = vst [vmem:[#allocation23_spill] sm:$0xff] %v8824_v10 }
 0x682   : > { %v8826_v13 = vpop.f32.mrf.mxu0 }
 0x683   : > { %10567 = vst [vmem:[#allocation24_spill] sm:$0xff] %v8826_v13 }
 0x684   : > { %v8828_v20 = vpop.f32.mrf.mxu0 }
 0x685   : > { %10568 = vst [vmem:[#allocation25_spill] sm:$0xff] %v8828_v20 }
 0x686   : > { %v8830_v30 = vpop.f32.mrf.mxu0 }
 0x687   : > { %10569 = vst [vmem:[#allocation26_spill] sm:$0xff] %v8830_v30 }
 0x688   : > { %v8832_v2 = vpop.f32.mrf.mxu0 }
 0x689   : > { %10570 = vst [vmem:[#allocation27_spill] sm:$0xff] %v8832_v2 }
 0x68a   : > { %v8834_v24 = vpop.f32.mrf.mxu0 }
 0x68b   : > { %10571 = vst [vmem:[#allocation28_spill] sm:$0xff] %v8834_v24 }
 0x68c   : > { %v8836_v55 = vpop.f32.mrf.mxu0 }
 0x68d   : > { %10572 = vst [vmem:[#allocation29_spill] sm:$0xff] %v8836_v55 }
 0x68e   : > { %v8838_v57 = vpop.f32.mrf.mxu0 }
 0x68f   : > { %10573 = vst [vmem:[#allocation30_spill] sm:$0xff] %v8838_v57 }
 0x690   : > { %v8840_v29 = vpop.f32.mrf.mxu0 }
 0x691   : > { %10574 = vst [vmem:[#allocation31_spill] sm:$0xff] %v8840_v29 }
 0x692   : > { %v8842_v3 = vpop.f32.mrf.mxu0 }
 0x693   : > { %10575 = vst [vmem:[#allocation32_spill] sm:$0xff] %v8842_v3 }
 0x694   : > { %v8844_v4 = vpop.f32.mrf.mxu0 }
 0x695   : > { %10576 = vst [vmem:[#allocation33_spill] sm:$0xff] %v8844_v4 }
 0x696   : > { %v6819_v42 = vpop.f32.mrf.mxu0 }
 0x697   : > { %v2260_v25 = vmul.f32 0.35355338, %v6819_v42 }
 0x698   : > { %v2195_v45 = vpop.f32.mrf.mxu0 }
 0x699   : > { %v2258_v16 = vmul.f32 0.35355338, %v2195_v45 }
 0x69a   : > { %v6820_v27 = vpop.f32.mrf.mxu0 }
 0x69b   : > { %v2261_v40 = vmul.f32 0.35355338, %v6820_v27 }
 0x69c   : > { %v2198_v28 = vpop.f32.mrf.mxu0 }
 0x69d   : > { %v2259_v50 = vmul.f32 0.35355338, %v2198_v28  ;;  %v2503_v11 = vpack.c.bf16 %v2261_v40, %v2260_v25 }
 0x69e   : > { %v6823_v38 = vpop.f32.mrf.mxu0 }
 0x69f   : > { %v2502_v12 = vpack.c.bf16 %v2259_v50, %v2258_v16  ;;  %v2264_v48 = vmul.f32 0.35355338, %v6823_v38 }
 0x6a0   : > { %v2211_v31 = vpop.f32.mrf.mxu0 }
 0x6a1   : > { %6889 = vmatprep.mubr.msk.bf16.mxu1 %vm1709_vm2, %v2502_v12  ;;  %v2262_v47 = vmul.f32 0.35355338, %v2211_v31 }
 0x6a2   : > { %v6824_v23 = vpop.f32.mrf.mxu0  ;;  %6890 = vmatmul.mubr.msk.bf16.vlgmr.msra.gmra.mxu1 %vm1709_vm2, %v2503_v11 }
 0x6a3   : > { %6958 = vmatpush3.bf16.msra.mxu1 %v7290_v36  ;;  %v2265_v26 = vmul.f32 0.35355338, %v6824_v23 }
 0x6a4   : > { %v2214_v39 = vpop.f32.mrf.mxu0  ;;  %6959 = vmatprep.subr.bf16.mxu1 %v7291_v22 }
 0x6a5   : > { %v2263_v14 = vmul.f32 0.35355338, %v2214_v39  ;;  %v2505_v19 = vpack.c.bf16 %v2265_v26, %v2264_v48 }
 0x6a6   : > { %v6827_v9 = vpop.f32.mrf.mxu0 }
 0x6a7   : > { %v2504_v41 = vpack.c.bf16 %v2263_v14, %v2262_v47  ;;  %6960 = vmatpush3.bf16.msra.mxu1 %v7291_v22  ;;  %v2268_v42 = vmul.f32 0.35355338, %v6827_v9 }
 0x6a8   : > { %v2227_v21 = vpop.f32.mrf.mxu0 }
 0x6a9   : > { %6893 = vmatprep.mubr.msk.bf16.mxu1 %vm1709_vm2, %v2504_v41  ;;  %v2266_v15 = vmul.f32 0.35355338, %v2227_v21 }
 0x6aa   : > { %v6828_v34 = vpop.f32.mrf.mxu0  ;;  %6894 = vmatmul.mubr.msk.bf16.gmra.mxu1 %vm1709_vm2, %v2505_v19 }
 0x6ab   : > { %v2269_v52 = vmul.f32 0.35355338, %v6828_v34 }
 0x6ac   : > { %v2230_v7 = vpop.f32.mrf.mxu0 }
 0x6ad   : > { %v2267_v36 = vmul.f32 0.35355338, %v2230_v7  ;;  %v2507_v40 = vpack.c.bf16 %v2269_v52, %v2268_v42 }
 0x6ae   : > { %v6831_v45 = vpop.f32.mrf.mxu0 }
 0x6af   : > { %v2506_v27 = vpack.c.bf16 %v2267_v36, %v2266_v15  ;;  %v2272_v11 = vmul.f32 0.35355338, %v6831_v45 }
 0x6b0   : > { %v2243_v28 = vpop.f32.mrf.mxu0 }
 0x6b1   : > { %6897 = vmatprep.mubr.msk.bf16.mxu1 %vm1709_vm2, %v2506_v27  ;;  %v2270_v38 = vmul.f32 0.35355338, %v2243_v28 }
 0x6b2   : > { %v6832_v16 = vpop.f32.mrf.mxu0  ;;  %6898 = vmatmul.mubr.msk.bf16.gmra.mxu1 %vm1709_vm2, %v2507_v40 }
 0x6b3   : > { %v2273_v50 = vmul.f32 0.35355338, %v6832_v16 }
 0x6b4   : > { %v2246_v25 = vpop.f32.mrf.mxu0 }
 0x6b5   : > { %v2271_v12 = vmul.f32 0.35355338, %v2246_v25  ;;  %v2509_v23 = vpack.c.bf16 %v2273_v50, %v2272_v11 }
 0x6b6   : > { %v6859_v31 = vpop.f32.mrf.mxu0 }
 0x6b7   : > { %v2508_v22 = vpack.c.bf16 %v2271_v12, %v2270_v38 }
 0x6b8   : > { %v2439_v26 = vpop.f32.mrf.mxu0 }
 0x6b9   : > { %6901 = vmatprep.mubr.msk.bf16.mxu1 %vm1709_vm2, %v2508_v22 }
 0x6ba   : > { %v6860_v39 = vpop.f32.mrf.mxu0  ;;  %6902 = vmatmul.mubr.msk.bf16.gmra.mxu1 %vm1709_vm2, %v2509_v23 }
 0x6bb   : > { %6961 = vmatprep.mubr.msk.bf16.mxu1 %vm561_vm0, %v8291_v18  ;;  %v2849_v25 = vpack.c.bf16 %v6860_v39, %v6859_v31 }
 0x6bc   : > { %v2442_v47 = vpop.f32.mrf.mxu0 }
 0x6bd   : > { %v2848_v38 = vpack.c.bf16 %v2442_v47, %v2439_v26 }
 0x6be   : > { %v6863_v14 = vpop.f32.mrf.mxu0 }
 0x6c0   : > { %v2455_v48 = vpop.f32.mrf.mxu0 }
 0x6c2   : > { %v6864_v9 = vpop.f32.mrf.mxu0  ;;  %6962 = vmatmul.mubr.msk.bf16.vlgmr.msra.gmra.mxu1 %vm561_vm0, %v8295_v1 }
 0x6c3   : > { %6965 = vmatprep.mubr.msk.bf16.mxu1 %vm561_vm0, %v8347_v62  ;;  %v2851_v16 = vpack.c.bf16 %v6864_v9, %v6863_v14 }
 0x6c4   : > { %v2458_v41 = vpop.f32.mrf.mxu0 }
 0x6c5   : > { %v2850_v50 = vpack.c.bf16 %v2458_v41, %v2455_v48 }
 0x6c6   : > { %v6867_v19 = vpop.f32.mrf.mxu0 }
 0x6c8   : > { %v2471_v21 = vpop.f32.mrf.mxu0 }
 0x6ca   : > { %v6868_v34 = vpop.f32.mrf.mxu0  ;;  %6966 = vmatmul.mubr.msk.bf16.gmra.mxu1 %vm561_vm0, %v8353_v6 }
 0x6cb   : > { %6969 = vmatprep.mubr.msk.bf16.mxu1 %vm561_vm0, %v8393_v60  ;;  %v2853_v40 = vpack.c.bf16 %v6868_v34, %v6867_v19 }
 0x6cc   : > { %v2474_v52 = vpop.f32.mrf.mxu0 }
 0x6cd   : > { %v2852_v28 = vpack.c.bf16 %v2474_v52, %v2471_v21 }
 0x6ce   : > { %v6871_v7 = vpop.f32.mrf.mxu0 }
 0x6d0   : > { %v2487_v15 = vpop.f32.mrf.mxu0 }
 0x6d2   : > { %v6872_v36 = vpop.f32.mrf.mxu0  ;;  %6970 = vmatmul.mubr.msk.bf16.gmra.mxu1 %vm561_vm0, %v8397_v17 }
 0x6d3   : > { %v2855_v42 = vpack.c.bf16 %v6872_v36, %v6871_v7  ;;  %6973 = vmatprep.mubr.msk.bf16.mxu1 %vm561_vm0, %v8426_v49 }
 0x6d4   : > { %v2490_v45 = vpop.f32.mrf.mxu0 }
 0x6d5   : > { %v2854_v27 = vpack.c.bf16 %v2490_v45, %v2487_v15  ;;  %6905 = vmatprep.subr.bf16.mxu0 %v2855_v42 }
 0x6d6   : > { %6906 = vmatpush3.bf16.msra.mxu0 %v2855_v42 }
 0x6d7   : > { %6907 = vmatprep.subr.bf16.mxu0 %v2854_v27 }
 0x6da   : > { %6908 = vmatpush3.bf16.msra.mxu0 %v2854_v27  ;;  %6974 = vmatmul.mubr.msk.bf16.gmra.mxu1 %vm561_vm0, %v8441_v58 }
 0x6db   : > { %6909 = vmatprep.subr.bf16.mxu0 %v2853_v40 }
 0x6de   : > { %6910 = vmatpush3.bf16.msra.mxu0 %v2853_v40 }
 0x6df   : > { %6911 = vmatprep.subr.bf16.mxu0 %v2852_v28 }
 0x6e2   : > { %6912 = vmatpush3.bf16.msra.mxu0 %v2852_v28 }
 0x6e3   : > { %6913 = vmatprep.subr.bf16.mxu0 %v2851_v16 }
 0x6e6   : > { %6914 = vmatpush3.bf16.msra.mxu0 %v2851_v16 }
 0x6e7   : > { %6915 = vmatprep.subr.bf16.mxu0 %v2850_v50 }
 0x6ea   : > { %6916 = vmatpush3.bf16.msra.mxu0 %v2850_v50 }
 0x6eb   : > { %6917 = vmatprep.subr.bf16.mxu0 %v2849_v25 }
 0x6ee   : > { %6918 = vmatpush3.bf16.msra.mxu0 %v2849_v25 }
 0x6ef   : > { %6919 = vmatprep.subr.bf16.mxu0 %v2848_v38 }
 0x6f2   : > { %6920 = vmatpush3.bf16.msra.mxu0 %v2848_v38 }
 0x762   : > { %v6891_v12 = vpop.f32.mrf.mxu1 }
 0x763   : > { %v8878_v48 = vadd.f32 %v6891_v12, %v8583_v63 }
 0x764   : > { %v2600_v11 = vpop.f32.mrf.mxu1 }
 0x765   : > { %v8874_v22 = vadd.f32 %v8583_v63, %v2600_v11 }
 0x766   : > { %v6892_v23 = vpop.f32.mrf.mxu1 }
 0x767   : > { %2663 = vmax.xlane.f32.xlu0 %v8874_v22  ;;  %v8886_v47 = vadd.f32 %v6892_v23, %v8583_v63 }
 0x768   : > { %v2603_v14 = vpop.f32.mrf.mxu1 }
 0x769   : > { %v8881_v31 = vadd.f32 %v8583_v63, %v2603_v14 }
 0x76a   : > { %v6895_v39 = vpop.f32.mrf.mxu1 }
 0x76b   : > { %2665 = vmax.xlane.f32.xlu1 %v8881_v31  ;;  %2667 = vmax.xlane.f32.xlu0 %v8878_v48  ;;  %v8894_v21 = vadd.f32 %v6895_v39, %v8583_v63 }
 0x76c   : > { %v2616_v26 = vpop.f32.mrf.mxu1 }
 0x76d   : > { %v8889_v9 = vadd.f32 %v8583_v63, %v2616_v26 }
 0x76e   : > { %v6896_v41 = vpop.f32.mrf.mxu1 }
 0x76f   : > { %2669 = vmax.xlane.f32.xlu1 %v8886_v47  ;;  %2671 = vmax.xlane.f32.xlu0 %v8889_v9  ;;  %v8902_v15 = vadd.f32 %v6896_v41, %v8583_v63 }
 0x770   : > { %v2619_v19 = vpop.f32.mrf.mxu1 }
 0x771   : > { %v8897_v34 = vadd.f32 %v8583_v63, %v2619_v19 }
 0x772   : > { %v6899_v52 = vpop.f32.mrf.mxu1 }
 0x773   : > { %2673 = vmax.xlane.f32.xlu1 %v8897_v34  ;;  %2675 = vmax.xlane.f32.xlu0 %v8894_v21  ;;  %v8910_v27 = vadd.f32 %v6899_v52, %v8583_v63 }
 0x774   : > { %v2632_v7 = vpop.f32.mrf.mxu1 }
 0x775   : > { %v8905_v36 = vadd.f32 %v8583_v63, %v2632_v7 }
 0x776   : > { %v6900_v42 = vpop.f32.mrf.mxu1 }
 0x777   : > { %2677 = vmax.xlane.f32.xlu1 %v8902_v15  ;;  %2679 = vmax.xlane.f32.xlu0 %v8905_v36  ;;  %v8918_v50 = vadd.f32 %v6900_v42, %v8583_v63 }
 0x778   : > { %v2635_v45 = vpop.f32.mrf.mxu1 }
 0x779   : > { %v8913_v40 = vadd.f32 %v8583_v63, %v2635_v45 }
 0x77a   : > { %v6903_v28 = vpop.f32.mrf.mxu1 }
 0x77b   : > { %2681 = vmax.xlane.f32.xlu1 %v8913_v40  ;;  %2683 = vmax.xlane.f32.xlu0 %v8910_v27  ;;  %v8926_v11 = vadd.f32 %v6903_v28, %v8583_v63 }
 0x77c   : > { %v2648_v16 = vpop.f32.mrf.mxu1 }
 0x77d   : > { %v8921_v25 = vadd.f32 %v8583_v63, %v2648_v16 }
 0x77e   : > { %v6904_v38 = vpop.f32.mrf.mxu1 }
 0x77f   : > { %2685 = vmax.xlane.f32.xlu1 %v8918_v50  ;;  %2687 = vmax.xlane.f32.xlu0 %v8921_v25  ;;  %v8934_v26 = vadd.f32 %v6904_v38, %v8583_v63 }
 0x780   : > { %v2651_v12 = vpop.f32.mrf.mxu1 }
 0x781   : > { %v8929_v23 = vadd.f32 %v8583_v63, %v2651_v12 }
 0x782   : > { %v6963_v14 = vpop.f32.mrf.mxu1 }
 0x783   : > { %2689 = vmax.xlane.f32.xlu1 %v8929_v23  ;;  %2691 = vmax.xlane.f32.xlu0 %v8926_v11 }
 0x784   : > { %v3134_v39 = vpop.f32.mrf.mxu1 }
 0x786   : > { %v6964_v41 = vpop.f32.mrf.mxu1 }
 0x787   : > { %v3320_v19 = vpack.c.bf16 %v6964_v41, %v6963_v14  ;;  %2693 = vmax.xlane.f32.xlu1 %v8934_v26 }
 0x788   : > { %v3137_v52 = vpop.f32.mrf.mxu1 }
 0x789   : > { %v3319_v7 = vpack.c.bf16 %v3137_v52, %v3134_v39 }
 0x78a   : > { %v6967_v42 = vpop.f32.mrf.mxu1 }
 0x78c   : > { %v3150_v45 = vpop.f32.mrf.mxu1 }
 0x78e   : > { %v6968_v28 = vpop.f32.mrf.mxu1 }
 0x790   : > { %v3153_v16 = vpop.f32.mrf.mxu1 }
 0x792   : > { %v6971_v12 = vpop.f32.mrf.mxu1 }
 0x794   : > { %v3166_v4 = vpop.f32.mrf.mxu1 }
 0x796   : > { %v6972_v29 = vpop.f32.mrf.mxu1 }
 0x797   : > { %v3324_v39 = vpack.c.bf16 %v6972_v29, %v6971_v12 }
 0x798   : > { %v3169_v3 = vpop.f32.mrf.mxu1 }
 0x799   : > { %v3367_v52 = vsel %vm1709_vm2, %v3324_v39, 0  ;;  %v3323_v55 = vpack.c.bf16 %v3169_v3, %v3166_v4  ;;  %v3355_v3 = vsel %vm1709_vm2, %v3320_v19, 0 }
 0x79a   : > { %v6975_v57 = vpop.f32.mrf.mxu1 }
 0x79c   : > { %v3182_v43 = vpop.f32.mrf.mxu1 }
 0x79e   : > { %v6976_v0 = vpop.f32.mrf.mxu1 }
 0x79f   : > { %v3326_v37 = vpack.c.bf16 %v6976_v0, %v6975_v57  ;;  %v3322_v0 = vpack.c.bf16 %v6968_v28, %v6967_v42  ;;  %v3321_v57 = vpack.c.bf16 %v3153_v16, %v3150_v45 }
 0x7a0   : > { %v3185_v63 = vpop.f32.mrf.mxu1 }
 0x7a1   : > { %v3373_v38 = vsel %vm1709_vm2, %v3326_v37, 0  ;;  %v3325_v14 = vpack.c.bf16 %v3185_v63, %v3182_v43  ;;  %7245 = vmatprep.subr.msk.bf16.mxu1 %vm1709_vm2, %v3326_v37  ;;  %v3364_v43 = vsel %vm1709_vm2, %v3323_v55, 0  ;;  %v3361_v37 = vsel %vm1709_vm2, %v3322_v0, 0 }
 0x7a2   : > { %6998 = vmatpush3.bf16.xpose.msra.mxu1 %v3373_v38  ;;  %v3358_v29 = vsel %vm1709_vm2, %v3321_v57, 0 }
 0x7a3   : > { %7246 = vmatprep.subr.msk.bf16.mxu1 %vm1709_vm2, %v3325_v14  ;;  %v3370_v41 = vsel %vm1709_vm2, %v3325_v14, 0 }
 0x7aa   : > { %7000 = vmatpush3.bf16.xpose.msra.mxu1 %v3370_v41 }
 0x7ab   : > { %7247 = vmatprep.subr.msk.bf16.mxu1 %vm1709_vm2, %v3324_v39 }
 0x7b2   : > { %7002 = vmatpush3.bf16.xpose.msra.mxu1 %v3367_v52 }
 0x7b3   : > { %7248 = vmatprep.subr.msk.bf16.mxu1 %vm1709_vm2, %v3323_v55  ;;  %v3352_v55 = vsel %vm1709_vm2, %v3319_v7, 0 }
 0x7ba   : > { %7004 = vmatpush3.bf16.xpose.msra.mxu1 %v3364_v43 }
 0x7bb   : > { %7249 = vmatprep.subr.msk.bf16.mxu1 %vm1709_vm2, %v3322_v0 }
 0x7c2   : > { %7006 = vmatpush3.bf16.xpose.msra.mxu1 %v3361_v37 }
 0x7c3   : > { %7250 = vmatprep.subr.msk.bf16.mxu1 %vm1709_vm2, %v3321_v57 }
 0x7ca   : > { %7008 = vmatpush3.bf16.xpose.msra.mxu1 %v3358_v29 }
 0x7cb   : > { %7251 = vmatprep.subr.msk.bf16.mxu1 %vm1709_vm2, %v3320_v19 }
 0x7d2   : > { %7010 = vmatpush3.bf16.xpose.msra.mxu1 %v3355_v3 }
 0x7d3   : > { %7252 = vmatprep.subr.msk.bf16.mxu1 %vm1709_vm2, %v3319_v7 }
 0x7da   : > { %7012 = vmatpush3.bf16.xpose.msra.mxu1 %v3352_v55 }
 0x7f0   : > { %v2664_v4 = vpop.xlane.xlu0 %2663 }
 0x7f1   : > { %v2695_v42 = vsub.f32 %v8874_v22, %v2664_v4 }
 0x7f3   : > { %v2711_v45 = vmul.f32 1.442695, %v2695_v42 }
 0x7f4   : > { %v2666_v28 = vpop.xlane.xlu1 %2665  ;;  %v2668_v16 = vpop.xlane.xlu0 %2667 }
 0x7f5   : > { %7436 = vpow2.f32 %v2711_v45  ;;  %v2696_v12 = vsub.f32 %v8881_v31, %v2666_v28  ;;  %v2697_v63 = vsub.f32 %v8878_v48, %v2668_v16 }
 0x7f7   : > { %v2713_v38 = vmul.f32 1.442695, %v2696_v12  ;;  %v2715_v14 = vmul.f32 1.442695, %v2697_v63 }
 0x7f8   : > { %v2670_v19 = vpop.xlane.xlu1 %2669  ;;  %v2672_v39 = vpop.xlane.xlu0 %2671 }
 0x7f9   : > { %7438 = vpow2.f32 %v2713_v38  ;;  %v2698_v41 = vsub.f32 %v8886_v47, %v2670_v19  ;;  %v2699_v7 = vsub.f32 %v8889_v9, %v2672_v39 }
 0x7fa   : > { %7440 = vpow2.f32 %v2715_v14 }
 0x7fb   : > { %v2717_v52 = vmul.f32 1.442695, %v2698_v41  ;;  %v2719_v22 = vmul.f32 1.442695, %v2699_v7 }
 0x7fc   : > { %v2674_v0 = vpop.xlane.xlu1 %2673  ;;  %v2676_v43 = vpop.xlane.xlu0 %2675 }
 0x7fd   : > { %7442 = vpow2.f32 %v2717_v52  ;;  %v2700_v37 = vsub.f32 %v8897_v34, %v2674_v0  ;;  %v2701_v31 = vsub.f32 %v8894_v21, %v2676_v43 }
 0x7fe   : > { %7444 = vpow2.f32 %v2719_v22 }
 0x7ff   : > { %v2721_v48 = vmul.f32 1.442695, %v2700_v37  ;;  %v2723_v57 = vmul.f32 1.442695, %v2701_v31 }
 0x800   : > { %v2678_v29 = vpop.xlane.xlu1 %2677  ;;  %v2680_v3 = vpop.xlane.xlu0 %2679 }
 0x801   : > { %7446 = vpow2.f32 %v2721_v48  ;;  %v2702_v47 = vsub.f32 %v8902_v15, %v2678_v29  ;;  %v2703_v9 = vsub.f32 %v8905_v36, %v2680_v3 }
 0x802   : > { %v8962_v55 = vpop.eup %7436  ;;  %7448 = vpow2.f32 %v2723_v57 }
 0x803   : > { %v2725_v4 = vmul.f32 1.442695, %v2702_v47  ;;  %v2727_v42 = vmul.f32 1.442695, %v2703_v9  ;;  %2743 = vadd.xlane.f32.xlu0 %v8962_v55 }
 0x804   : > { %v2682_v34 = vpop.xlane.xlu1 %2681  ;;  %v2684_v45 = vpop.xlane.xlu0 %2683 }
 0x805   : > { %7450 = vpow2.f32 %v2725_v4  ;;  %v2704_v21 = vsub.f32 %v8913_v40, %v2682_v34  ;;  %v2705_v28 = vsub.f32 %v8910_v27, %v2684_v45  ;;  %v7292_v34 = vld [vmem:[%s10512_s2 + $0x28] sm:$0xff]  }
 0x806   : > { %v8967_v16 = vpop.eup %7438  ;;  %7452 = vpow2.f32 %v2727_v42  ;;  %6937 = vmatprep.subr.bf16.mxu0 %v7292_v34 }
 0x807   : > { %v8969_v15 = vpop.eup %7440  ;;  %v2729_v36 = vmul.f32 1.442695, %v2704_v21  ;;  %v2731_v12 = vmul.f32 1.442695, %v2705_v28  ;;  %2745 = vadd.xlane.f32.xlu1 %v8967_v16 }
 0x808   : > { %2747 = vadd.xlane.f32.xlu0 %v8969_v15  ;;  %v2686_v63 = vpop.xlane.xlu1 %2685  ;;  %v2688_v38 = vpop.xlane.xlu0 %2687 }
 0x809   : > { %7454 = vpow2.f32 %v2729_v36  ;;  %v2706_v14 = vsub.f32 %v8918_v50, %v2686_v63  ;;  %v2707_v40 = vsub.f32 %v8921_v25, %v2688_v38 }
 0x80a   : > { %v8975_v19 = vpop.eup %7442  ;;  %7456 = vpow2.f32 %v2731_v12 }
 0x80b   : > { %v8977_v27 = vpop.eup %7444  ;;  %v2733_v39 = vmul.f32 1.442695, %v2706_v14  ;;  %v2735_v41 = vmul.f32 1.442695, %v2707_v40  ;;  %2749 = vadd.xlane.f32.xlu1 %v8975_v19 }
 0x80c   : > { %2751 = vadd.xlane.f32.xlu0 %v8977_v27  ;;  %v2690_v7 = vpop.xlane.xlu1 %2689  ;;  %v2692_v52 = vpop.xlane.xlu0 %2691 }
 0x80d   : > { %7458 = vpow2.f32 %v2733_v39  ;;  %v2708_v22 = vsub.f32 %v8929_v23, %v2690_v7  ;;  %v2709_v50 = vsub.f32 %v8926_v11, %v2692_v52 }
 0x80e   : > { %v8983_v0 = vpop.eup %7446  ;;  %7460 = vpow2.f32 %v2735_v41 }
 0x80f   : > { %v8985_v25 = vpop.eup %7448  ;;  %v2737_v43 = vmul.f32 1.442695, %v2708_v22  ;;  %v2739_v37 = vmul.f32 1.442695, %v2709_v50  ;;  %2753 = vadd.xlane.f32.xlu1 %v8983_v0 }
 0x810   : > { %2755 = vadd.xlane.f32.xlu0 %v8985_v25  ;;  %v2694_v31 = vpop.xlane.xlu1 %2693 }
 0x811   : > { %7462 = vpow2.f32 %v2737_v43  ;;  %v2710_v48 = vsub.f32 %v8934_v26, %v2694_v31 }
 0x812   : > { %v8990_v57 = vpop.eup %7450  ;;  %7464 = vpow2.f32 %v2739_v37 }
 0x813   : > { %v8992_v23 = vpop.eup %7452  ;;  %v2741_v11 = vmul.f32 1.442695, %v2710_v48  ;;  %2757 = vadd.xlane.f32.xlu1 %v8990_v57 }
 0x814   : > { %2759 = vadd.xlane.f32.xlu0 %v8992_v23 }
 0x815   : > { %7466 = vpow2.f32 %v2741_v11 }
 0x816   : > { %v8996_v29 = vpop.eup %7454 }
 0x817   : > { %v8998_v3 = vpop.eup %7456  ;;  %2761 = vadd.xlane.f32.xlu1 %v8996_v29 }
 0x818   : > { %2763 = vadd.xlane.f32.xlu0 %v8998_v3 }
 0x81a   : > { %v9002_v26 = vpop.eup %7458 }
 0x81b   : > { %v9004_v47 = vpop.eup %7460  ;;  %2765 = vadd.xlane.f32.xlu1 %v9002_v26 }
 0x81c   : > { %2767 = vadd.xlane.f32.xlu0 %v9004_v47 }
 0x81e   : > { %v9008_v9 = vpop.eup %7462 }
 0x81f   : > { %v9010_v4 = vpop.eup %7464  ;;  %2769 = vadd.xlane.f32.xlu1 %v9008_v9 }
 0x820   : > { %2771 = vadd.xlane.f32.xlu0 %v9010_v4 }
 0x822   : > { %v9014_v42 = vpop.eup %7466 }
 0x823   : > { %2773 = vadd.xlane.f32.xlu1 %v9014_v42 }
 0x88c   : > { %v2744_v45 = vpop.xlane.xlu0 %2743 }
 0x88d   : > { %7468 = vrcp.f32 %v2744_v45 }
 0x890   : > { %v2746_v21 = vpop.xlane.xlu1 %2745 }
 0x891   : > { %7470 = vrcp.f32 %v2746_v21  ;;  %v2748_v28 = vpop.xlane.xlu0 %2747 }
 0x892   : > { %7472 = vrcp.f32 %v2748_v28  ;;  %v7293_v28 = vld [vmem:[%s10512_s2 + $0x20] sm:$0xff]  }
 0x894   : > { %v2750_v36 = vpop.xlane.xlu1 %2749 }
 0x895   : > { %7474 = vrcp.f32 %v2750_v36  ;;  %v2752_v12 = vpop.xlane.xlu0 %2751 }
 0x896   : > { %7476 = vrcp.f32 %v2752_v12 }
 0x898   : > { %v2754_v63 = vpop.xlane.xlu1 %2753 }
 0x899   : > { %7478 = vrcp.f32 %v2754_v63  ;;  %v2756_v38 = vpop.xlane.xlu0 %2755 }
 0x89a   : > { %v7469_v14 = vpop.eup %7468  ;;  %7480 = vrcp.f32 %v2756_v38 }
 0x89b   : > { %v2807_v40 = vmul.f32 %v7469_v14, %v8962_v55 }
 0x89c   : > { %v2758_v39 = vpop.xlane.xlu1 %2757 }
 0x89d   : > { %7482 = vrcp.f32 %v2758_v39  ;;  %v2760_v41 = vpop.xlane.xlu0 %2759  ;;  %6156 = vst [vmem:[%s8736_s24 + $0x80] sm:$0xff] %v2807_v40 }
 0x89e   : > { %v7471_v7 = vpop.eup %7470  ;;  %7484 = vrcp.f32 %v2760_v41 }
 0x89f   : > { %v7473_v52 = vpop.eup %7472  ;;  %v2808_v22 = vmul.f32 %v7471_v7, %v8967_v16 }
 0x8a0   : > { %v2762_v50 = vpop.xlane.xlu1 %2761  ;;  %v2809_v43 = vmul.f32 %v7473_v52, %v8969_v15 }
 0x8a1   : > { %7486 = vrcp.f32 %v2762_v50  ;;  %v2764_v37 = vpop.xlane.xlu0 %2763  ;;  %6157 = vst [vmem:[%s8736_s24 + $0x88] sm:$0xff] %v2808_v22  ;;  %v2840_v31 = vpack.c.bf16 %v2808_v22, %v2807_v40  ;;  %v7294_v40 = vld [vmem:[%s10514_s4 + $0x28] sm:$0xff]  }
 0x8a2   : > { %v7475_v55 = vpop.eup %7474  ;;  %7488 = vrcp.f32 %v2764_v37  ;;  %6158 = vst [vmem:[%s8736_s24 + $0x90] sm:$0xff] %v2809_v43 }
 0x8a3   : > { %v7477_v48 = vpop.eup %7476  ;;  %6921 = vmatprep.mubr.bf16.mxu0 %v2840_v31  ;;  %v2810_v11 = vmul.f32 %v7475_v55, %v8975_v19 }
 0x8a4   : > { %v2766_v45 = vpop.xlane.xlu1 %2765  ;;  %v2811_v21 = vmul.f32 %v7477_v48, %v8977_v27 }
 0x8a5   : > { %7490 = vrcp.f32 %v2766_v45  ;;  %v2768_v16 = vpop.xlane.xlu0 %2767  ;;  %6159 = vst [vmem:[%s8736_s24 + $0x98] sm:$0xff] %v2810_v11  ;;  %v2841_v15 = vpack.c.bf16 %v2810_v11, %v2809_v43 }
 0x8a6   : > { %v7479_v36 = vpop.eup %7478  ;;  %7492 = vrcp.f32 %v2768_v16  ;;  %6160 = vst [vmem:[%s8736_s24 + $0xa0] sm:$0xff] %v2811_v21 }
 0x8a7   : > { %v7481_v12 = vpop.eup %7480  ;;  %6922 = vmatmul.mubr.bf16.vlgmr.msra.gmra.mxu0 %v2841_v15  ;;  %v2812_v19 = vmul.f32 %v7479_v36, %v8983_v0 }
 0x8a8   : > { %6938 = vmatpush3.bf16.msra.mxu0 %v7292_v34  ;;  %v2770_v63 = vpop.xlane.xlu1 %2769  ;;  %v2813_v27 = vmul.f32 %v7481_v12, %v8985_v25 }
 0x8a9   : > { %7494 = vrcp.f32 %v2770_v63  ;;  %v2772_v38 = vpop.xlane.xlu0 %2771  ;;  %6161 = vst [vmem:[%s8736_s24 + $0xa8] sm:$0xff] %v2812_v19  ;;  %v2842_v14 = vpack.c.bf16 %v2812_v19, %v2811_v21  ;;  %6939 = vmatprep.subr.bf16.mxu0 %v7293_v28 }
 0x8aa   : > { %v7483_v39 = vpop.eup %7482  ;;  %7496 = vrcp.f32 %v2772_v38  ;;  %6162 = vst [vmem:[%s8736_s24 + $0xb0] sm:$0xff] %v2813_v27 }
 0x8ab   : > { %v7485_v41 = vpop.eup %7484  ;;  %6925 = vmatprep.mubr.bf16.mxu0 %v2842_v14  ;;  %v2814_v0 = vmul.f32 %v7483_v39, %v8990_v57 }
 0x8ac   : > { %v2774_v25 = vpop.xlane.xlu1 %2773  ;;  %v2815_v34 = vmul.f32 %v7485_v41, %v8992_v23  ;;  %6940 = vmatpush3.bf16.msra.mxu0 %v7293_v28 }
 0x8ad   : > { %7498 = vrcp.f32 %v2774_v25  ;;  %6163 = vst [vmem:[%s8736_s24 + $0xb8] sm:$0xff] %v2814_v0  ;;  %v2843_v7 = vpack.c.bf16 %v2814_v0, %v2813_v27  ;;  %6977 = vmatprep.subr.bf16.mxu0 %v7294_v40 }
 0x8ae   : > { %v7487_v52 = vpop.eup %7486  ;;  %6164 = vst [vmem:[%s8736_s24 + $0xc0] sm:$0xff] %v2815_v34 }
 0x8af   : > { %v7489_v22 = vpop.eup %7488  ;;  %6926 = vmatmul.mubr.bf16.gmra.mxu0 %v2843_v7  ;;  %v2816_v50 = vmul.f32 %v7487_v52, %v8996_v29 }
 0x8b0   : > { %v2817_v43 = vmul.f32 %v7489_v22, %v8998_v3 }
 0x8b1   : > { %6165 = vst [vmem:[%s8736_s24 + $0xc8] sm:$0xff] %v2816_v50  ;;  %v2844_v57 = vpack.c.bf16 %v2816_v50, %v2815_v34 }
 0x8b2   : > { %v7491_v37 = vpop.eup %7490  ;;  %6166 = vst [vmem:[%s8736_s24 + $0xd0] sm:$0xff] %v2817_v43 }
 0x8b3   : > { %v7493_v23 = vpop.eup %7492  ;;  %6929 = vmatprep.mubr.bf16.mxu0 %v2844_v57  ;;  %v2818_v31 = vmul.f32 %v7491_v37, %v9002_v26 }
 0x8b4   : > { %v2819_v55 = vmul.f32 %v7493_v23, %v9004_v47  ;;  %v7295_v47 = vld [vmem:[%s10514_s4 + $0x20] sm:$0xff]  }
 0x8b5   : > { %6167 = vst [vmem:[%s8736_s24 + $0xd8] sm:$0xff] %v2818_v31  ;;  %v2845_v48 = vpack.c.bf16 %v2818_v31, %v2817_v43 }
 0x8b6   : > { %v7495_v11 = vpop.eup %7494  ;;  %6168 = vst [vmem:[%s8736_s24 + $0xe0] sm:$0xff] %v2819_v55 }
 0x8b7   : > { %v7497_v29 = vpop.eup %7496  ;;  %6930 = vmatmul.mubr.bf16.gmra.mxu0 %v2845_v48  ;;  %v2820_v3 = vmul.f32 %v7495_v11, %v9008_v9  ;;  %v7296_v9 = vld [vmem:[%s10513_s3 + $0x38] sm:$0xff]  }
 0x8b8   : > { %v2821_v45 = vmul.f32 %v7497_v29, %v9010_v4  ;;  %7081 = vmatprep.subr.bf16.mxu1 %v7296_v9  ;;  %v7297_v29 = vld [vmem:[%s10513_s3 + $0x30] sm:$0xff]  }
 0x8b9   : > { %6169 = vst [vmem:[%s8736_s24 + $0xe8] sm:$0xff] %v2820_v3  ;;  %v2846_v21 = vpack.c.bf16 %v2820_v3, %v2819_v55 }
 0x8ba   : > { %v7499_v16 = vpop.eup %7498  ;;  %6170 = vst [vmem:[%s8736_s24 + $0xf0] sm:$0xff] %v2821_v45 }
 0x8bb   : > { %6933 = vmatprep.mubr.bf16.mxu0 %v2846_v21  ;;  %v2822_v26 = vmul.f32 %v7499_v16, %v9014_v42 }
 0x8bd   : > { %6171 = vst [vmem:[%s8736_s24 + $0xf8] sm:$0xff] %v2822_v26  ;;  %v2847_v15 = vpack.c.bf16 %v2822_v26, %v2821_v45 }
 0x8bf   : > { %6934 = vmatmul.mubr.bf16.gmra.mxu0 %v2847_v15 }
 0x8c0   : > { %6941 = vmatprep.mubr.msk.bf16.mxu0 %vm561_vm0, %v8291_v18 }
 0x8c7   : > { %6942 = vmatmul.mubr.msk.bf16.vlgmr.msra.gmra.mxu0 %vm561_vm0, %v8295_v1 }
 0x8c8   : > { %6945 = vmatprep.mubr.msk.bf16.mxu0 %vm561_vm0, %v8347_v62  ;;  %6978 = vmatpush3.bf16.msra.mxu0 %v7294_v40 }
 0x8c9   : > { %6979 = vmatprep.subr.bf16.mxu0 %v7295_v47 }
 0x8cc   : > { %6980 = vmatpush3.bf16.msra.mxu0 %v7295_v47 }
 0x8cf   : > { %6946 = vmatmul.mubr.msk.bf16.gmra.mxu0 %vm561_vm0, %v8353_v6 }
 0x8d0   : > { %6949 = vmatprep.mubr.msk.bf16.mxu0 %vm561_vm0, %v8393_v60 }
 0x8d7   : > { %6950 = vmatmul.mubr.msk.bf16.gmra.mxu0 %vm561_vm0, %v8397_v17 }
 0x8d8   : > { %6953 = vmatprep.mubr.msk.bf16.mxu0 %vm561_vm0, %v8426_v49 }
 0x8df   : > { %6954 = vmatmul.mubr.msk.bf16.gmra.mxu0 %vm561_vm0, %v8441_v58 }
 0x8e0   : > { %6981 = vmatprep.mubr.msk.bf16.mxu0 %vm561_vm0, %v8291_v18 }
 0x8e7   : > { %6982 = vmatmul.mubr.msk.bf16.vlgmr.msra.gmra.mxu0 %vm561_vm0, %v8295_v1 }
 0x8e8   : > { %6985 = vmatprep.mubr.msk.bf16.mxu0 %vm561_vm0, %v8347_v62 }
 0x8ef   : > { %6986 = vmatmul.mubr.msk.bf16.gmra.mxu0 %vm561_vm0, %v8353_v6 }
 0x8f0   : > { %6989 = vmatprep.mubr.msk.bf16.mxu0 %vm561_vm0, %v8393_v60 }
 0x8f7   : > { %6990 = vmatmul.mubr.msk.bf16.gmra.mxu0 %vm561_vm0, %v8397_v17 }
 0x8f8   : > { %6993 = vmatprep.mubr.msk.bf16.mxu0 %vm561_vm0, %v8426_v49 }
 0x8ff   : > { %6994 = vmatmul.mubr.msk.bf16.gmra.mxu0 %vm561_vm0, %v8441_v58 }
 0x967   : > { %v9096_v4 = vpop.f32.mrf.mxu0 }
 0x969   : > { %v9098_v42 = vpop.f32.mrf.mxu0 }
 0x96b   : > { %v9100_v28 = vpop.f32.mrf.mxu0 }
 0x96d   : > { %v9102_v36 = vpop.f32.mrf.mxu0 }
 0x96f   : > { %v9104_v12 = vpop.f32.mrf.mxu0 }
 0x971   : > { %v9106_v19 = vpop.f32.mrf.mxu0 }
 0x973   : > { %v9108_v63 = vpop.f32.mrf.mxu0 }
 0x975   : > { %v9110_v27 = vpop.f32.mrf.mxu0 }
 0x977   : > { %v9112_v38 = vpop.f32.mrf.mxu0 }
 0x979   : > { %v9114_v14 = vpop.f32.mrf.mxu0 }
 0x97b   : > { %v9116_v40 = vpop.f32.mrf.mxu0 }
 0x97d   : > { %v9118_v39 = vpop.f32.mrf.mxu0 }
 0x97f   : > { %v9120_v41 = vpop.f32.mrf.mxu0 }
 0x981   : > { %v9122_v0 = vpop.f32.mrf.mxu0 }
 0x983   : > { %v9124_v25 = vpop.f32.mrf.mxu0 }
 0x985   : > { %v9126_v34 = vpop.f32.mrf.mxu0 }
 0x987   : > { %v6943_v7 = vpop.f32.mrf.mxu0 }
 0x988   : > { %v3069_v23 = vmul.f32 0.35355338, %v6943_v7 }
 0x989   : > { %v3004_v52 = vpop.f32.mrf.mxu0 }
 0x98a   : > { %v3067_v57 = vmul.f32 0.35355338, %v3004_v52 }
 0x98b   : > { %v6944_v22 = vpop.f32.mrf.mxu0 }
 0x98c   : > { %v3070_v50 = vmul.f32 0.35355338, %v6944_v22 }
 0x98d   : > { %v3007_v43 = vpop.f32.mrf.mxu0 }
 0x98e   : > { %v3068_v37 = vmul.f32 0.35355338, %v3007_v43  ;;  %v3312_v48 = vpack.c.bf16 %v3070_v50, %v3069_v23 }
 0x98f   : > { %v6947_v31 = vpop.f32.mrf.mxu0 }
 0x990   : > { %v3311_v55 = vpack.c.bf16 %v3068_v37, %v3067_v57  ;;  %v3073_v15 = vmul.f32 0.35355338, %v6947_v31 }
 0x991   : > { %v3020_v11 = vpop.f32.mrf.mxu0 }
 0x992   : > { %7013 = vmatprep.mubr.msk.bf16.mxu1 %vm1709_vm2, %v3311_v55  ;;  %v3071_v16 = vmul.f32 0.35355338, %v3020_v11 }
 0x993   : > { %v6948_v3 = vpop.f32.mrf.mxu0  ;;  %7014 = vmatmul.mubr.msk.bf16.vlgmr.msra.gmra.mxu1 %vm1709_vm2, %v3312_v48 }
 0x994   : > { %7082 = vmatpush3.bf16.msra.mxu1 %v7296_v9  ;;  %v3074_v45 = vmul.f32 0.35355338, %v6948_v3 }
 0x995   : > { %v3023_v21 = vpop.f32.mrf.mxu0  ;;  %7083 = vmatprep.subr.bf16.mxu1 %v7297_v29 }
 0x996   : > { %v3072_v26 = vmul.f32 0.35355338, %v3023_v21  ;;  %v3314_v52 = vpack.c.bf16 %v3074_v45, %v3073_v15 }
 0x997   : > { %v6951_v47 = vpop.f32.mrf.mxu0 }
 0x998   : > { %v3313_v7 = vpack.c.bf16 %v3072_v26, %v3071_v16  ;;  %7084 = vmatpush3.bf16.msra.mxu1 %v7297_v29  ;;  %v3077_v23 = vmul.f32 0.35355338, %v6951_v47 }
 0x999   : > { %v3036_v22 = vpop.f32.mrf.mxu0 }
 0x99a   : > { %7017 = vmatprep.mubr.msk.bf16.mxu1 %vm1709_vm2, %v3313_v7  ;;  %v3075_v37 = vmul.f32 0.35355338, %v3036_v22 }
 0x99b   : > { %v6952_v50 = vpop.f32.mrf.mxu0  ;;  %7018 = vmatmul.mubr.msk.bf16.gmra.mxu1 %vm1709_vm2, %v3314_v52 }
 0x99c   : > { %v3078_v43 = vmul.f32 0.35355338, %v6952_v50 }
 0x99d   : > { %v3039_v57 = vpop.f32.mrf.mxu0 }
 0x99e   : > { %v3076_v9 = vmul.f32 0.35355338, %v3039_v57  ;;  %v3316_v11 = vpack.c.bf16 %v3078_v43, %v3077_v23 }
 0x99f   : > { %v6955_v55 = vpop.f32.mrf.mxu0 }
 0x9a0   : > { %v3315_v48 = vpack.c.bf16 %v3076_v9, %v3075_v37  ;;  %v3081_v26 = vmul.f32 0.35355338, %v6955_v55 }
 0x9a1   : > { %v3052_v3 = vpop.f32.mrf.mxu0 }
 0x9a2   : > { %7021 = vmatprep.mubr.msk.bf16.mxu1 %vm1709_vm2, %v3315_v48  ;;  %v3079_v21 = vmul.f32 0.35355338, %v3052_v3 }
 0x9a3   : > { %v6956_v31 = vpop.f32.mrf.mxu0  ;;  %7022 = vmatmul.mubr.msk.bf16.gmra.mxu1 %vm1709_vm2, %v3316_v11 }
 0x9a4   : > { %v3082_v29 = vmul.f32 0.35355338, %v6956_v31 }
 0x9a5   : > { %v3055_v45 = vpop.f32.mrf.mxu0 }
 0x9a6   : > { %v3080_v16 = vmul.f32 0.35355338, %v3055_v45  ;;  %v3318_v52 = vpack.c.bf16 %v3082_v29, %v3081_v26 }
 0x9a7   : > { %v6983_v15 = vpop.f32.mrf.mxu0 }
 0x9a8   : > { %v3317_v7 = vpack.c.bf16 %v3080_v16, %v3079_v21 }
 0x9a9   : > { %v3248_v22 = vpop.f32.mrf.mxu0 }
 0x9aa   : > { %7025 = vmatprep.mubr.msk.bf16.mxu1 %vm1709_vm2, %v3317_v7 }
 0x9ab   : > { %v6984_v47 = vpop.f32.mrf.mxu0  ;;  %7026 = vmatmul.mubr.msk.bf16.gmra.mxu1 %vm1709_vm2, %v3318_v52 }
 0x9ac   : > { %7085 = vmatprep.mubr.msk.bf16.mxu1 %vm561_vm0, %v8291_v18 }
 0x9ad   : > { %v3251_v50 = vpop.f32.mrf.mxu0 }
 0x9af   : > { %v6987_v43 = vpop.f32.mrf.mxu0 }
 0x9b1   : > { %v3264_v57 = vpop.f32.mrf.mxu0 }
 0x9b3   : > { %v6988_v37 = vpop.f32.mrf.mxu0  ;;  %7086 = vmatmul.mubr.msk.bf16.vlgmr.msra.gmra.mxu1 %vm561_vm0, %v8295_v1 }
 0x9b4   : > { %7089 = vmatprep.mubr.msk.bf16.mxu1 %vm561_vm0, %v8347_v62  ;;  %v3660_v52 = vpack.c.bf16 %v6988_v37, %v6987_v43 }
 0x9b5   : > { %v3267_v9 = vpop.f32.mrf.mxu0 }
 0x9b7   : > { %v6991_v23 = vpop.f32.mrf.mxu0 }
 0x9b9   : > { %v3280_v55 = vpop.f32.mrf.mxu0 }
 0x9bb   : > { %v6992_v48 = vpop.f32.mrf.mxu0  ;;  %7090 = vmatmul.mubr.msk.bf16.gmra.mxu1 %vm561_vm0, %v8353_v6 }
 0x9bc   : > { %7093 = vmatprep.mubr.msk.bf16.mxu1 %vm561_vm0, %v8393_v60  ;;  %v3662_v26 = vpack.c.bf16 %v6992_v48, %v6991_v23 }
 0x9bd   : > { %v3283_v11 = vpop.f32.mrf.mxu0 }
 0x9be   : > { %v3661_v7 = vpack.c.bf16 %v3283_v11, %v3280_v55 }
 0x9bf   : > { %v6995_v3 = vpop.f32.mrf.mxu0 }
 0x9c1   : > { %v3296_v31 = vpop.f32.mrf.mxu0 }
 0x9c3   : > { %v6996_v29 = vpop.f32.mrf.mxu0  ;;  %7094 = vmatmul.mubr.msk.bf16.gmra.mxu1 %vm561_vm0, %v8397_v17 }
 0x9c4   : > { %v3664_v45 = vpack.c.bf16 %v6996_v29, %v6995_v3  ;;  %7097 = vmatprep.mubr.msk.bf16.mxu1 %vm561_vm0, %v8426_v49  ;;  %v3659_v3 = vpack.c.bf16 %v3267_v9, %v3264_v57  ;;  %v3657_v29 = vpack.c.bf16 %v3251_v50, %v3248_v22 }
 0x9c5   : > { %v3299_v21 = vpop.f32.mrf.mxu0 }
 0x9c6   : > { %v3663_v16 = vpack.c.bf16 %v3299_v21, %v3296_v31  ;;  %7029 = vmatprep.subr.bf16.mxu0 %v3664_v45  ;;  %v3658_v31 = vpack.c.bf16 %v6984_v47, %v6983_v15 }
 0x9c7   : > { %7030 = vmatpush3.bf16.msra.mxu0 %v3664_v45  ;;  %v9156_v45 = vld [vmem:[%s8580_s17] ss:$0 sm:$0xff] }
 0x9c8   : > { %7031 = vmatprep.subr.bf16.mxu0 %v3663_v16 }
 0x9cb   : > { %7032 = vmatpush3.bf16.msra.mxu0 %v3663_v16  ;;  %7098 = vmatmul.mubr.msk.bf16.gmra.mxu1 %vm561_vm0, %v8441_v58 }
 0x9cc   : > { %7033 = vmatprep.subr.bf16.mxu0 %v3662_v26 }
 0x9cf   : > { %7034 = vmatpush3.bf16.msra.mxu0 %v3662_v26 }
 0x9d0   : > { %7035 = vmatprep.subr.bf16.mxu0 %v3661_v7 }
 0x9d3   : > { %7036 = vmatpush3.bf16.msra.mxu0 %v3661_v7 }
 0x9d4   : > { %7037 = vmatprep.subr.bf16.mxu0 %v3660_v52 }
 0x9d7   : > { %7038 = vmatpush3.bf16.msra.mxu0 %v3660_v52 }
 0x9d8   : > { %7039 = vmatprep.subr.bf16.mxu0 %v3659_v3 }
 0x9db   : > { %7040 = vmatpush3.bf16.msra.mxu0 %v3659_v3 }
 0x9dc   : > { %7041 = vmatprep.subr.bf16.mxu0 %v3658_v31 }
 0x9df   : > { %7042 = vmatpush3.bf16.msra.mxu0 %v3658_v31 }
 0x9e0   : > { %7043 = vmatprep.subr.bf16.mxu0 %v3657_v29 }
 0x9e3   : > { %7044 = vmatpush3.bf16.msra.mxu0 %v3657_v29 }
 0xa53   : > { %v7015_v23 = vpop.f32.mrf.mxu1 }
 0xa54   : > { %v9163_v37 = vadd.f32 %v9156_v45, %v7015_v23 }
 0xa55   : > { %v3409_v48 = vpop.f32.mrf.mxu1 }
 0xa56   : > { %v9159_v55 = vadd.f32 %v9156_v45, %v3409_v48 }
 0xa57   : > { %v7016_v43 = vpop.f32.mrf.mxu1 }
 0xa58   : > { %3472 = vmax.xlane.f32.xlu0 %v9159_v55  ;;  %v9171_v50 = vadd.f32 %v9156_v45, %v7016_v43 }
 0xa59   : > { %v3412_v57 = vpop.f32.mrf.mxu1 }
 0xa5a   : > { %v9166_v15 = vadd.f32 %v9156_v45, %v3412_v57 }
 0xa5b   : > { %v7019_v22 = vpop.f32.mrf.mxu1 }
 0xa5c   : > { %3474 = vmax.xlane.f32.xlu1 %v9166_v15  ;;  %3476 = vmax.xlane.f32.xlu0 %v9163_v37  ;;  %v9179_v16 = vadd.f32 %v9156_v45, %v7019_v22 }
 0xa5d   : > { %v3425_v47 = vpop.f32.mrf.mxu1 }
 0xa5e   : > { %v9174_v9 = vadd.f32 %v9156_v45, %v3425_v47 }
 0xa5f   : > { %v7020_v11 = vpop.f32.mrf.mxu1 }
 0xa60   : > { %3478 = vmax.xlane.f32.xlu1 %v9171_v50  ;;  %3480 = vmax.xlane.f32.xlu0 %v9174_v9  ;;  %v9187_v3 = vadd.f32 %v9156_v45, %v7020_v11 }
 0xa61   : > { %v3428_v21 = vpop.f32.mrf.mxu1 }
 0xa62   : > { %v9182_v26 = vadd.f32 %v9156_v45, %v3428_v21 }
 0xa63   : > { %v7023_v7 = vpop.f32.mrf.mxu1 }
 0xa64   : > { %3482 = vmax.xlane.f32.xlu1 %v9182_v26  ;;  %3484 = vmax.xlane.f32.xlu0 %v9179_v16  ;;  %v9195_v48 = vadd.f32 %v9156_v45, %v7023_v7 }
 0xa65   : > { %v3441_v52 = vpop.f32.mrf.mxu1 }
 0xa66   : > { %v9190_v31 = vadd.f32 %v9156_v45, %v3441_v52 }
 0xa67   : > { %v7024_v29 = vpop.f32.mrf.mxu1 }
 0xa68   : > { %3486 = vmax.xlane.f32.xlu1 %v9187_v3  ;;  %3488 = vmax.xlane.f32.xlu0 %v9190_v31  ;;  %v9203_v47 = vadd.f32 %v9156_v45, %v7024_v29 }
 0xa69   : > { %v3444_v23 = vpop.f32.mrf.mxu1 }
 0xa6a   : > { %v9198_v43 = vadd.f32 %v9156_v45, %v3444_v23 }
 0xa6b   : > { %v7027_v57 = vpop.f32.mrf.mxu1 }
 0xa6c   : > { %3490 = vmax.xlane.f32.xlu1 %v9198_v43  ;;  %3492 = vmax.xlane.f32.xlu0 %v9195_v48  ;;  %v9211_v52 = vadd.f32 %v9156_v45, %v7027_v57 }
 0xa6d   : > { %v3457_v22 = vpop.f32.mrf.mxu1 }
 0xa6e   : > { %v9206_v11 = vadd.f32 %v9156_v45, %v3457_v22 }
 0xa6f   : > { %v7028_v21 = vpop.f32.mrf.mxu1 }
 0xa70   : > { %3494 = vmax.xlane.f32.xlu1 %v9203_v47  ;;  %3496 = vmax.xlane.f32.xlu0 %v9206_v11  ;;  %v9219_v22 = vadd.f32 %v9156_v45, %v7028_v21 }
 0xa71   : > { %v3460_v7 = vpop.f32.mrf.mxu1 }
 0xa72   : > { %v9214_v23 = vadd.f32 %v9156_v45, %v3460_v7 }
 0xa73   : > { %v7087_v2 = vpop.f32.mrf.mxu1 }
 0xa74   : > { %3498 = vmax.xlane.f32.xlu1 %v9214_v23  ;;  %3500 = vmax.xlane.f32.xlu0 %v9211_v52 }
 0xa75   : > { %v3943_v29 = vpop.f32.mrf.mxu1 }
 0xa77   : > { %v7088_v24 = vpop.f32.mrf.mxu1 }
 0xa78   : > { %v4129_v30 = vpack.c.bf16 %v7088_v24, %v7087_v2  ;;  %3502 = vmax.xlane.f32.xlu1 %v9219_v22 }
 0xa79   : > { %v3946_v51 = vpop.f32.mrf.mxu1 }
 0xa7a   : > { %v4128_v53 = vpack.c.bf16 %v3946_v51, %v3943_v29 }
 0xa7b   : > { %v7091_v57 = vpop.f32.mrf.mxu1 }
 0xa7d   : > { %v3959_v44 = vpop.f32.mrf.mxu1 }
 0xa7f   : > { %v7092_v46 = vpop.f32.mrf.mxu1 }
 0xa81   : > { %v3962_v7 = vpop.f32.mrf.mxu1 }
 0xa83   : > { %v7095_v20 = vpop.f32.mrf.mxu1 }
 0xa85   : > { %v3975_v10 = vpop.f32.mrf.mxu1 }
 0xa87   : > { %v7096_v13 = vpop.f32.mrf.mxu1 }
 0xa88   : > { %v4133_v51 = vpack.c.bf16 %v7096_v13, %v7095_v20 }
 0xa89   : > { %v3978_v59 = vpop.f32.mrf.mxu1 }
 0xa8a   : > { %v4176_v29 = vsel %vm1709_vm2, %v4133_v51, 0  ;;  %v4132_v33 = vpack.c.bf16 %v3978_v59, %v3975_v10  ;;  %v4164_v59 = vsel %vm1709_vm2, %v4129_v30, 0 }
 0xa8b   : > { %v7099_v54 = vpop.f32.mrf.mxu1 }
 0xa8d   : > { %v3991_v32 = vpop.f32.mrf.mxu1 }
 0xa8f   : > { %v7100_v5 = vpop.f32.mrf.mxu1 }
 0xa90   : > { %v4135_v8 = vpack.c.bf16 %v7100_v5, %v7099_v54  ;;  %v4131_v54 = vpack.c.bf16 %v7092_v46, %v7091_v57  ;;  %v4161_v46 = vsel %vm1709_vm2, %v4128_v53, 0 }
 0xa91   : > { %v3994_v21 = vpop.f32.mrf.mxu1 }
 0xa92   : > { %v4182_v61 = vsel %vm1709_vm2, %v4135_v8, 0  ;;  %v4134_v2 = vpack.c.bf16 %v3994_v21, %v3991_v32  ;;  %7253 = vmatprep.subr.msk.bf16.mxu1 %vm1709_vm2, %v4135_v8  ;;  %v4173_v32 = vsel %vm1709_vm2, %v4132_v33, 0  ;;  %v4170_v8 = vsel %vm1709_vm2, %v4131_v54, 0 }
 0xa93   : > { %7122 = vmatpush3.bf16.xpose.msra.mxu1 %v4182_v61  ;;  %v4130_v61 = vpack.c.bf16 %v3962_v7, %v3959_v44 }
 0xa94   : > { %7254 = vmatprep.subr.msk.bf16.mxu1 %vm1709_vm2, %v4134_v2  ;;  %v4179_v24 = vsel %vm1709_vm2, %v4134_v2, 0 }
 0xa95   : > { %v4167_v5 = vsel %vm1709_vm2, %v4130_v61, 0 }
 0xa9b   : > { %7124 = vmatpush3.bf16.xpose.msra.mxu1 %v4179_v24 }
 0xa9c   : > { %7255 = vmatprep.subr.msk.bf16.mxu1 %vm1709_vm2, %v4133_v51 }
 0xaa3   : > { %7126 = vmatpush3.bf16.xpose.msra.mxu1 %v4176_v29 }
 0xaa4   : > { %7256 = vmatprep.subr.msk.bf16.mxu1 %vm1709_vm2, %v4132_v33 }
 0xaab   : > { %7128 = vmatpush3.bf16.xpose.msra.mxu1 %v4173_v32 }
 0xaac   : > { %7257 = vmatprep.subr.msk.bf16.mxu1 %vm1709_vm2, %v4131_v54 }
 0xab3   : > { %7130 = vmatpush3.bf16.xpose.msra.mxu1 %v4170_v8 }
 0xab4   : > { %7258 = vmatprep.subr.msk.bf16.mxu1 %vm1709_vm2, %v4130_v61 }
 0xabb   : > { %7132 = vmatpush3.bf16.xpose.msra.mxu1 %v4167_v5 }
 0xabc   : > { %7259 = vmatprep.subr.msk.bf16.mxu1 %vm1709_vm2, %v4129_v30 }
 0xac3   : > { %7134 = vmatpush3.bf16.xpose.msra.mxu1 %v4164_v59 }
 0xac4   : > { %7260 = vmatprep.subr.msk.bf16.mxu1 %vm1709_vm2, %v4128_v53 }
 0xacb   : > { %7136 = vmatpush3.bf16.xpose.msra.mxu1 %v4161_v46 }
 0xae1   : > { %v3473_v33 = vpop.xlane.xlu0 %3472 }
 0xae2   : > { %v3504_v10 = vsub.f32 %v9159_v55, %v3473_v33 }
 0xae4   : > { %v3520_v44 = vmul.f32 1.442695, %v3504_v10 }
 0xae5   : > { %v3475_v13 = vpop.xlane.xlu1 %3474  ;;  %v3477_v20 = vpop.xlane.xlu0 %3476 }
 0xae6   : > { %7500 = vpow2.f32 %v3520_v44  ;;  %v3505_v57 = vsub.f32 %v9166_v15, %v3475_v13  ;;  %v3506_v7 = vsub.f32 %v9163_v37, %v3477_v20 }
 0xae8   : > { %v3522_v21 = vmul.f32 1.442695, %v3505_v57  ;;  %v3524_v2 = vmul.f32 1.442695, %v3506_v7 }
 0xae9   : > { %v3479_v30 = vpop.xlane.xlu1 %3478  ;;  %v3481_v51 = vpop.xlane.xlu0 %3480 }
 0xaea   : > { %7502 = vpow2.f32 %v3522_v21  ;;  %v3507_v24 = vsub.f32 %v9171_v50, %v3479_v30  ;;  %v3508_v53 = vsub.f32 %v9174_v9, %v3481_v51 }
 0xaeb   : > { %7504 = vpow2.f32 %v3524_v2 }
 0xaec   : > { %v3526_v29 = vmul.f32 1.442695, %v3507_v24  ;;  %v3528_v55 = vmul.f32 1.442695, %v3508_v53 }
 0xaed   : > { %v3483_v54 = vpop.xlane.xlu1 %3482  ;;  %v3485_v32 = vpop.xlane.xlu0 %3484 }
 0xaee   : > { %7506 = vpow2.f32 %v3526_v29  ;;  %v3509_v8 = vsub.f32 %v9182_v26, %v3483_v54  ;;  %v3510_v15 = vsub.f32 %v9179_v16, %v3485_v32 }
 0xaef   : > { %7508 = vpow2.f32 %v3528_v55 }
 0xaf0   : > { %v3530_v37 = vmul.f32 1.442695, %v3509_v8  ;;  %v3532_v61 = vmul.f32 1.442695, %v3510_v15 }
 0xaf1   : > { %v3487_v5 = vpop.xlane.xlu1 %3486  ;;  %v3489_v59 = vpop.xlane.xlu0 %3488 }
 0xaf2   : > { %7510 = vpow2.f32 %v3530_v37  ;;  %v3511_v50 = vsub.f32 %v9187_v3, %v3487_v5  ;;  %v3512_v9 = vsub.f32 %v9190_v31, %v3489_v59 }
 0xaf3   : > { %v9247_v46 = vpop.eup %7500  ;;  %7512 = vpow2.f32 %v3532_v61 }
 0xaf4   : > { %v3534_v33 = vmul.f32 1.442695, %v3511_v50  ;;  %v3536_v10 = vmul.f32 1.442695, %v3512_v9  ;;  %3552 = vadd.xlane.f32.xlu0 %v9247_v46 }
 0xaf5   : > { %v3491_v26 = vpop.xlane.xlu1 %3490  ;;  %v3493_v44 = vpop.xlane.xlu0 %3492 }
 0xaf6   : > { %7514 = vpow2.f32 %v3534_v33  ;;  %v3513_v16 = vsub.f32 %v9198_v43, %v3491_v26  ;;  %v3514_v13 = vsub.f32 %v9195_v48, %v3493_v44  ;;  %v7298_v26 = vld [vmem:[%s10512_s2 + $0x38] sm:$0xff]  }
 0xaf7   : > { %v9252_v20 = vpop.eup %7502  ;;  %7516 = vpow2.f32 %v3536_v10  ;;  %7061 = vmatprep.subr.bf16.mxu0 %v7298_v26 }
 0xaf8   : > { %v9254_v3 = vpop.eup %7504  ;;  %v3538_v31 = vmul.f32 1.442695, %v3513_v16  ;;  %v3540_v57 = vmul.f32 1.442695, %v3514_v13  ;;  %3554 = vadd.xlane.f32.xlu1 %v9252_v20 }
 0xaf9   : > { %3556 = vadd.xlane.f32.xlu0 %v9254_v3  ;;  %v3495_v7 = vpop.xlane.xlu1 %3494  ;;  %v3497_v21 = vpop.xlane.xlu0 %3496 }
 0xafa   : > { %7518 = vpow2.f32 %v3538_v31  ;;  %v3515_v2 = vsub.f32 %v9203_v47, %v3495_v7  ;;  %v3516_v43 = vsub.f32 %v9206_v11, %v3497_v21 }
 0xafb   : > { %v9260_v30 = vpop.eup %7506  ;;  %7520 = vpow2.f32 %v3540_v57 }
 0xafc   : > { %v9262_v48 = vpop.eup %7508  ;;  %v3542_v51 = vmul.f32 1.442695, %v3515_v2  ;;  %v3544_v24 = vmul.f32 1.442695, %v3516_v43  ;;  %3558 = vadd.xlane.f32.xlu1 %v9260_v30 }
 0xafd   : > { %3560 = vadd.xlane.f32.xlu0 %v9262_v48  ;;  %v3499_v53 = vpop.xlane.xlu1 %3498  ;;  %v3501_v29 = vpop.xlane.xlu0 %3500 }
 0xafe   : > { %7522 = vpow2.f32 %v3542_v51  ;;  %v3517_v55 = vsub.f32 %v9214_v23, %v3499_v53  ;;  %v3518_v47 = vsub.f32 %v9211_v52, %v3501_v29 }
 0xaff   : > { %v9268_v54 = vpop.eup %7510  ;;  %7524 = vpow2.f32 %v3544_v24 }
 0xb00   : > { %v9270_v11 = vpop.eup %7512  ;;  %v3546_v32 = vmul.f32 1.442695, %v3517_v55  ;;  %v3548_v8 = vmul.f32 1.442695, %v3518_v47  ;;  %3562 = vadd.xlane.f32.xlu1 %v9268_v54 }
 0xb01   : > { %3564 = vadd.xlane.f32.xlu0 %v9270_v11  ;;  %v3503_v15 = vpop.xlane.xlu1 %3502 }
 0xb02   : > { %7526 = vpow2.f32 %v3546_v32  ;;  %v3519_v37 = vsub.f32 %v9219_v22, %v3503_v15 }
 0xb03   : > { %v9275_v61 = vpop.eup %7514  ;;  %7528 = vpow2.f32 %v3548_v8 }
 0xb04   : > { %v9277_v23 = vpop.eup %7516  ;;  %v3550_v52 = vmul.f32 1.442695, %v3519_v37  ;;  %3566 = vadd.xlane.f32.xlu1 %v9275_v61 }
 0xb05   : > { %3568 = vadd.xlane.f32.xlu0 %v9277_v23 }
 0xb06   : > { %7530 = vpow2.f32 %v3550_v52 }
 0xb07   : > { %v9281_v5 = vpop.eup %7518 }
 0xb08   : > { %v9283_v59 = vpop.eup %7520  ;;  %3570 = vadd.xlane.f32.xlu1 %v9281_v5 }
 0xb09   : > { %3572 = vadd.xlane.f32.xlu0 %v9283_v59 }
 0xb0b   : > { %v9287_v22 = vpop.eup %7522 }
 0xb0c   : > { %v9289_v50 = vpop.eup %7524  ;;  %3574 = vadd.xlane.f32.xlu1 %v9287_v22 }
 0xb0d   : > { %3576 = vadd.xlane.f32.xlu0 %v9289_v50 }
 0xb0f   : > { %v9293_v9 = vpop.eup %7526 }
 0xb10   : > { %v9295_v33 = vpop.eup %7528  ;;  %3578 = vadd.xlane.f32.xlu1 %v9293_v9 }
 0xb11   : > { %3580 = vadd.xlane.f32.xlu0 %v9295_v33 }
 0xb13   : > { %v9299_v10 = vpop.eup %7530 }
 0xb14   : > { %3582 = vadd.xlane.f32.xlu1 %v9299_v10 }
 0xb7d   : > { %v3553_v44 = vpop.xlane.xlu0 %3552 }
 0xb7e   : > { %7532 = vrcp.f32 %v3553_v44 }
 0xb81   : > { %v3555_v16 = vpop.xlane.xlu1 %3554 }
 0xb82   : > { %7534 = vrcp.f32 %v3555_v16  ;;  %v3557_v13 = vpop.xlane.xlu0 %3556 }
 0xb83   : > { %7536 = vrcp.f32 %v3557_v13  ;;  %v7299_v13 = vld [vmem:[%s10512_s2 + $0x30] sm:$0xff]  }
 0xb85   : > { %v3559_v31 = vpop.xlane.xlu1 %3558 }
 0xb86   : > { %7538 = vrcp.f32 %v3559_v31  ;;  %v3561_v57 = vpop.xlane.xlu0 %3560 }
 0xb87   : > { %7540 = vrcp.f32 %v3561_v57 }
 0xb89   : > { %v3563_v7 = vpop.xlane.xlu1 %3562 }
 0xb8a   : > { %7542 = vrcp.f32 %v3563_v7  ;;  %v3565_v21 = vpop.xlane.xlu0 %3564 }
 0xb8b   : > { %v7533_v2 = vpop.eup %7532  ;;  %7544 = vrcp.f32 %v3565_v21 }
 0xb8c   : > { %v3616_v43 = vmul.f32 %v7533_v2, %v9247_v46 }
 0xb8d   : > { %v3567_v51 = vpop.xlane.xlu1 %3566 }
 0xb8e   : > { %7546 = vrcp.f32 %v3567_v51  ;;  %v3569_v24 = vpop.xlane.xlu0 %3568  ;;  %6222 = vst [vmem:[%s8736_s24 + $0x100] sm:$0xff] %v3616_v43 }
 0xb8f   : > { %v7535_v53 = vpop.eup %7534  ;;  %7548 = vrcp.f32 %v3569_v24 }
 0xb90   : > { %v7537_v29 = vpop.eup %7536  ;;  %v3617_v55 = vmul.f32 %v7535_v53, %v9252_v20 }
 0xb91   : > { %v3618_v47 = vmul.f32 %v7537_v29, %v9254_v3  ;;  %v3571_v32 = vpop.xlane.xlu1 %3570 }
 0xb92   : > { %7550 = vrcp.f32 %v3571_v32  ;;  %v3573_v8 = vpop.xlane.xlu0 %3572  ;;  %6223 = vst [vmem:[%s8736_s24 + $0x108] sm:$0xff] %v3617_v55  ;;  %v3649_v15 = vpack.c.bf16 %v3617_v55, %v3616_v43  ;;  %v7300_v43 = vld [vmem:[%s10514_s4 + $0x38] sm:$0xff]  }
 0xb93   : > { %v7539_v46 = vpop.eup %7538  ;;  %6224 = vst [vmem:[%s8736_s24 + $0x110] sm:$0xff] %v3618_v47  ;;  %7552 = vrcp.f32 %v3573_v8 }
 0xb94   : > { %v7541_v37 = vpop.eup %7540  ;;  %v3619_v52 = vmul.f32 %v7539_v46, %v9260_v30  ;;  %7045 = vmatprep.mubr.bf16.mxu0 %v3649_v15 }
 0xb95   : > { %v3575_v44 = vpop.xlane.xlu1 %3574  ;;  %v3620_v16 = vmul.f32 %v7541_v37, %v9262_v48 }
 0xb96   : > { %6225 = vst [vmem:[%s8736_s24 + $0x118] sm:$0xff] %v3619_v52  ;;  %7554 = vrcp.f32 %v3575_v44  ;;  %v3577_v20 = vpop.xlane.xlu0 %3576  ;;  %v3650_v3 = vpack.c.bf16 %v3619_v52, %v3618_v47 }
 0xb97   : > { %v7543_v31 = vpop.eup %7542  ;;  %7556 = vrcp.f32 %v3577_v20  ;;  %6226 = vst [vmem:[%s8736_s24 + $0x120] sm:$0xff] %v3620_v16 }
 0xb98   : > { %v7545_v57 = vpop.eup %7544  ;;  %7046 = vmatmul.mubr.bf16.vlgmr.msra.gmra.mxu0 %v3650_v3  ;;  %v3621_v30 = vmul.f32 %v7543_v31, %v9268_v54 }
 0xb99   : > { %7062 = vmatpush3.bf16.msra.mxu0 %v7298_v26  ;;  %v3579_v7 = vpop.xlane.xlu1 %3578  ;;  %v3622_v48 = vmul.f32 %v7545_v57, %v9270_v11 }
 0xb9a   : > { %7558 = vrcp.f32 %v3579_v7  ;;  %v3581_v21 = vpop.xlane.xlu0 %3580  ;;  %6227 = vst [vmem:[%s8736_s24 + $0x128] sm:$0xff] %v3621_v30  ;;  %v3651_v2 = vpack.c.bf16 %v3621_v30, %v3620_v16  ;;  %7063 = vmatprep.subr.bf16.mxu0 %v7299_v13 }
 0xb9b   : > { %v7547_v51 = vpop.eup %7546  ;;  %7560 = vrcp.f32 %v3581_v21  ;;  %6228 = vst [vmem:[%s8736_s24 + $0x130] sm:$0xff] %v3622_v48 }
 0xb9c   : > { %v7549_v24 = vpop.eup %7548  ;;  %7049 = vmatprep.mubr.bf16.mxu0 %v3651_v2  ;;  %v3623_v54 = vmul.f32 %v7547_v51, %v9275_v61 }
 0xb9d   : > { %v3583_v11 = vpop.xlane.xlu1 %3582  ;;  %v3624_v26 = vmul.f32 %v7549_v24, %v9277_v23  ;;  %7064 = vmatpush3.bf16.msra.mxu0 %v7299_v13 }
 0xb9e   : > { %7562 = vrcp.f32 %v3583_v11  ;;  %6229 = vst [vmem:[%s8736_s24 + $0x138] sm:$0xff] %v3623_v54  ;;  %v3652_v53 = vpack.c.bf16 %v3623_v54, %v3622_v48  ;;  %7101 = vmatprep.subr.bf16.mxu0 %v7300_v43 }
 0xb9f   : > { %v7551_v29 = vpop.eup %7550  ;;  %6230 = vst [vmem:[%s8736_s24 + $0x140] sm:$0xff] %v3624_v26 }
 0xba0   : > { %v7553_v55 = vpop.eup %7552  ;;  %7050 = vmatmul.mubr.bf16.gmra.mxu0 %v3652_v53  ;;  %v3625_v47 = vmul.f32 %v7551_v29, %v9281_v5 }
 0xba1   : > { %v3626_v32 = vmul.f32 %v7553_v55, %v9283_v59 }
 0xba2   : > { %6231 = vst [vmem:[%s8736_s24 + $0x148] sm:$0xff] %v3625_v47  ;;  %v3653_v61 = vpack.c.bf16 %v3625_v47, %v3624_v26 }
 0xba3   : > { %v7555_v8 = vpop.eup %7554  ;;  %6232 = vst [vmem:[%s8736_s24 + $0x150] sm:$0xff] %v3626_v32 }
 0xba4   : > { %v7557_v23 = vpop.eup %7556  ;;  %7053 = vmatprep.mubr.bf16.mxu0 %v3653_v61  ;;  %v3627_v15 = vmul.f32 %v7555_v8, %v9287_v22 }
 0xba5   : > { %v3628_v46 = vmul.f32 %v7557_v23, %v9289_v50  ;;  %v7301_v50 = vld [vmem:[%s10514_s4 + $0x30] sm:$0xff]  }
 0xba6   : > { %6233 = vst [vmem:[%s8736_s24 + $0x158] sm:$0xff] %v3627_v15  ;;  %v3654_v37 = vpack.c.bf16 %v3627_v15, %v3626_v32 }
 0xba7   : > { %v7559_v52 = vpop.eup %7558  ;;  %6234 = vst [vmem:[%s8736_s24 + $0x160] sm:$0xff] %v3628_v46 }
 0xba8   : > { %v7561_v5 = vpop.eup %7560  ;;  %7054 = vmatmul.mubr.bf16.gmra.mxu0 %v3654_v37  ;;  %v3629_v59 = vmul.f32 %v7559_v52, %v9293_v9 }
 0xba9   : > { %v3630_v44 = vmul.f32 %v7561_v5, %v9295_v33 }
 0xbaa   : > { %6235 = vst [vmem:[%s8736_s24 + $0x168] sm:$0xff] %v3629_v59  ;;  %v3655_v16 = vpack.c.bf16 %v3629_v59, %v3628_v46 }
 0xbab   : > { %v7563_v20 = vpop.eup %7562  ;;  %6236 = vst [vmem:[%s8736_s24 + $0x170] sm:$0xff] %v3630_v44 }
 0xbac   : > { %7057 = vmatprep.mubr.bf16.mxu0 %v3655_v16  ;;  %v3631_v22 = vmul.f32 %v7563_v20, %v9299_v10 }
 0xbae   : > { %6237 = vst [vmem:[%s8736_s24 + $0x178] sm:$0xff] %v3631_v22  ;;  %v3656_v3 = vpack.c.bf16 %v3631_v22, %v3630_v44 }
 0xbb0   : > { %7058 = vmatmul.mubr.bf16.gmra.mxu0 %v3656_v3 }
 0xbb1   : > { %7065 = vmatprep.mubr.msk.bf16.mxu0 %vm561_vm0, %v8291_v18 }
 0xbb8   : > { %7066 = vmatmul.mubr.msk.bf16.vlgmr.msra.gmra.mxu0 %vm561_vm0, %v8295_v1 }
 0xbb9   : > { %7069 = vmatprep.mubr.msk.bf16.mxu0 %vm561_vm0, %v8347_v62  ;;  %7102 = vmatpush3.bf16.msra.mxu0 %v7300_v43 }
 0xbba   : > { %7103 = vmatprep.subr.bf16.mxu0 %v7301_v50 }
 0xbbd   : > { %7104 = vmatpush3.bf16.msra.mxu0 %v7301_v50 }
 0xbc0   : > { %7070 = vmatmul.mubr.msk.bf16.gmra.mxu0 %vm561_vm0, %v8353_v6 }
 0xbc1   : > { %7073 = vmatprep.mubr.msk.bf16.mxu0 %vm561_vm0, %v8393_v60 }
 0xbc8   : > { %7074 = vmatmul.mubr.msk.bf16.gmra.mxu0 %vm561_vm0, %v8397_v17 }
 0xbc9   : > { %7077 = vmatprep.mubr.msk.bf16.mxu0 %vm561_vm0, %v8426_v49 }
 0xbd0   : > { %7078 = vmatmul.mubr.msk.bf16.gmra.mxu0 %vm561_vm0, %v8441_v58 }
 0xbd1   : > { %7105 = vmatprep.mubr.msk.bf16.mxu0 %vm561_vm0, %v8291_v18 }
 0xbd8   : > { %7106 = vmatmul.mubr.msk.bf16.vlgmr.msra.gmra.mxu0 %vm561_vm0, %v8295_v1 }
 0xbd9   : > { %7109 = vmatprep.mubr.msk.bf16.mxu0 %vm561_vm0, %v8347_v62 }
 0xbe0   : > { %7110 = vmatmul.mubr.msk.bf16.gmra.mxu0 %vm561_vm0, %v8353_v6 }
 0xbe1   : > { %7113 = vmatprep.mubr.msk.bf16.mxu0 %vm561_vm0, %v8393_v60 }
 0xbe8   : > { %7114 = vmatmul.mubr.msk.bf16.gmra.mxu0 %vm561_vm0, %v8397_v17 }
 0xbe9   : > { %7117 = vmatprep.mubr.msk.bf16.mxu0 %vm561_vm0, %v8426_v49 }
 0xbf0   : > { %7118 = vmatmul.mubr.msk.bf16.gmra.mxu0 %vm561_vm0, %v8441_v58 }
 0xc58   : > { %v9378_v18 = vpop.f32.mrf.mxu0 }
 0xc5a   : > { %v9380_v1 = vpop.f32.mrf.mxu0 }
 0xc5c   : > { %v9382_v62 = vpop.f32.mrf.mxu0 }
 0xc5e   : > { %v9384_v9 = vpop.f32.mrf.mxu0 }
 0xc60   : > { %v9386_v6 = vpop.f32.mrf.mxu0 }
 0xc62   : > { %v9388_v60 = vpop.f32.mrf.mxu0 }
 0xc64   : > { %v9390_v33 = vpop.f32.mrf.mxu0 }
 0xc66   : > { %v9392_v17 = vpop.f32.mrf.mxu0 }
 0xc68   : > { %v9394_v49 = vpop.f32.mrf.mxu0 }
 0xc6a   : > { %v9396_v10 = vpop.f32.mrf.mxu0 }
 0xc6c   : > { %v9398_v58 = vpop.f32.mrf.mxu0 }
 0xc6e   : > { %v9400_v13 = vpop.f32.mrf.mxu0 }
 0xc70   : > { %v9402_v31 = vpop.f32.mrf.mxu0 }
 0xc72   : > { %v9404_v57 = vpop.f32.mrf.mxu0 }
 0xc74   : > { %v9406_v30 = vpop.f32.mrf.mxu0 }
 0xc75   : > { %10577 = vst [vmem:[#allocation34_spill] sm:$0xff] %v9406_v30 }
 0xc76   : > { %v9408_v7 = vpop.f32.mrf.mxu0 }
 0xc78   : > { %v7067_v48 = vpop.f32.mrf.mxu0 }
 0xc79   : > { %v3878_v11 = vmul.f32 0.35355338, %v7067_v48 }
 0xc7a   : > { %v3813_v21 = vpop.f32.mrf.mxu0 }
 0xc7b   : > { %v3876_v24 = vmul.f32 0.35355338, %v3813_v21 }
 0xc7c   : > { %v7068_v2 = vpop.f32.mrf.mxu0 }
 0xc7d   : > { %v3879_v43 = vmul.f32 0.35355338, %v7068_v2 }
 0xc7e   : > { %v3816_v51 = vpop.f32.mrf.mxu0 }
 0xc7f   : > { %v3877_v54 = vmul.f32 0.35355338, %v3816_v51  ;;  %v4121_v29 = vpack.c.bf16 %v3879_v43, %v3878_v11 }
 0xc80   : > { %v7071_v26 = vpop.f32.mrf.mxu0 }
 0xc81   : > { %v4120_v53 = vpack.c.bf16 %v3877_v54, %v3876_v24  ;;  %v3882_v15 = vmul.f32 0.35355338, %v7071_v26 }
 0xc82   : > { %v3829_v55 = vpop.f32.mrf.mxu0 }
 0xc83   : > { %7137 = vmatprep.mubr.msk.bf16.mxu1 %vm1709_vm2, %v4120_v53  ;;  %v3880_v8 = vmul.f32 0.35355338, %v3829_v55 }
 0xc84   : > { %v7072_v47 = vpop.f32.mrf.mxu0  ;;  %7138 = vmatmul.mubr.msk.bf16.vlgmr.msra.gmra.mxu1 %vm1709_vm2, %v4121_v29 }
 0xc85   : > { %v3883_v32 = vmul.f32 0.35355338, %v7072_v47 }
 0xc86   : > { %v3832_v61 = vpop.f32.mrf.mxu0 }
 0xc87   : > { %v3881_v23 = vmul.f32 0.35355338, %v3832_v61  ;;  %v4123_v52 = vpack.c.bf16 %v3883_v32, %v3882_v15 }
 0xc88   : > { %v7075_v46 = vpop.f32.mrf.mxu0 }
 0xc89   : > { %v4122_v37 = vpack.c.bf16 %v3881_v23, %v3880_v8  ;;  %v3886_v3 = vmul.f32 0.35355338, %v7075_v46 }
 0xc8a   : > { %v3845_v5 = vpop.f32.mrf.mxu0 }
 0xc8b   : > { %7141 = vmatprep.mubr.msk.bf16.mxu1 %vm1709_vm2, %v4122_v37  ;;  %v3884_v20 = vmul.f32 0.35355338, %v3845_v5 }
 0xc8c   : > { %v7076_v59 = vpop.f32.mrf.mxu0  ;;  %7142 = vmatmul.mubr.msk.bf16.gmra.mxu1 %vm1709_vm2, %v4123_v52 }
 0xc8d   : > { %v3887_v44 = vmul.f32 0.35355338, %v7076_v59 }
 0xc8e   : > { %v3848_v16 = vpop.f32.mrf.mxu0 }
 0xc8f   : > { %v3885_v22 = vmul.f32 0.35355338, %v3848_v16  ;;  %v4125_v21 = vpack.c.bf16 %v3887_v44, %v3886_v3 }
 0xc90   : > { %v7079_v50 = vpop.f32.mrf.mxu0 }
 0xc91   : > { %v4124_v48 = vpack.c.bf16 %v3885_v22, %v3884_v20  ;;  %v3890_v26 = vmul.f32 0.35355338, %v7079_v50 }
 0xc92   : > { %v3861_v2 = vpop.f32.mrf.mxu0 }
 0xc93   : > { %7145 = vmatprep.mubr.msk.bf16.mxu1 %vm1709_vm2, %v4124_v48  ;;  %v3888_v54 = vmul.f32 0.35355338, %v3861_v2 }
 0xc94   : > { %v7080_v43 = vpop.f32.mrf.mxu0  ;;  %7146 = vmatmul.mubr.msk.bf16.gmra.mxu1 %vm1709_vm2, %v4125_v21 }
 0xc95   : > { %v3891_v51 = vmul.f32 0.35355338, %v7080_v43 }
 0xc96   : > { %v3864_v24 = vpop.f32.mrf.mxu0 }
 0xc97   : > { %v3889_v11 = vmul.f32 0.35355338, %v3864_v24  ;;  %v4127_v55 = vpack.c.bf16 %v3891_v51, %v3890_v26 }
 0xc98   : > { %v7107_v53 = vpop.f32.mrf.mxu0 }
 0xc99   : > { %v4126_v29 = vpack.c.bf16 %v3889_v11, %v3888_v54 }
 0xc9a   : > { %v4057_v47 = vpop.f32.mrf.mxu0 }
 0xc9b   : > { %7149 = vmatprep.mubr.msk.bf16.mxu1 %vm1709_vm2, %v4126_v29 }
 0xc9c   : > { %v7108_v32 = vpop.f32.mrf.mxu0  ;;  %7150 = vmatmul.mubr.msk.bf16.gmra.mxu1 %vm1709_vm2, %v4127_v55 }
 0xc9d   : > { %v4467_v51 = vpack.c.bf16 %v7108_v32, %v7107_v53 }
 0xc9e   : > { %v4060_v61 = vpop.f32.mrf.mxu0 }
 0xc9f   : > { %v4466_v24 = vpack.c.bf16 %v4060_v61, %v4057_v47 }
 0xca0   : > { %v7111_v8 = vpop.f32.mrf.mxu0 }
 0xca2   : > { %v4073_v23 = vpop.f32.mrf.mxu0 }
 0xca4   : > { %v7112_v15 = vpop.f32.mrf.mxu0 }
 0xca5   : > { %v4469_v2 = vpack.c.bf16 %v7112_v15, %v7111_v8 }
 0xca6   : > { %v4076_v46 = vpop.f32.mrf.mxu0 }
 0xca7   : > { %v4468_v43 = vpack.c.bf16 %v4076_v46, %v4073_v23 }
 0xca8   : > { %v7115_v37 = vpop.f32.mrf.mxu0 }
 0xcaa   : > { %v4089_v52 = vpop.f32.mrf.mxu0 }
 0xcac   : > { %v7116_v5 = vpop.f32.mrf.mxu0 }
 0xcad   : > { %v4471_v48 = vpack.c.bf16 %v7116_v5, %v7115_v37 }
 0xcae   : > { %v4092_v59 = vpop.f32.mrf.mxu0 }
 0xcaf   : > { %v4470_v21 = vpack.c.bf16 %v4092_v59, %v4089_v52 }
 0xcb0   : > { %v7119_v44 = vpop.f32.mrf.mxu0 }
 0xcb2   : > { %v4105_v16 = vpop.f32.mrf.mxu0 }
 0xcb4   : > { %v7120_v20 = vpop.f32.mrf.mxu0 }
 0xcb5   : > { %v4473_v22 = vpack.c.bf16 %v7120_v20, %v7119_v44 }
 0xcb6   : > { %v4108_v3 = vpop.f32.mrf.mxu0 }
 0xcb7   : > { %v4472_v50 = vpack.c.bf16 %v4108_v3, %v4105_v16  ;;  %7153 = vmatprep.subr.bf16.mxu0 %v4473_v22 }
 0xcb8   : > { %7154 = vmatpush3.bf16.msra.mxu0 %v4473_v22 }
 0xcb9   : > { %7155 = vmatprep.subr.bf16.mxu0 %v4472_v50 }
 0xcbc   : > { %7156 = vmatpush3.bf16.msra.mxu0 %v4472_v50 }
 0xcbd   : > { %7157 = vmatprep.subr.bf16.mxu0 %v4471_v48 }
 0xcc0   : > { %7158 = vmatpush3.bf16.msra.mxu0 %v4471_v48 }
 0xcc1   : > { %7159 = vmatprep.subr.bf16.mxu0 %v4470_v21 }
 0xcc4   : > { %7160 = vmatpush3.bf16.msra.mxu0 %v4470_v21 }
 0xcc5   : > { %7161 = vmatprep.subr.bf16.mxu0 %v4469_v2 }
 0xcc8   : > { %7162 = vmatpush3.bf16.msra.mxu0 %v4469_v2 }
 0xcc9   : > { %7163 = vmatprep.subr.bf16.mxu0 %v4468_v43 }
 0xccc   : > { %7164 = vmatpush3.bf16.msra.mxu0 %v4468_v43 }
 0xccd   : > { %7165 = vmatprep.subr.bf16.mxu0 %v4467_v51 }
 0xcd0   : > { %7166 = vmatpush3.bf16.msra.mxu0 %v4467_v51 }
 0xcd1   : > { %7167 = vmatprep.subr.bf16.mxu0 %v4466_v24 }
 0xcd4   : > { %7168 = vmatpush3.bf16.msra.mxu0 %v4466_v24 }
 0xd44   : > { %v7139_v54 = vpop.f32.mrf.mxu1 }
 0xd45   : > { %v4227_v8 = vadd.f32 %v9156_v45, %v7139_v54 }
 0xd46   : > { %v4218_v11 = vpop.f32.mrf.mxu1 }
 0xd47   : > { %v4219_v26 = vadd.f32 %v9156_v45, %v4218_v11 }
 0xd48   : > { %v7140_v29 = vpop.f32.mrf.mxu1 }
 0xd49   : > { %4281 = vmax.xlane.f32.xlu0 %v4219_v26  ;;  %v4230_v47 = vadd.f32 %v9156_v45, %v7140_v29 }
 0xd4a   : > { %v4221_v55 = vpop.f32.mrf.mxu1 }
 0xd4b   : > { %v4222_v23 = vadd.f32 %v9156_v45, %v4221_v55 }
 0xd4c   : > { %v7143_v15 = vpop.f32.mrf.mxu1 }
 0xd4d   : > { %4283 = vmax.xlane.f32.xlu1 %v4222_v23  ;;  %4285 = vmax.xlane.f32.xlu0 %v4227_v8  ;;  %v4243_v37 = vadd.f32 %v9156_v45, %v7143_v15 }
 0xd4e   : > { %v4234_v53 = vpop.f32.mrf.mxu1 }
 0xd4f   : > { %v4235_v32 = vadd.f32 %v9156_v45, %v4234_v53 }
 0xd50   : > { %v7144_v61 = vpop.f32.mrf.mxu1 }
 0xd51   : > { %4287 = vmax.xlane.f32.xlu1 %v4230_v47  ;;  %4289 = vmax.xlane.f32.xlu0 %v4235_v32  ;;  %v4246_v44 = vadd.f32 %v9156_v45, %v7144_v61 }
 0xd52   : > { %v4237_v46 = vpop.f32.mrf.mxu1 }
 0xd53   : > { %v4238_v52 = vadd.f32 %v9156_v45, %v4237_v46 }
 0xd54   : > { %v7147_v5 = vpop.f32.mrf.mxu1 }
 0xd55   : > { %4291 = vmax.xlane.f32.xlu1 %v4238_v52  ;;  %4293 = vmax.xlane.f32.xlu0 %v4243_v37  ;;  %v9428_v3 = vadd.f32 %v9156_v45, %v7147_v5 }
 0xd56   : > { %v4250_v59 = vpop.f32.mrf.mxu1 }
 0xd57   : > { %v4251_v16 = vadd.f32 %v9156_v45, %v4250_v59 }
 0xd58   : > { %v7148_v20 = vpop.f32.mrf.mxu1 }
 0xd59   : > { %4295 = vmax.xlane.f32.xlu1 %v4246_v44  ;;  %4297 = vmax.xlane.f32.xlu0 %v4251_v16  ;;  %v9433_v2 = vadd.f32 %v9156_v45, %v7148_v20 }
 0xd5a   : > { %v4253_v22 = vpop.f32.mrf.mxu1 }
 0xd5b   : > { %v4254_v50 = vadd.f32 %v9156_v45, %v4253_v22 }
 0xd5c   : > { %v7151_v48 = vpop.f32.mrf.mxu1 }
 0xd5d   : > { %4299 = vmax.xlane.f32.xlu1 %v4254_v50  ;;  %4301 = vmax.xlane.f32.xlu0 %v9428_v3  ;;  %v9441_v54 = vadd.f32 %v9156_v45, %v7151_v48 }
 0xd5e   : > { %v4266_v21 = vpop.f32.mrf.mxu1 }
 0xd5f   : > { %v9436_v43 = vadd.f32 %v9156_v45, %v4266_v21 }
 0xd60   : > { %v7152_v51 = vpop.f32.mrf.mxu1 }
 0xd61   : > { %4303 = vmax.xlane.f32.xlu1 %v9433_v2  ;;  %4305 = vmax.xlane.f32.xlu0 %v9436_v43  ;;  %v9449_v29 = vadd.f32 %v9156_v45, %v7152_v51 }
 0xd62   : > { %v4269_v24 = vpop.f32.mrf.mxu1 }
 0xd63   : > { %v9444_v11 = vadd.f32 %v9156_v45, %v4269_v24 }
 0xd65   : > { %4307 = vmax.xlane.f32.xlu1 %v9444_v11  ;;  %4309 = vmax.xlane.f32.xlu0 %v9441_v54 }
 0xd69   : > { %4311 = vmax.xlane.f32.xlu1 %v9449_v29 }
 0xdd2   : > { %v4282_v55 = vpop.xlane.xlu0 %4281 }
 0xdd3   : > { %v4313_v15 = vsub.f32 %v4219_v26, %v4282_v55 }
 0xdd5   : > { %v4329_v53 = vmul.f32 1.442695, %v4313_v15 }
 0xdd6   : > { %v4284_v61 = vpop.xlane.xlu1 %4283  ;;  %v4286_v46 = vpop.xlane.xlu0 %4285 }
 0xdd7   : > { %7564 = vpow2.f32 %v4329_v53  ;;  %v4314_v5 = vsub.f32 %v4222_v23, %v4284_v61  ;;  %v4315_v59 = vsub.f32 %v4227_v8, %v4286_v46 }
 0xdd9   : > { %v4331_v20 = vmul.f32 1.442695, %v4314_v5  ;;  %v4333_v22 = vmul.f32 1.442695, %v4315_v59 }
 0xdda   : > { %v4288_v48 = vpop.xlane.xlu1 %4287  ;;  %v4290_v21 = vpop.xlane.xlu0 %4289 }
 0xddb   : > { %7566 = vpow2.f32 %v4331_v20  ;;  %v4316_v24 = vsub.f32 %v4230_v47, %v4288_v48  ;;  %v4317_v56 = vsub.f32 %v4235_v32, %v4290_v21 }
 0xddc   : > { %7568 = vpow2.f32 %v4333_v22 }
 0xddd   : > { %v4335_v45 = vmul.f32 1.442695, %v4316_v24  ;;  %v4337_v51 = vmul.f32 1.442695, %v4317_v56 }
 0xdde   : > { %v4292_v35 = vpop.xlane.xlu1 %4291  ;;  %v4294_v30 = vpop.xlane.xlu0 %4293 }
 0xddf   : > { %7570 = vpow2.f32 %v4335_v45  ;;  %v4318_v26 = vsub.f32 %v4238_v52, %v4292_v35  ;;  %v4319_v55 = vsub.f32 %v4243_v37, %v4294_v30 }
 0xde0   : > { %7572 = vpow2.f32 %v4337_v51 }
 0xde1   : > { %v4339_v15 = vmul.f32 1.442695, %v4318_v26  ;;  %v4341_v53 = vmul.f32 1.442695, %v4319_v55 }
 0xde2   : > { %v4296_v23 = vpop.xlane.xlu1 %4295  ;;  %v4298_v8 = vpop.xlane.xlu0 %4297 }
 0xde3   : > { %7574 = vpow2.f32 %v4339_v15  ;;  %v4320_v61 = vsub.f32 %v4246_v44, %v4296_v23  ;;  %v4321_v46 = vsub.f32 %v4251_v16, %v4298_v8 }
 0xde4   : > { %v9452_v5 = vpop.eup %7564  ;;  %7576 = vpow2.f32 %v4341_v53 }
 0xde5   : > { %v4343_v47 = vmul.f32 1.442695, %v4320_v61  ;;  %v4345_v32 = vmul.f32 1.442695, %v4321_v46  ;;  %4361 = vadd.xlane.f32.xlu0 %v9452_v5 }
 0xde6   : > { %v4300_v56 = vpop.xlane.xlu1 %4299  ;;  %v4302_v59 = vpop.xlane.xlu0 %4301 }
 0xde7   : > { %7578 = vpow2.f32 %v4343_v47  ;;  %v4322_v35 = vsub.f32 %v4254_v50, %v4300_v56  ;;  %v4323_v30 = vsub.f32 %v9428_v3, %v4302_v59 }
 0xde8   : > { %v9456_v37 = vpop.eup %7566  ;;  %7580 = vpow2.f32 %v4345_v32 }
 0xde9   : > { %v9458_v52 = vpop.eup %7568  ;;  %v4347_v44 = vmul.f32 1.442695, %v4322_v35  ;;  %v4349_v16 = vmul.f32 1.442695, %v4323_v30  ;;  %4363 = vadd.xlane.f32.xlu1 %v9456_v37 }
 0xdea   : > { %4365 = vadd.xlane.f32.xlu0 %v9458_v52  ;;  %v4304_v20 = vpop.xlane.xlu1 %4303  ;;  %v4306_v22 = vpop.xlane.xlu0 %4305 }
 0xdeb   : > { %7582 = vpow2.f32 %v4347_v44  ;;  %v4324_v48 = vsub.f32 %v9433_v2, %v4304_v20  ;;  %v4325_v50 = vsub.f32 %v9436_v43, %v4306_v22 }
 0xdec   : > { %v9464_v21 = vpop.eup %7570  ;;  %7584 = vpow2.f32 %v4349_v16 }
 0xded   : > { %v9466_v3 = vpop.eup %7572  ;;  %v4351_v24 = vmul.f32 1.442695, %v4324_v48  ;;  %v4353_v45 = vmul.f32 1.442695, %v4325_v50  ;;  %4367 = vadd.xlane.f32.xlu1 %v9464_v21 }
 0xdee   : > { %4369 = vadd.xlane.f32.xlu0 %v9466_v3  ;;  %v4308_v51 = vpop.xlane.xlu1 %4307  ;;  %v4310_v26 = vpop.xlane.xlu0 %4309 }
 0xdef   : > { %7586 = vpow2.f32 %v4351_v24  ;;  %v4326_v55 = vsub.f32 %v9444_v11, %v4308_v51  ;;  %v4327_v2 = vsub.f32 %v9441_v54, %v4310_v26 }
 0xdf0   : > { %v9472_v15 = vpop.eup %7574  ;;  %7588 = vpow2.f32 %v4353_v45 }
 0xdf1   : > { %v9474_v43 = vpop.eup %7576  ;;  %v4355_v53 = vmul.f32 1.442695, %v4326_v55  ;;  %v4357_v23 = vmul.f32 1.442695, %v4327_v2  ;;  %4371 = vadd.xlane.f32.xlu1 %v9472_v15 }
 0xdf2   : > { %4373 = vadd.xlane.f32.xlu0 %v9474_v43  ;;  %v4312_v8 = vpop.xlane.xlu1 %4311 }
 0xdf3   : > { %7590 = vpow2.f32 %v4355_v53  ;;  %v4328_v61 = vsub.f32 %v9449_v29, %v4312_v8 }
 0xdf4   : > { %v9479_v46 = vpop.eup %7578  ;;  %7592 = vpow2.f32 %v4357_v23 }
 0xdf5   : > { %v9481_v11 = vpop.eup %7580  ;;  %v4359_v54 = vmul.f32 1.442695, %v4328_v61  ;;  %4375 = vadd.xlane.f32.xlu1 %v9479_v46 }
 0xdf6   : > { %4377 = vadd.xlane.f32.xlu0 %v9481_v11 }
 0xdf7   : > { %7594 = vpow2.f32 %v4359_v54 }
 0xdf8   : > { %v9485_v47 = vpop.eup %7582 }
 0xdf9   : > { %v9487_v32 = vpop.eup %7584  ;;  %4379 = vadd.xlane.f32.xlu1 %v9485_v47 }
 0xdfa   : > { %4381 = vadd.xlane.f32.xlu0 %v9487_v32 }
 0xdfc   : > { %v9491_v29 = vpop.eup %7586 }
 0xdfd   : > { %v9493_v56 = vpop.eup %7588  ;;  %4383 = vadd.xlane.f32.xlu1 %v9491_v29 }
 0xdfe   : > { %4385 = vadd.xlane.f32.xlu0 %v9493_v56 }
 0xe00   : > { %v9497_v59 = vpop.eup %7590 }
 0xe01   : > { %v9499_v35 = vpop.eup %7592  ;;  %4387 = vadd.xlane.f32.xlu1 %v9497_v59 }
 0xe02   : > { %4389 = vadd.xlane.f32.xlu0 %v9499_v35 }
 0xe04   : > { %v9503_v30 = vpop.eup %7594 }
 0xe05   : > { %4391 = vadd.xlane.f32.xlu1 %v9503_v30 }
 0xe16   : > { %4589 = vrot.lane.b32.xlu1 %v9102_v36, %s7733_s20 }
 0xe18   : > { %4587 = vrot.lane.b32.xlu0 %v9098_v42, %s7733_s20 }
 0xe1a   : > { %4591 = vrot.lane.b32.xlu1 %v9096_v4, %s7733_s20  ;;  %v10578_v4 = vld [vmem:[#allocation34_spill] sm:$0xff] }
 0xe1c   : > { %4651 = vrot.lane.b32.xlu0 %v9380_v1, %s7734_s21 }
 0xe1e   : > { %4593 = vrot.lane.b32.xlu1 %v9100_v28, %s7733_s20 }
 0xe20   : > { %4655 = vrot.lane.b32.xlu0 %v9378_v18, %s7734_s21 }
 0xe22   : > { %4653 = vrot.lane.b32.xlu1 %v9384_v9, %s7734_s21 }
 0xe24   : > { %4595 = vrot.lane.b32.xlu0 %v9106_v19, %s7733_s20 }
 0xe26   : > { %4657 = vrot.lane.b32.xlu1 %v9382_v62, %s7734_s21 }
 0xe28   : > { %4599 = vrot.lane.b32.xlu0 %v9104_v12, %s7733_s20 }
 0xe2a   : > { %4597 = vrot.lane.b32.xlu1 %v9110_v27, %s7733_s20 }
 0xe2c   : > { %4659 = vrot.lane.b32.xlu0 %v9388_v60, %s7734_s21 }
 0xe2e   : > { %4601 = vrot.lane.b32.xlu1 %v9108_v63, %s7733_s20 }
 0xe30   : > { %4663 = vrot.lane.b32.xlu0 %v9386_v6, %s7734_s21 }
 0xe32   : > { %4661 = vrot.lane.b32.xlu1 %v9392_v17, %s7734_s21 }
 0xe34   : > { %4603 = vrot.lane.b32.xlu0 %v9114_v14, %s7733_s20 }
 0xe36   : > { %4665 = vrot.lane.b32.xlu1 %v9390_v33, %s7734_s21 }
 0xe38   : > { %4607 = vrot.lane.b32.xlu0 %v9112_v38, %s7733_s20 }
 0xe3a   : > { %4605 = vrot.lane.b32.xlu1 %v9118_v39, %s7733_s20 }
 0xe3c   : > { %4667 = vrot.lane.b32.xlu0 %v9396_v10, %s7734_s21 }
 0xe3e   : > { %4609 = vrot.lane.b32.xlu1 %v9116_v40, %s7733_s20 }
 0xe40   : > { %4671 = vrot.lane.b32.xlu0 %v9394_v49, %s7734_s21 }
 0xe42   : > { %4669 = vrot.lane.b32.xlu1 %v9400_v13, %s7734_s21 }
 0xe44   : > { %4611 = vrot.lane.b32.xlu0 %v9122_v0, %s7733_s20 }
 0xe46   : > { %4673 = vrot.lane.b32.xlu1 %v9398_v58, %s7734_s21 }
 0xe48   : > { %4615 = vrot.lane.b32.xlu0 %v9120_v41, %s7733_s20 }
 0xe4a   : > { %4613 = vrot.lane.b32.xlu1 %v9126_v34, %s7733_s20 }
 0xe4c   : > { %4675 = vrot.lane.b32.xlu0 %v9404_v57, %s7734_s21 }
 0xe4e   : > { %4617 = vrot.lane.b32.xlu1 %v9124_v25, %s7733_s20 }
 0xe50   : > { %4679 = vrot.lane.b32.xlu0 %v9402_v31, %s7734_s21 }
 0xe52   : > { %4677 = vrot.lane.b32.xlu1 %v9408_v7, %s7734_s21 }
 0xe56   : > { %4681 = vrot.lane.b32.xlu1 %v10578_v4, %s7734_s21 }
 0xe6e   : > { %v4362_v42 = vpop.xlane.xlu0 %4361 }
 0xe6f   : > { %7596 = vrcp.f32 %v4362_v42 }
 0xe72   : > { %v4364_v28 = vpop.xlane.xlu1 %4363 }
 0xe73   : > { %7598 = vrcp.f32 %v4364_v28  ;;  %v4366_v36 = vpop.xlane.xlu0 %4365 }
 0xe74   : > { %7600 = vrcp.f32 %v4366_v36 }
 0xe76   : > { %v4368_v12 = vpop.xlane.xlu1 %4367 }
 0xe77   : > { %7602 = vrcp.f32 %v4368_v12  ;;  %v4370_v19 = vpop.xlane.xlu0 %4369 }
 0xe78   : > { %7604 = vrcp.f32 %v4370_v19 }
 0xe7a   : > { %v4372_v63 = vpop.xlane.xlu1 %4371 }
 0xe7b   : > { %7606 = vrcp.f32 %v4372_v63  ;;  %v4374_v27 = vpop.xlane.xlu0 %4373 }
 0xe7c   : > { %v7597_v38 = vpop.eup %7596  ;;  %7608 = vrcp.f32 %v4374_v27 }
 0xe7d   : > { %v4425_v14 = vmul.f32 %v7597_v38, %v9452_v5 }
 0xe7e   : > { %v4376_v40 = vpop.xlane.xlu1 %4375 }
 0xe7f   : > { %7610 = vrcp.f32 %v4376_v40  ;;  %v4378_v39 = vpop.xlane.xlu0 %4377  ;;  %6288 = vst [vmem:[%s8736_s24 + $0x180] sm:$0xff] %v4425_v14 }
 0xe80   : > { %v7599_v41 = vpop.eup %7598  ;;  %7612 = vrcp.f32 %v4378_v39 }
 0xe81   : > { %v7601_v0 = vpop.eup %7600  ;;  %v4426_v25 = vmul.f32 %v7599_v41, %v9456_v37 }
 0xe82   : > { %v4427_v34 = vmul.f32 %v7601_v0, %v9458_v52  ;;  %v4380_v18 = vpop.xlane.xlu1 %4379 }
 0xe83   : > { %7614 = vrcp.f32 %v4380_v18  ;;  %v4382_v1 = vpop.xlane.xlu0 %4381  ;;  %6289 = vst [vmem:[%s8736_s24 + $0x188] sm:$0xff] %v4426_v25  ;;  %v4458_v62 = vpack.c.bf16 %v4426_v25, %v4425_v14 }
 0xe84   : > { %v7603_v9 = vpop.eup %7602  ;;  %6290 = vst [vmem:[%s8736_s24 + $0x190] sm:$0xff] %v4427_v34  ;;  %7616 = vrcp.f32 %v4382_v1 }
 0xe85   : > { %v7605_v6 = vpop.eup %7604  ;;  %v4428_v60 = vmul.f32 %v7603_v9, %v9464_v21  ;;  %7169 = vmatprep.mubr.bf16.mxu0 %v4458_v62 }
 0xe86   : > { %v4384_v33 = vpop.xlane.xlu1 %4383  ;;  %v4429_v17 = vmul.f32 %v7605_v6, %v9466_v3 }
 0xe87   : > { %6291 = vst [vmem:[%s8736_s24 + $0x198] sm:$0xff] %v4428_v60  ;;  %7618 = vrcp.f32 %v4384_v33  ;;  %v4386_v49 = vpop.xlane.xlu0 %4385  ;;  %v4459_v10 = vpack.c.bf16 %v4428_v60, %v4427_v34 }
 0xe88   : > { %v7607_v58 = vpop.eup %7606  ;;  %7620 = vrcp.f32 %v4386_v49  ;;  %6292 = vst [vmem:[%s8736_s24 + $0x1a0] sm:$0xff] %v4429_v17 }
 0xe89   : > { %v7609_v13 = vpop.eup %7608  ;;  %7170 = vmatmul.mubr.bf16.vlgmr.msra.gmra.mxu0 %v4459_v10  ;;  %v4430_v31 = vmul.f32 %v7607_v58, %v9472_v15 }
 0xe8a   : > { %v4388_v57 = vpop.xlane.xlu1 %4387  ;;  %v4431_v7 = vmul.f32 %v7609_v13, %v9474_v43 }
 0xe8b   : > { %7622 = vrcp.f32 %v4388_v57  ;;  %v4390_v5 = vpop.xlane.xlu0 %4389  ;;  %6293 = vst [vmem:[%s8736_s24 + $0x1a8] sm:$0xff] %v4430_v31  ;;  %v4460_v37 = vpack.c.bf16 %v4430_v31, %v4429_v17 }
 0xe8c   : > { %v7611_v52 = vpop.eup %7610  ;;  %7624 = vrcp.f32 %v4390_v5  ;;  %6294 = vst [vmem:[%s8736_s24 + $0x1b0] sm:$0xff] %v4431_v7 }
 0xe8d   : > { %v7613_v44 = vpop.eup %7612  ;;  %7173 = vmatprep.mubr.bf16.mxu0 %v4460_v37  ;;  %v4432_v16 = vmul.f32 %v7611_v52, %v9479_v46 }
 0xe8e   : > { %v4392_v20 = vpop.xlane.xlu1 %4391  ;;  %v4433_v22 = vmul.f32 %v7613_v44, %v9481_v11 }
 0xe8f   : > { %7626 = vrcp.f32 %v4392_v20  ;;  %6295 = vst [vmem:[%s8736_s24 + $0x1b8] sm:$0xff] %v4432_v16  ;;  %v4461_v48 = vpack.c.bf16 %v4432_v16, %v4431_v7  ;;  %v4588_v14 = vpop.permute.xlu0 %4587 }
 0xe90   : > { %v7615_v50 = vpop.eup %7614  ;;  %6296 = vst [vmem:[%s8736_s24 + $0x1c0] sm:$0xff] %v4433_v22 }
 0xe91   : > { %v7617_v21 = vpop.eup %7616  ;;  %7174 = vmatmul.mubr.bf16.gmra.mxu0 %v4461_v48  ;;  %v4434_v3 = vmul.f32 %v7615_v50, %v9485_v47 }
 0xe92   : > { %v4435_v24 = vmul.f32 %v7617_v21, %v9487_v32  ;;  %v9595_v36 = vpop.permute.xlu1 %4589  ;;  %v10579_v21 = vld [vmem:[#allocation18_spill] sm:$0xff] }
 0xe93   : > { %6297 = vst [vmem:[%s8736_s24 + $0x1c8] sm:$0xff] %v4434_v3  ;;  %v4462_v45 = vpack.c.bf16 %v4434_v3, %v4433_v22  ;;  %v4652_v0 = vpop.permute.xlu0 %4651 }
 0xe94   : > { %v7619_v51 = vpop.eup %7618  ;;  %6298 = vst [vmem:[%s8736_s24 + $0x1d0] sm:$0xff] %v4435_v24 }
 0xe95   : > { %v7621_v26 = vpop.eup %7620  ;;  %7177 = vmatprep.mubr.bf16.mxu0 %v4462_v45  ;;  %v4436_v55 = vmul.f32 %v7619_v51, %v9491_v29 }
 0xe96   : > { %v4437_v2 = vmul.f32 %v7621_v26, %v9493_v56  ;;  %v4592_v27 = vpop.permute.xlu1 %4591 }
 0xe97   : > { %6299 = vst [vmem:[%s8736_s24 + $0x1d8] sm:$0xff] %v4436_v55  ;;  %v4463_v15 = vpack.c.bf16 %v4436_v55, %v4435_v24  ;;  %v4656_v34 = vpop.permute.xlu0 %4655  ;;  %v4765_v3 = vsel %vm1709_vm2, %v10579_v21, %v4592_v27  ;;  %v10580_v55 = vld [vmem:[#allocation5_spill] sm:$0xff]  ;;  %v10586_v27 = vld [vmem:[#allocation4_spill] sm:$0xff] }
 0xe98   : > { %v7623_v43 = vpop.eup %7622  ;;  %6300 = vst [vmem:[%s8736_s24 + $0x1e0] sm:$0xff] %v4437_v2  ;;  %v4782_v24 = vsel %vm4779_vm4, %v4765_v3, %v4656_v34  ;;  %v10588_v34 = vld [vmem:[#allocation24_spill] sm:$0xff] }
 0xe99   : > { %v7625_v53 = vpop.eup %7624  ;;  %7178 = vmatmul.mubr.bf16.gmra.mxu0 %v4463_v15  ;;  %v4438_v23 = vmul.f32 %v7623_v43, %v9497_v59  ;;  %v10581_v15 = vld [vmem:[#allocation19_spill] sm:$0xff] }
 0xe9a   : > { %v4439_v8 = vmul.f32 %v7625_v53, %v9499_v35  ;;  %v4594_v39 = vpop.permute.xlu1 %4593  ;;  %v4763_v43 = vsel %vm1709_vm2, %v10581_v15, %v4588_v14  ;;  %v10582_v53 = vld [vmem:[#allocation20_spill] sm:$0xff] }
 0xe9b   : > { %6301 = vst [vmem:[%s8736_s24 + $0x1e8] sm:$0xff] %v4438_v23  ;;  %v4464_v61 = vpack.c.bf16 %v4438_v23, %v4437_v2  ;;  %v9604_v1 = vpop.permute.xlu0 %4595  ;;  %v4766_v23 = vsel %vm1709_vm2, %v10582_v53, %v4594_v39 }
 0xe9c   : > { %v7627_v46 = vpop.eup %7626  ;;  %6302 = vst [vmem:[%s8736_s24 + $0x1f0] sm:$0xff] %v4439_v8 }
 0xe9d   : > { %7181 = vmatprep.mubr.bf16.mxu0 %v4464_v61  ;;  %v4440_v11 = vmul.f32 %v7627_v46, %v9503_v30 }
 0xe9e   : > { %v4654_v25 = vpop.permute.xlu1 %4653 }
 0xe9f   : > { %6303 = vst [vmem:[%s8736_s24 + $0x1f8] sm:$0xff] %v4440_v11  ;;  %v4465_v54 = vpack.c.bf16 %v4440_v11, %v4439_v8  ;;  %v4600_v9 = vpop.permute.xlu0 %4599  ;;  %v4780_v8 = vsel %vm4779_vm4, %v4763_v43, %v4652_v0  ;;  %v10587_v0 = vld [vmem:[#allocation22_spill] sm:$0xff]  ;;  %s10385_s24 = scalar_lea.vmem %s10524_s14, %s6350_s19 }
 0xea1   : > { %7182 = vmatmul.mubr.bf16.gmra.mxu0 %v4465_v54 }
 0xea2   : > { %v4658_v18 = vpop.permute.xlu1 %4657 }
 0xea3   : > { %v9608_v60 = vpop.permute.xlu0 %4659  ;;  %v4783_v61 = vsel %vm4779_vm4, %v4766_v23, %v4658_v18 }
 0xea6   : > { %v9606_v62 = vpop.permute.xlu1 %4597 }
 0xea7   : > { %v4664_v17 = vpop.permute.xlu0 %4663 }
 0xeaa   : > { %v4602_v6 = vpop.permute.xlu1 %4601 }
 0xeab   : > { %v9612_v10 = vpop.permute.xlu0 %4603  ;;  %v4770_v18 = vsel %vm1709_vm2, %v10588_v34, %v4602_v6  ;;  %v10589_v6 = vld [vmem:[#allocation23_spill] sm:$0xff] }
 0xeae   : > { %v9610_v33 = vpop.permute.xlu1 %4661 }
 0xeaf   : > { %v9616_v13 = vpop.permute.xlu0 %4607 }
 0xeb2   : > { %v4666_v49 = vpop.permute.xlu1 %4665 }
 0xeb3   : > { %v9620_v57 = vpop.permute.xlu0 %4667  ;;  %v4787_v3 = vsel %vm4779_vm4, %v4770_v18, %v4666_v49  ;;  %v10590_v49 = vld [vmem:[#allocation25_spill] sm:$0xff] }
 0xeb4   : > { %v4768_v43 = vsel %vm1709_vm2, %v10590_v49, %v9606_v62  ;;  %v10600_v49 = vld [vmem:[#allocation13_spill] sm:$0xff] }
 0xeb6   : > { %v9614_v58 = vpop.permute.xlu1 %4605 }
 0xeb7   : > { %v9624_v5 = vpop.permute.xlu0 %4671 }
 0xeba   : > { %v9618_v31 = vpop.permute.xlu1 %4609 }
 0xebb   : > { %v9628_v52 = vpop.permute.xlu0 %4611 }
 0xebe   : > { %v9622_v7 = vpop.permute.xlu1 %4669 }
 0xebf   : > { %v9632_v16 = vpop.permute.xlu0 %4615 }
 0xec2   : > { %v9626_v37 = vpop.permute.xlu1 %4673 }
 0xec3   : > { %v9636_v22 = vpop.permute.xlu0 %4675 }
 0xec6   : > { %v9630_v44 = vpop.permute.xlu1 %4613 }
 0xec7   : > { %v9640_v50 = vpop.permute.xlu0 %4679 }
 0xeca   : > { %v9634_v20 = vpop.permute.xlu1 %4617 }
 0xece   : > { %v9638_v48 = vpop.permute.xlu1 %4677 }
 0xed2   : > { %v9645_v45 = vpop.permute.xlu1 %4681 }
 0xf49   : > { %v7171_v47 = vpop.f32.mrf.mxu0 }
 0xf4a   : > { %4719 = vrot.lane.b32.xlu0 %v7171_v47, %s7735_s22 }
 0xf4b   : > { %v4508_v32 = vpop.f32.mrf.mxu0 }
 0xf4d   : > { %v7172_v29 = vpop.f32.mrf.mxu0 }
 0xf4e   : > { %4715 = vrot.lane.b32.xlu0 %v4508_v32, %s7735_s22  ;;  %4721 = vrot.lane.b32.xlu1 %v7172_v29, %s7735_s22  ;;  %v10583_v29 = vld [vmem:[#allocation3_spill] sm:$0xff] }
 0xf4f   : > { %v4511_v56 = vpop.f32.mrf.mxu0 }
 0xf51   : > { %v7175_v59 = vpop.f32.mrf.mxu0 }
 0xf52   : > { %4717 = vrot.lane.b32.xlu1 %v4511_v56, %s7735_s22  ;;  %4727 = vrot.lane.b32.xlu0 %v7175_v59, %s7735_s22  ;;  %v10584_v59 = vld [vmem:[#allocation21_spill] sm:$0xff] }
 0xf53   : > { %v4524_v35 = vpop.f32.mrf.mxu0 }
 0xf55   : > { %v7176_v30 = vpop.f32.mrf.mxu0 }
 0xf56   : > { %4723 = vrot.lane.b32.xlu0 %v4524_v35, %s7735_s22  ;;  %4729 = vrot.lane.b32.xlu1 %v7176_v30, %s7735_s22  ;;  %v4764_v35 = vsel %vm1709_vm2, %v10584_v59, %v9595_v36 }
 0xf57   : > { %v4527_v4 = vpop.f32.mrf.mxu0  ;;  %v4781_v30 = vsel %vm4779_vm4, %v4764_v35, %v4654_v25  ;;  %v4769_v25 = vsel %vm1709_vm2, %v10587_v0, %v4600_v9 }
 0xf58   : > { %v4786_v21 = vsel %vm4779_vm4, %v4769_v25, %v4664_v17  ;;  %v4767_v17 = vsel %vm1709_vm2, %v10589_v6, %v9604_v1  ;;  %v10599_v6 = vld [vmem:[#allocation10_spill] sm:$0xff] }
 0xf59   : > { %v7179_v42 = vpop.f32.mrf.mxu0 }
 0xf5a   : > { %4725 = vrot.lane.b32.xlu1 %v4527_v4, %s7735_s22  ;;  %4735 = vrot.lane.b32.xlu0 %v7179_v42, %s7735_s22  ;;  %v10585_v4 = vld [vmem:[#allocation2_spill] sm:$0xff] }
 0xf5b   : > { %v4540_v28 = vpop.f32.mrf.mxu0 }
 0xf5d   : > { %v7180_v12 = vpop.f32.mrf.mxu0 }
 0xf5e   : > { %4731 = vrot.lane.b32.xlu0 %v4540_v28, %s7735_s22  ;;  %4737 = vrot.lane.b32.xlu1 %v7180_v12, %s7735_s22 }
 0xf5f   : > { %v4543_v19 = vpop.f32.mrf.mxu0 }
 0xf61   : > { %v7183_v63 = vpop.f32.mrf.mxu0 }
 0xf62   : > { %4733 = vrot.lane.b32.xlu1 %v4543_v19, %s7735_s22  ;;  %4743 = vrot.lane.b32.xlu0 %v7183_v63, %s7735_s22 }
 0xf63   : > { %v4556_v38 = vpop.f32.mrf.mxu0 }
 0xf65   : > { %v7184_v40 = vpop.f32.mrf.mxu0 }
 0xf66   : > { %4739 = vrot.lane.b32.xlu0 %v4556_v38, %s7735_s22  ;;  %4745 = vrot.lane.b32.xlu1 %v7184_v40, %s7735_s22 }
 0xf67   : > { %v4559_v41 = vpop.f32.mrf.mxu0 }
 0xf6a   : > { %4741 = vrot.lane.b32.xlu1 %v4559_v41, %s7735_s22 }
 0xfbc   : > { %v4720_v51 = vpop.permute.xlu0 %4719 }
 0xfbd   : > { %v4799_v26 = vsel %vm4796_vm3, %v4782_v24, %v4720_v51 }
 0xfbe   : > { %v9649_v2 = vadd.f32 %v4799_v26, %v10580_v55 }
 0xfc0   : > { %v4722_v46 = vpop.permute.xlu1 %4721  ;;  %v4716_v11 = vpop.permute.xlu0 %4715  ;;  %v4835_v54 = vsel %vm561_vm0, %v9649_v2, 0.0  ;;  %v4895_v19 = vmul.f32 %v9649_v2, %v9649_v2 }
 0xfc1   : > { %v4800_v47 = vsel %vm4796_vm3, %v4783_v61, %v4722_v46  ;;  %v4797_v32 = vsel %vm4796_vm3, %v4780_v8, %v4716_v11  ;;  %4836 = vadd.xlane.f32.xlu0 %v4835_v54  ;;  %v4784_v8 = vsel %vm4779_vm4, %v4767_v17, %v9608_v60  ;;  %v4785_v61 = vsel %vm4779_vm4, %v4768_v43, %v9610_v33  ;;  %v10591_v46 = vld [vmem:[#allocation6_spill] sm:$0xff]  ;;  %v10592_v54 = vld [vmem:[#allocation9_spill] sm:$0xff]  ;;  %v10593_v60 = vld [vmem:[#allocation8_spill] sm:$0xff] }
 0xfc2   : > { %v9662_v56 = vadd.f32 %v4797_v32, %v10583_v29  ;;  %v9669_v42 = vadd.f32 %v4800_v47, %v10585_v4  ;;  %v4915_v39 = vsel %vm561_vm0, %v4895_v19, 0.0  ;;  %v10594_v33 = vld [vmem:[#allocation7_spill] sm:$0xff] }
 0xfc4   : > { %v4718_v28 = vpop.permute.xlu1 %4717  ;;  %v4829_v12 = vsel %vm561_vm0, %v9662_v56, 0.0  ;;  %v4728_v14 = vpop.permute.xlu0 %4727  ;;  %v4896_v41 = vmul.f32 %v9669_v42, %v9669_v42  ;;  %v4838_v51 = vsel %vm561_vm0, %v9669_v42, 0.0  ;;  %v4893_v55 = vmul.f32 %v9662_v56, %v9662_v56 }
 0xfc5   : > { %v4798_v63 = vsel %vm4796_vm3, %v4781_v30, %v4718_v28  ;;  %4830 = vadd.xlane.f32.xlu0 %v4829_v12  ;;  %v4803_v9 = vsel %vm4796_vm3, %v4786_v21, %v4728_v14 }
 0xfc6   : > { %v9677_v38 = vadd.f32 %v4798_v63, %v10586_v27  ;;  %v4918_v24 = vsel %vm561_vm0, %v4896_v41, 0.0  ;;  %v9710_v11 = vadd.f32 %v4803_v9, %v10591_v46  ;;  %v4909_v32 = vsel %vm561_vm0, %v4893_v55, 0.0 }
 0xfc8   : > { %v4730_v36 = vpop.permute.xlu1 %4729  ;;  %v4832_v40 = vsel %vm561_vm0, %v9677_v38, 0.0  ;;  %v4894_v26 = vmul.f32 %v9677_v38, %v9677_v38  ;;  %v4724_v53 = vpop.permute.xlu0 %4723  ;;  %v4847_v4 = vsel %vm561_vm0, %v9710_v11, 0.0  ;;  %v4899_v14 = vmul.f32 %v9710_v11, %v9710_v11 }
 0xfc9   : > { %4833 = vadd.xlane.f32.xlu1 %v4832_v40  ;;  %4916 = vadd.xlane.f32.xlu0 %v4915_v39  ;;  %v4804_v15 = vsel %vm4796_vm3, %v4787_v3, %v4730_v36  ;;  %v4801_v62 = vsel %vm4796_vm3, %v4784_v8, %v4724_v53  ;;  %v10595_v36 = vld [vmem:[#allocation26_spill] sm:$0xff]  ;;  %v10596_v39 = vld [vmem:[#allocation28_spill] sm:$0xff] }
 0xfca   : > { %v9713_v47 = vadd.f32 %v4804_v15, %v10592_v54  ;;  %v4912_v1 = vsel %vm561_vm0, %v4894_v26, 0.0  ;;  %v9720_v59 = vadd.f32 %v4801_v62, %v10593_v60  ;;  %v4773_v40 = vsel %vm1709_vm2, %v10595_v36, %v9616_v13 }
 0xfcb   : > { %v4774_v41 = vsel %vm1709_vm2, %v10596_v39, %v9618_v31  ;;  %v4790_v0 = vsel %vm4779_vm4, %v4773_v40, %v9624_v5  ;;  %v4927_v18 = vsel %vm561_vm0, %v4899_v14, 0.0  ;;  %v10597_v5 = vld [vmem:[#allocation27_spill] sm:$0xff]  ;;  %v10606_v39 = vld [vmem:[#allocation33_spill] sm:$0xff] }
 0xfcc   : > { %v4726_v23 = vpop.permute.xlu1 %4725  ;;  %v4850_v30 = vsel %vm561_vm0, %v9713_v47, 0.0  ;;  %v4736_v28 = vpop.permute.xlu0 %4735  ;;  %v4841_v63 = vsel %vm561_vm0, %v9720_v59, 0.0  ;;  %v4900_v27 = vmul.f32 %v9713_v47, %v9713_v47  ;;  %v4791_v25 = vsel %vm4779_vm4, %v4774_v41, %v9626_v37 }
 0xfcd   : > { %4919 = vadd.xlane.f32.xlu1 %v4918_v24  ;;  %4839 = vadd.xlane.f32.xlu0 %v4838_v51  ;;  %v4802_v29 = vsel %vm4796_vm3, %v4785_v61, %v4726_v23  ;;  %v4897_v13 = vmul.f32 %v9720_v59, %v9720_v59  ;;  %v4807_v3 = vsel %vm4796_vm3, %v4790_v0, %v4736_v28  ;;  %v10598_v24 = vld [vmem:[#allocation29_spill] sm:$0xff]  ;;  %v10604_v28 = vld [vmem:[#allocation32_spill] sm:$0xff] }
 0xfce   : > { %v9723_v35 = vadd.f32 %v4802_v29, %v10594_v33  ;;  %v4930_v34 = vsel %vm561_vm0, %v4900_v27, 0.0  ;;  %v4771_v37 = vsel %vm1709_vm2, %v10597_v5, %v9612_v10  ;;  %v4772_v51 = vsel %vm1709_vm2, %v10598_v24, %v9614_v58 }
 0xfcf   : > { %v4788_v9 = vsel %vm4779_vm4, %v4771_v37, %v9620_v57  ;;  %v4789_v15 = vsel %vm4779_vm4, %v4772_v51, %v9622_v7  ;;  %v9766_v17 = vadd.f32 %v4807_v3, %v10599_v6  ;;  %v4921_v53 = vsel %vm561_vm0, %v4897_v13, 0.0  ;;  %v10601_v57 = vld [vmem:[#allocation12_spill] sm:$0xff]  ;;  %v10602_v7 = vld [vmem:[#allocation11_spill] sm:$0xff] }
 0xfd0   : > { %v4738_v12 = vpop.permute.xlu1 %4737  ;;  %v4844_v19 = vsel %vm561_vm0, %v9723_v35, 0.0  ;;  %v4898_v21 = vmul.f32 %v9723_v35, %v9723_v35  ;;  %v4732_v26 = vpop.permute.xlu0 %4731  ;;  %v4776_v41 = vsel %vm1709_vm2, %v10606_v39, %v9630_v44  ;;  %v10608_v3 = vld [vmem:[#allocation16_spill] sm:$0xff] }
 0xfd1   : > { %4913 = vadd.xlane.f32.xlu1 %v4912_v1  ;;  %4910 = vadd.xlane.f32.xlu0 %v4909_v32  ;;  %v4808_v31 = vsel %vm4796_vm3, %v4791_v25, %v4738_v12  ;;  %v4805_v58 = vsel %vm4796_vm3, %v4788_v9, %v4732_v26  ;;  %v4859_v54 = vsel %vm561_vm0, %v9766_v17, 0.0  ;;  %v4903_v33 = vmul.f32 %v9766_v17, %v9766_v17  ;;  %v7302_v9 = vld [vmem:[%s10517_s7 + $0x18] sm:$0xff]  }
 0xfd2   : > { %v9769_v43 = vadd.f32 %v4808_v31, %v10600_v49  ;;  %v4924_v10 = vsel %vm561_vm0, %v4898_v21, 0.0  ;;  %v9776_v8 = vadd.f32 %v4805_v58, %v10601_v57  ;;  %v4778_v12 = vsel %vm1709_vm2, %v10604_v28, %v9634_v20  ;;  %v10607_v21 = vld [vmem:[#allocation17_spill] sm:$0xff]  ;;  %7185 = vmatprep.subr.bf16.mxu0 %v7302_v9 }
 0xfd3   : > { %v4939_v14 = vsel %vm561_vm0, %v4903_v33, 0.0  ;;  %7186 = vmatpush3.bf16.msra.mxu0 %v7302_v9 }
 0xfd4   : > { %v4734_v55 = vpop.permute.xlu1 %4733  ;;  %v4862_v46 = vsel %vm561_vm0, %v9769_v43, 0.0  ;;  %v4744_v1 = vpop.permute.xlu0 %4743  ;;  %v4853_v29 = vsel %vm561_vm0, %v9776_v8, 0.0  ;;  %v4904_v60 = vmul.f32 %v9769_v43, %v9769_v43 }
 0xfd5   : > { %4851 = vadd.xlane.f32.xlu1 %v4850_v30  ;;  %4848 = vadd.xlane.f32.xlu0 %v4847_v4  ;;  %v4806_v23 = vsel %vm4796_vm3, %v4789_v15, %v4734_v55  ;;  %v10603_v30 = vld [vmem:[#allocation30_spill] sm:$0xff]  ;;  %v7303_v15 = vld [vmem:[%s10517_s7 + $0x10] sm:$0xff]  }
 0xfd6   : > { %v9779_v61 = vadd.f32 %v4806_v23, %v10602_v7  ;;  %v4777_v4 = vsel %vm1709_vm2, %v10603_v30, %v9632_v16  ;;  %v4942_v27 = vsel %vm561_vm0, %v4904_v60, 0.0  ;;  %v4901_v16 = vmul.f32 %v9776_v8, %v9776_v8  ;;  %7187 = vmatprep.subr.bf16.mxu0 %v7303_v15 }
 0xfd7   : > { %7188 = vmatpush3.bf16.msra.mxu0 %v7303_v15 }
 0xfd8   : > { %v4746_v32 = vpop.permute.xlu1 %4745  ;;  %v4856_v62 = vsel %vm561_vm0, %v9779_v61, 0.0  ;;  %v4902_v36 = vmul.f32 %v9779_v61, %v9779_v61  ;;  %v4740_v0 = vpop.permute.xlu0 %4739  ;;  %v4933_v5 = vsel %vm561_vm0, %v4901_v16, 0.0 }
 0xfd9   : > { %4845 = vadd.xlane.f32.xlu1 %v4844_v19  ;;  %4842 = vadd.xlane.f32.xlu0 %v4841_v63  ;;  %v4794_v19 = vsel %vm4779_vm4, %v4777_v4, %v9640_v50  ;;  %v4795_v63 = vsel %vm4779_vm4, %v4778_v12, %v9645_v45  ;;  %v10605_v50 = vld [vmem:[#allocation31_spill] sm:$0xff] }
 0xfda   : > { %v4811_v40 = vsel %vm4796_vm3, %v4794_v19, %v4744_v1  ;;  %v4812_v20 = vsel %vm4796_vm3, %v4795_v63, %v4746_v32  ;;  %v4775_v45 = vsel %vm1709_vm2, %v10605_v50, %v9628_v52  ;;  %v4936_v52 = vsel %vm561_vm0, %v4902_v36, 0.0 }
 0xfdb   : > { %v9822_v13 = vadd.f32 %v4811_v40, %v10607_v21  ;;  %v9825_v31 = vadd.f32 %v4812_v20, %v10608_v3 }
 0xfdc   : > { %v4742_v25 = vpop.permute.xlu1 %4741 }
 0xfdd   : > { %4931 = vadd.xlane.f32.xlu1 %v4930_v34  ;;  %4928 = vadd.xlane.f32.xlu0 %v4927_v18  ;;  %v4792_v34 = vsel %vm4779_vm4, %v4775_v45, %v9636_v22  ;;  %v4793_v18 = vsel %vm4779_vm4, %v4776_v41, %v9638_v48  ;;  %v10609_v22 = vld [vmem:[#allocation15_spill] sm:$0xff]  ;;  %v10610_v48 = vld [vmem:[#allocation14_spill] sm:$0xff]  ;;  %v4874_v26 = vsel %vm561_vm0, %v9825_v31, 0.0  ;;  %v4871_v55 = vsel %vm561_vm0, %v9822_v13, 0.0 }
 0xfde   : > { %v4809_v44 = vsel %vm4796_vm3, %v4792_v34, %v4740_v0  ;;  %v4810_v37 = vsel %vm4796_vm3, %v4793_v18, %v4742_v25  ;;  %v4908_v57 = vmul.f32 %v9825_v31, %v9825_v31  ;;  %v4907_v7 = vmul.f32 %v9822_v13, %v9822_v13 }
 0xfdf   : > { %v9832_v24 = vadd.f32 %v4809_v44, %v10609_v22  ;;  %v9835_v51 = vadd.f32 %v4810_v37, %v10610_v48 }
 0xfe1   : > { %4925 = vadd.xlane.f32.xlu1 %v4924_v10  ;;  %4922 = vadd.xlane.f32.xlu0 %v4921_v53  ;;  %v4868_v6 = vsel %vm561_vm0, %v9835_v51, 0.0  ;;  %v4865_v49 = vsel %vm561_vm0, %v9832_v24, 0.0  ;;  %v4906_v10 = vmul.f32 %v9835_v51, %v9835_v51  ;;  %v4905_v53 = vmul.f32 %v9832_v24, %v9832_v24 }
 0xfe3   : > { %v4948_v58 = vsel %vm561_vm0, %v4906_v10, 0.0  ;;  %v4945_v23 = vsel %vm561_vm0, %v4905_v53, 0.0 }
 0xfe5   : > { %4863 = vadd.xlane.f32.xlu1 %v4862_v46  ;;  %4860 = vadd.xlane.f32.xlu0 %v4859_v54  ;;  %v4954_v46 = vsel %vm561_vm0, %v4908_v57, 0.0  ;;  %v4951_v54 = vsel %vm561_vm0, %v4907_v7, 0.0 }
 0xfe9   : > { %4857 = vadd.xlane.f32.xlu1 %v4856_v62  ;;  %4854 = vadd.xlane.f32.xlu0 %v4853_v29 }
 0xfed   : > { %4943 = vadd.xlane.f32.xlu1 %v4942_v27  ;;  %4940 = vadd.xlane.f32.xlu0 %v4939_v14 }
 0xff1   : > { %4937 = vadd.xlane.f32.xlu1 %v4936_v52  ;;  %4934 = vadd.xlane.f32.xlu0 %v4933_v5 }
 0xff5   : > { %4875 = vadd.xlane.f32.xlu1 %v4874_v26  ;;  %4872 = vadd.xlane.f32.xlu0 %v4871_v55 }
 0xff9   : > { %4869 = vadd.xlane.f32.xlu1 %v4868_v6  ;;  %4866 = vadd.xlane.f32.xlu0 %v4865_v49 }
 0xffd   : > { %4949 = vadd.xlane.f32.xlu1 %v4948_v58  ;;  %4946 = vadd.xlane.f32.xlu0 %v4945_v23 }
0x1001   : > { %4955 = vadd.xlane.f32.xlu1 %v4954_v46  ;;  %4952 = vadd.xlane.f32.xlu0 %v4951_v54 }
0x104a   : > { %v4837_v1 = vpop.xlane.xlu0 %4836 }
0x104b   : > { %v9863_v62 = vmul.f32 0.03125, %v4837_v1 }
0x104d   : > { %v4975_v33 = vmul.f32 %v9863_v62, %v9863_v62 }
0x104e   : > { %v4831_v32 = vpop.xlane.xlu0 %4830 }
0x104f   : > { %v9867_v28 = vmul.f32 0.03125, %v4831_v32 }
0x1051   : > { %v4973_v40 = vmul.f32 %v9867_v28, %v9867_v28 }
0x1052   : > { %v4834_v29 = vpop.xlane.xlu1 %4833  ;;  %v4917_v60 = vpop.xlane.xlu0 %4916 }
0x1053   : > { %v4959_v30 = vmul.f32 0.03125, %v4917_v60  ;;  %v9869_v63 = vmul.f32 0.03125, %v4834_v29 }
0x1055   : > { %v4991_v4 = vsub.f32 %v4959_v30, %v4975_v33  ;;  %v4974_v45 = vmul.f32 %v9869_v63, %v9869_v63 }
0x1056   : > { %v4920_v12 = vpop.xlane.xlu1 %4919  ;;  %v4840_v19 = vpop.xlane.xlu0 %4839 }
0x1057   : > { %v4880_v27 = vmul.f32 0.03125, %v4840_v19  ;;  %v5007_v14 = vmax.f32 %v4991_v4, 0.0  ;;  %v4960_v36 = vmul.f32 0.03125, %v4920_v12 }
0x1059   : > { %v4976_v16 = vmul.f32 %v4880_v27, %v4880_v27  ;;  %v5039_v25 = vadd.f32 1e-06, %v5007_v14  ;;  %v5024_v14 = vsub.f32 %v9669_v42, %v4880_v27  ;;  %v9899_v42 = vld [vmem:[%s10515_s5] ss:$0 sm:$0xff] }
0x105a   : > { %v4914_v20 = vpop.xlane.xlu1 %4913  ;;  %v4911_v50 = vpop.xlane.xlu0 %4910 }
0x105b   : > { %v4992_v39 = vsub.f32 %v4960_v36, %v4976_v16  ;;  %v4958_v41 = vmul.f32 0.03125, %v4914_v20  ;;  %v4957_v0 = vmul.f32 0.03125, %v4911_v50  ;;  %7628 = vrsqrt.f32 %v5039_v25 }
0x105c   : > { %v5023_v50 = vsub.f32 %v9649_v2, %v9863_v62 }
0x105d   : > { %v5008_v34 = vmax.f32 %v4992_v39, 0.0  ;;  %v4990_v18 = vsub.f32 %v4958_v41, %v4974_v45  ;;  %v4989_v21 = vsub.f32 %v4957_v0, %v4973_v40 }
0x105e   : > { %v4852_v3 = vpop.xlane.xlu1 %4851  ;;  %v4849_v52 = vpop.xlane.xlu0 %4848 }
0x105f   : > { %v5040_v5 = vadd.f32 1e-06, %v5008_v34  ;;  %v5006_v44 = vmax.f32 %v4990_v18, 0.0  ;;  %v5005_v37 = vmax.f32 %v4989_v21, 0.0  ;;  %v9875_v26 = vmul.f32 0.03125, %v4852_v3 }
0x1060   : > { %v9877_v15 = vmul.f32 0.03125, %v4849_v52  ;;  %v5021_v18 = vsub.f32 %v9662_v56, %v9867_v28  ;;  %v5022_v52 = vsub.f32 %v9677_v38, %v9869_v63 }
0x1061   : > { %7630 = vrsqrt.f32 %v5040_v5  ;;  %v5038_v22 = vadd.f32 1e-06, %v5006_v44  ;;  %v5037_v48 = vadd.f32 1e-06, %v5005_v37  ;;  %v4980_v6 = vmul.f32 %v9875_v26, %v9875_v26 }
0x1062   : > { %v4846_v55 = vpop.xlane.xlu1 %4845  ;;  %v4843_v9 = vpop.xlane.xlu0 %4842  ;;  %v4979_v53 = vmul.f32 %v9877_v15, %v9877_v15 }
0x1063   : > { %7632 = vrsqrt.f32 %v5038_v22  ;;  %v9883_v58 = vmul.f32 0.03125, %v4846_v55  ;;  %v9885_v7 = vmul.f32 0.03125, %v4843_v9 }
0x1064   : > { %7634 = vrsqrt.f32 %v5037_v48  ;;  %v9911_v48 = vld [vmem:[%s10516_s6] ss:$0 sm:$0xff] }
0x1065   : > { %v4978_v29 = vmul.f32 %v9883_v58, %v9883_v58  ;;  %v4977_v4 = vmul.f32 %v9885_v7, %v9885_v7 }
0x1066   : > { %v4932_v49 = vpop.xlane.xlu1 %4931  ;;  %v4929_v10 = vpop.xlane.xlu0 %4928 }
0x1067   : > { %v4964_v23 = vmul.f32 0.03125, %v4932_v49  ;;  %v4963_v57 = vmul.f32 0.03125, %v4929_v10 }
0x1068   : > { %v7629_v19 = vpop.eup %7628 }
0x1069   : > { %v4996_v46 = vsub.f32 %v4964_v23, %v4980_v6  ;;  %v4995_v54 = vsub.f32 %v4963_v57, %v4979_v53  ;;  %v5071_v27 = vmul.f32 %v7629_v19, %v5023_v50 }
0x106a   : > { %v4926_v1 = vpop.xlane.xlu1 %4925  ;;  %v4923_v32 = vpop.xlane.xlu0 %4922 }
0x106b   : > { %v5012_v60 = vmax.f32 %v4996_v46, 0.0  ;;  %v5011_v33 = vmax.f32 %v4995_v54, 0.0  ;;  %v4962_v30 = vmul.f32 0.03125, %v4926_v1  ;;  %v4961_v12 = vmul.f32 0.03125, %v4923_v32 }
0x106c   : > { %v5093_v55 = vmul.f32 %v9899_v42, %v5071_v27 }
0x106d   : > { %v5044_v36 = vadd.f32 1e-06, %v5012_v60  ;;  %v5043_v16 = vadd.f32 1e-06, %v5011_v33  ;;  %v4994_v40 = vsub.f32 %v4962_v30, %v4978_v29  ;;  %v4993_v45 = vsub.f32 %v4961_v12, %v4977_v4 }
0x106e   : > { %v7631_v20 = vpop.eup %7630  ;;  %v4864_v39 = vpop.xlane.xlu1 %4863  ;;  %v9931_v29 = vadd.f32 %v9911_v48, %v5093_v55 }
0x106f   : > { %v4861_v41 = vpop.xlane.xlu0 %4860  ;;  %v5072_v0 = vmul.f32 %v7631_v20, %v5024_v14  ;;  %7636 = vrsqrt.f32 %v5044_v36  ;;  %v5010_v25 = vmax.f32 %v4994_v40, 0.0  ;;  %v5009_v21 = vmax.f32 %v4993_v45, 0.0 }
0x1070   : > { %v7633_v34 = vpop.eup %7632  ;;  %7638 = vrsqrt.f32 %v5043_v16  ;;  %v9904_v56 = vmul.f32 0.03125, %v4864_v39  ;;  %v9906_v28 = vmul.f32 0.03125, %v4861_v41  ;;  %v5028_v41 = vsub.f32 %v9713_v47, %v9875_v26 }
0x1071   : > { %v7635_v3 = vpop.eup %7634  ;;  %v5094_v2 = vmul.f32 %v9899_v42, %v5072_v0  ;;  %v5042_v62 = vadd.f32 1e-06, %v5010_v25  ;;  %v5041_v5 = vadd.f32 1e-06, %v5009_v21  ;;  %v5070_v9 = vmul.f32 %v7633_v34, %v5022_v52 }
0x1072   : > { %v4858_v44 = vpop.xlane.xlu1 %4857  ;;  %v5069_v22 = vmul.f32 %v7635_v3, %v5021_v18  ;;  %v4984_v46 = vmul.f32 %v9904_v56, %v9904_v56  ;;  %v4983_v54 = vmul.f32 %v9906_v28, %v9906_v28  ;;  %v5027_v0 = vsub.f32 %v9710_v11, %v9877_v15 }
0x1073   : > { %v4855_v37 = vpop.xlane.xlu0 %4854  ;;  %7640 = vrsqrt.f32 %v5042_v62  ;;  %v9916_v63 = vadd.f32 %v9911_v48, %v5094_v2  ;;  %v9918_v6 = vmul.f32 0.03125, %v4858_v44  ;;  %v5092_v23 = vmul.f32 %v9899_v42, %v5070_v9 }
0x1074   : > { %7642 = vrsqrt.f32 %v5041_v5  ;;  %v5091_v38 = vmul.f32 %v9899_v42, %v5069_v22  ;;  %v9920_v49 = vmul.f32 0.03125, %v4855_v37  ;;  %v5026_v11 = vsub.f32 %v9723_v35, %v9883_v58 }
0x1075   : > { %v9934_v60 = vadd.f32 %v9911_v48, %v5092_v23  ;;  %v5152_v4 = vpack.c.bf16 %v9916_v63, %v9931_v29  ;;  %v4982_v12 = vmul.f32 %v9918_v6, %v9918_v6  ;;  %v5025_v26 = vsub.f32 %v9720_v59, %v9885_v7 }
0x1076   : > { %v4944_v10 = vpop.xlane.xlu1 %4943  ;;  %v9924_v57 = vadd.f32 %v9911_v48, %v5091_v38  ;;  %v4981_v19 = vmul.f32 %v9920_v49, %v9920_v49 }
0x1077   : > { %v4941_v53 = vpop.xlane.xlu0 %4940  ;;  %v4968_v1 = vmul.f32 0.03125, %v4944_v10 }
0x1078   : > { %v4967_v32 = vmul.f32 0.03125, %v4941_v53  ;;  %v5151_v14 = vpack.c.bf16 %v9934_v60, %v9924_v57 }
0x1079   : > { %v5000_v33 = vsub.f32 %v4968_v1, %v4984_v46 }
0x107a   : > { %v4999_v30 = vsub.f32 %v4967_v32, %v4983_v54  ;;  %v4938_v36 = vpop.xlane.xlu1 %4937  ;;  %7189 = vmatprep.mubr.msk.bf16.mxu0 %vm561_vm0, %v5151_v14 }
0x107b   : > { %v4935_v16 = vpop.xlane.xlu0 %4934  ;;  %v5016_v40 = vmax.f32 %v5000_v33, 0.0  ;;  %v4966_v50 = vmul.f32 0.03125, %v4938_v36  ;;  %7190 = vmatmul.mubr.msk.bf16.vlgmr.msra.gmra.mxu0 %vm561_vm0, %v5152_v4 }
0x107c   : > { %v5015_v20 = vmax.f32 %v4999_v30, 0.0  ;;  %v4965_v45 = vmul.f32 0.03125, %v4935_v16  ;;  %v7637_v39 = vpop.eup %7636 }
0x107d   : > { %v7639_v25 = vpop.eup %7638  ;;  %v5048_v34 = vadd.f32 1e-06, %v5016_v40  ;;  %v4998_v27 = vsub.f32 %v4966_v50, %v4982_v12  ;;  %v5076_v52 = vmul.f32 %v7637_v39, %v5028_v41 }
0x107e   : > { %v5047_v18 = vadd.f32 1e-06, %v5015_v20  ;;  %v4997_v21 = vsub.f32 %v4965_v45, %v4981_v19  ;;  %v4876_v3 = vpop.xlane.xlu1 %4875  ;;  %v5075_v62 = vmul.f32 %v7639_v25, %v5027_v0 }
0x107f   : > { %v4873_v2 = vpop.xlane.xlu0 %4872  ;;  %7644 = vrsqrt.f32 %v5048_v34  ;;  %v5014_v5 = vmax.f32 %v4998_v27, 0.0  ;;  %v5098_v9 = vmul.f32 %v9899_v42, %v5076_v52  ;;  %v9968_v1 = vmul.f32 0.03125, %v4876_v3 }
0x1080   : > { %v5013_v44 = vmax.f32 %v4997_v21, 0.0  ;;  %v7641_v47 = vpop.eup %7640  ;;  %7646 = vrsqrt.f32 %v5047_v18  ;;  %v5097_v55 = vmul.f32 %v9899_v42, %v5075_v62  ;;  %v9970_v32 = vmul.f32 0.03125, %v4873_v2 }
0x1081   : > { %v7643_v15 = vpop.eup %7642  ;;  %v5046_v37 = vadd.f32 1e-06, %v5014_v5  ;;  %v5074_v23 = vmul.f32 %v7641_v47, %v5026_v11  ;;  %v9966_v7 = vadd.f32 %v9911_v48, %v5098_v9  ;;  %v4988_v39 = vmul.f32 %v9968_v1, %v9968_v1 }
0x1082   : > { %v5045_v22 = vadd.f32 1e-06, %v5013_v44  ;;  %v4870_v38 = vpop.xlane.xlu1 %4869  ;;  %v5073_v53 = vmul.f32 %v7643_v15, %v5025_v26  ;;  %v9963_v58 = vadd.f32 %v9911_v48, %v5097_v55  ;;  %v4987_v41 = vmul.f32 %v9970_v32, %v9970_v32 }
0x1083   : > { %v4867_v10 = vpop.xlane.xlu0 %4866  ;;  %7648 = vrsqrt.f32 %v5046_v37  ;;  %v9956_v46 = vmul.f32 0.03125, %v4870_v38  ;;  %v5096_v35 = vmul.f32 %v9899_v42, %v5074_v23  ;;  %v5032_v2 = vsub.f32 %v9769_v43, %v9904_v56 }
0x1084   : > { %v9958_v54 = vmul.f32 0.03125, %v4867_v10  ;;  %7650 = vrsqrt.f32 %v5045_v22  ;;  %v5095_v59 = vmul.f32 %v9899_v42, %v5073_v53  ;;  %v5154_v45 = vpack.c.bf16 %v9966_v7, %v9963_v58 }
0x1085   : > { %v9976_v12 = vadd.f32 %v9911_v48, %v5096_v35  ;;  %v4986_v19 = vmul.f32 %v9956_v46, %v9956_v46  ;;  %v5031_v62 = vsub.f32 %v9766_v17, %v9906_v28  ;;  %v5030_v37 = vsub.f32 %v9779_v61, %v9918_v6 }
0x1086   : > { %v4950_v33 = vpop.xlane.xlu1 %4949  ;;  %v9973_v4 = vadd.f32 %v9911_v48, %v5095_v59  ;;  %v4985_v14 = vmul.f32 %v9958_v54, %v9958_v54  ;;  %v5029_v43 = vsub.f32 %v9776_v8, %v9920_v49 }
0x1087   : > { %v4947_v30 = vpop.xlane.xlu0 %4946  ;;  %v4970_v36 = vmul.f32 0.03125, %v4950_v33 }
0x1088   : > { %v4969_v16 = vmul.f32 0.03125, %v4947_v30  ;;  %v5153_v40 = vpack.c.bf16 %v9976_v12, %v9973_v4 }
0x1089   : > { %v5002_v20 = vsub.f32 %v4970_v36, %v4986_v19  ;;  %v5034_v19 = vsub.f32 %v9835_v51, %v9956_v46  ;;  %v5033_v36 = vsub.f32 %v9832_v24, %v9958_v54 }
0x108a   : > { %v5001_v50 = vsub.f32 %v4969_v16, %v4985_v14  ;;  %7193 = vmatprep.mubr.msk.bf16.mxu0 %vm561_vm0, %v5153_v40  ;;  %v4956_v0 = vpop.xlane.xlu1 %4955 }
0x108b   : > { %v4953_v25 = vpop.xlane.xlu0 %4952  ;;  %v5018_v34 = vmax.f32 %v5002_v20, 0.0  ;;  %v4972_v27 = vmul.f32 0.03125, %v4956_v0  ;;  %7194 = vmatmul.mubr.msk.bf16.gmra.mxu0 %vm561_vm0, %v5154_v45 }
0x108c   : > { %v5017_v18 = vmax.f32 %v5001_v50, 0.0  ;;  %v4971_v21 = vmul.f32 0.03125, %v4953_v25  ;;  %v7645_v3 = vpop.eup %7644  ;;  %v5036_v50 = vsub.f32 %v9825_v31, %v9968_v1 }
0x108d   : > { %v7647_v52 = vpop.eup %7646  ;;  %v5050_v5 = vadd.f32 1e-06, %v5018_v34  ;;  %v5004_v47 = vsub.f32 %v4972_v27, %v4988_v39  ;;  %v5080_v15 = vmul.f32 %v7645_v3, %v5032_v2  ;;  %v7304_v27 = vld [vmem:[%s10519_s9 + $0x38] sm:$0xff]   ;;  %v10067_v3 = vld [vmem:[%s10518_s8 + $0x1] ss:$0 sm:$0xff] }
0x108e   : > { %v5049_v44 = vadd.f32 1e-06, %v5017_v18  ;;  %v5003_v11 = vsub.f32 %v4971_v21, %v4987_v41  ;;  %v5079_v26 = vmul.f32 %v7647_v52, %v5031_v62  ;;  %v5035_v41 = vsub.f32 %v9822_v13, %v9970_v32  ;;  %7205 = vmatprep.subr.bf16.mxu1 %v7304_v27  ;;  %v7307_v21 = vld [vmem:[%s10519_s9 + $0x20] sm:$0xff]  }
0x108f   : > { %7652 = vrsqrt.f32 %v5050_v5  ;;  %v5020_v22 = vmax.f32 %v5004_v47, 0.0  ;;  %v5102_v53 = vmul.f32 %v9899_v42, %v5080_v15  ;;  %7206 = vmatpush3.bf16.msra.mxu1 %v7304_v27 }
0x1090   : > { %v5019_v55 = vmax.f32 %v5003_v11, 0.0  ;;  %v7649_v9 = vpop.eup %7648  ;;  %7654 = vrsqrt.f32 %v5049_v44  ;;  %v5101_v17 = vmul.f32 %v9899_v42, %v5079_v26 }
0x1091   : > { %v7651_v56 = vpop.eup %7650  ;;  %v5052_v28 = vadd.f32 1e-06, %v5020_v22  ;;  %v5078_v10 = vmul.f32 %v7649_v9, %v5030_v37  ;;  %v10011_v49 = vadd.f32 %v9911_v48, %v5102_v53 }
0x1092   : > { %v5051_v38 = vadd.f32 1e-06, %v5019_v55  ;;  %v5077_v23 = vmul.f32 %v7651_v56, %v5029_v43  ;;  %v10008_v8 = vadd.f32 %v9911_v48, %v5101_v17 }
0x1093   : > { %7656 = vrsqrt.f32 %v5052_v28  ;;  %v5100_v61 = vmul.f32 %v9899_v42, %v5078_v10 }
0x1094   : > { %7658 = vrsqrt.f32 %v5051_v38  ;;  %v5099_v6 = vmul.f32 %v9899_v42, %v5077_v23  ;;  %v5156_v30 = vpack.c.bf16 %v10011_v49, %v10008_v8 }
0x1095   : > { %v10005_v59 = vadd.f32 %v9911_v48, %v5100_v61 }
0x1096   : > { %v10014_v35 = vadd.f32 %v9911_v48, %v5099_v6 }
0x1098   : > { %v5155_v33 = vpack.c.bf16 %v10005_v59, %v10014_v35 }
0x109a   : > { %7197 = vmatprep.mubr.msk.bf16.mxu0 %vm561_vm0, %v5155_v33 }
0x109b   : > { %7198 = vmatmul.mubr.msk.bf16.gmra.mxu0 %vm561_vm0, %v5156_v30 }
0x109c   : > { %v7653_v14 = vpop.eup %7652 }
0x109d   : > { %v7655_v16 = vpop.eup %7654  ;;  %v5082_v40 = vmul.f32 %v7653_v14, %v5034_v19 }
0x109e   : > { %v5081_v20 = vmul.f32 %v7655_v16, %v5033_v36 }
0x109f   : > { %v5104_v45 = vmul.f32 %v9899_v42, %v5082_v40 }
0x10a0   : > { %v7657_v39 = vpop.eup %7656  ;;  %v5103_v51 = vmul.f32 %v9899_v42, %v5081_v20 }
0x10a1   : > { %v7659_v46 = vpop.eup %7658  ;;  %v10033_v0 = vadd.f32 %v9911_v48, %v5104_v45  ;;  %v5084_v25 = vmul.f32 %v7657_v39, %v5036_v50 }
0x10a2   : > { %v10036_v24 = vadd.f32 %v9911_v48, %v5103_v51  ;;  %v5083_v54 = vmul.f32 %v7659_v46, %v5035_v41 }
0x10a3   : > { %v5106_v34 = vmul.f32 %v9899_v42, %v5084_v25 }
0x10a4   : > { %v5157_v31 = vpack.c.bf16 %v10033_v0, %v10036_v24  ;;  %v5105_v1 = vmul.f32 %v9899_v42, %v5083_v54  ;;  %v7305_v42 = vld [vmem:[%s10519_s9 + $0x30] sm:$0xff]  }
0x10a5   : > { %v10043_v13 = vadd.f32 %v9911_v48, %v5106_v34  ;;  %7207 = vmatprep.subr.bf16.mxu1 %v7305_v42 }
0x10a6   : > { %7201 = vmatprep.mubr.msk.bf16.mxu0 %vm561_vm0, %v5157_v31  ;;  %v10047_v32 = vadd.f32 %v9911_v48, %v5105_v1  ;;  %7208 = vmatpush3.bf16.msra.mxu1 %v7305_v42  ;;  %v7306_v48 = vld [vmem:[%s10519_s9 + $0x28] sm:$0xff]  }
0x10a7   : > { %7209 = vmatprep.subr.bf16.mxu1 %v7306_v48 }
0x10a8   : > { %v5158_v18 = vpack.c.bf16 %v10043_v13, %v10047_v32 }
0x10aa   : > { %7202 = vmatmul.mubr.msk.bf16.gmra.mxu0 %vm561_vm0, %v5158_v18  ;;  %7210 = vmatpush3.bf16.msra.mxu1 %v7306_v48 }
0x10ab   : > { %7211 = vmatprep.subr.bf16.mxu1 %v7307_v21 }
0x10ae   : > { %7212 = vmatpush3.bf16.msra.mxu1 %v7307_v21 }
0x113b   : > { %v7191_v2 = vpop.f32.mrf.mxu0 }
0x113c   : > { %v10070_v62 = vadd.f32 %v7191_v2, %v10067_v3 }
0x113d   : > { %v5235_v52 = vpop.f32.mrf.mxu0 }
0x113e   : > { %v5316_v5 = vmul.f32 0.044715, %v10070_v62  ;;  %v10074_v44 = vadd.f32 %v10067_v3, %v5235_v52 }
0x113f   : > { %v7192_v47 = vpop.f32.mrf.mxu0 }
0x1140   : > { %v5332_v11 = vmul.f32 %v5316_v5, %v10070_v62  ;;  %v5314_v26 = vmul.f32 0.044715, %v10074_v44  ;;  %v10079_v15 = vadd.f32 %v7192_v47, %v10067_v3 }
0x1141   : > { %v5238_v37 = vpop.f32.mrf.mxu0 }
0x1142   : > { %v5348_v22 = vmul.f32 %v5332_v11, %v10070_v62  ;;  %v5330_v55 = vmul.f32 %v5314_v26, %v10074_v44  ;;  %v5317_v9 = vmul.f32 0.044715, %v10079_v15  ;;  %v10085_v43 = vadd.f32 %v10067_v3, %v5238_v37 }
0x1144   : > { %v5364_v17 = vadd.f32 %v5348_v22, %v10070_v62  ;;  %v5346_v56 = vmul.f32 %v5330_v55, %v10074_v44  ;;  %v5333_v28 = vmul.f32 %v5317_v9, %v10079_v15  ;;  %v5315_v38 = vmul.f32 0.044715, %v10085_v43 }
0x1146   : > { %v5380_v10 = vmul.f32 0.7978846, %v5364_v17  ;;  %v5362_v53 = vadd.f32 %v5346_v56, %v10074_v44  ;;  %v5349_v23 = vmul.f32 %v5333_v28, %v10079_v15  ;;  %v5331_v61 = vmul.f32 %v5315_v38, %v10085_v43 }
0x1148   : > { %v5378_v6 = vmul.f32 0.7978846, %v5362_v53  ;;  %v5365_v33 = vadd.f32 %v5349_v23, %v10079_v15  ;;  %v5347_v30 = vmul.f32 %v5331_v61, %v10085_v43  ;;  %7660 = vtanh.f32 %v5380_v10 }
0x1149   : > { %v5300_v10 = vmul.f32 0.5, %v10070_v62 }
0x114a   : > { %v5381_v14 = vmul.f32 0.7978846, %v5365_v33  ;;  %7662 = vtanh.f32 %v5378_v6  ;;  %v5363_v16 = vadd.f32 %v5347_v30, %v10085_v43  ;;  %v5301_v30 = vmul.f32 0.5, %v10079_v15 }
0x114b   : > { %v7195_v19 = vpop.f32.mrf.mxu0 }
0x114c   : > { %v10097_v36 = vadd.f32 %v7195_v19, %v10067_v3  ;;  %7664 = vtanh.f32 %v5381_v14  ;;  %v5379_v45 = vmul.f32 0.7978846, %v5363_v16 }
0x114d   : > { %v5251_v40 = vpop.f32.mrf.mxu0 }
0x114e   : > { %v5320_v20 = vmul.f32 0.044715, %v10097_v36  ;;  %v10102_v50 = vadd.f32 %v10067_v3, %v5251_v40  ;;  %7666 = vtanh.f32 %v5379_v45  ;;  %v5298_v40 = vmul.f32 0.5, %v10074_v44 }
0x114f   : > { %v7196_v39 = vpop.f32.mrf.mxu0 }
0x1150   : > { %v5336_v41 = vmul.f32 %v5320_v20, %v10097_v36  ;;  %v5318_v51 = vmul.f32 0.044715, %v10102_v50  ;;  %v10107_v46 = vadd.f32 %v7196_v39, %v10067_v3  ;;  %v5299_v20 = vmul.f32 0.5, %v10085_v43 }
0x1151   : > { %v5254_v25 = vpop.f32.mrf.mxu0 }
0x1152   : > { %v5352_v54 = vmul.f32 %v5336_v41, %v10097_v36  ;;  %v5334_v34 = vmul.f32 %v5318_v51, %v10102_v50  ;;  %v5321_v31 = vmul.f32 0.044715, %v10107_v46  ;;  %v10113_v1 = vadd.f32 %v10067_v3, %v5254_v25 }
0x1154   : > { %v5350_v18 = vmul.f32 %v5334_v34, %v10102_v50  ;;  %v5337_v27 = vmul.f32 %v5321_v31, %v10107_v46  ;;  %v5368_v42 = vadd.f32 %v5352_v54, %v10097_v36  ;;  %v5319_v48 = vmul.f32 0.044715, %v10113_v1 }
0x1155   : > { %v7661_v11 = vpop.eup %7660 }
0x1156   : > { %v5366_v21 = vadd.f32 %v5350_v18, %v10102_v50  ;;  %v5353_v2 = vmul.f32 %v5337_v27, %v10107_v46  ;;  %v5335_v52 = vmul.f32 %v5319_v48, %v10113_v1  ;;  %v5384_v26 = vmul.f32 0.7978846, %v5368_v42 }
0x1157   : > { %v7663_v22 = vpop.eup %7662  ;;  %v5412_v33 = vadd.f32 1.0, %v7661_v11 }
0x1158   : > { %v5382_v5 = vmul.f32 0.7978846, %v5366_v21  ;;  %v5369_v47 = vadd.f32 %v5353_v2, %v10107_v46  ;;  %v5351_v37 = vmul.f32 %v5335_v52, %v10113_v1  ;;  %v5410_v61 = vadd.f32 1.0, %v7663_v22 }
0x1159   : > { %v7665_v9 = vpop.eup %7664  ;;  %v5428_v34 = vmul.f32 %v5412_v33, %v5300_v10  ;;  %v5304_v33 = vmul.f32 0.5, %v10097_v36 }
0x115a   : > { %v5385_v55 = vmul.f32 0.7978846, %v5369_v47  ;;  %7668 = vtanh.f32 %v5382_v5  ;;  %v5367_v17 = vadd.f32 %v5351_v37, %v10113_v1  ;;  %v5413_v28 = vadd.f32 1.0, %v7665_v9 }
0x115b   : > { %v7199_v56 = vpop.f32.mrf.mxu0  ;;  %v7667_v6 = vpop.eup %7666  ;;  %v5426_v25 = vmul.f32 %v5410_v61, %v5298_v40 }
0x115c   : > { %7670 = vtanh.f32 %v5385_v55  ;;  %v10126_v38 = vadd.f32 %v7199_v56, %v10067_v3  ;;  %v5383_v53 = vmul.f32 0.7978846, %v5367_v17  ;;  %v5411_v62 = vadd.f32 1.0, %v7667_v6 }
0x115d   : > { %7672 = vtanh.f32 %v5384_v26  ;;  %v5267_v23 = vpop.f32.mrf.mxu0  ;;  %v5429_v45 = vmul.f32 %v5413_v28, %v5301_v30  ;;  %v5305_v30 = vmul.f32 0.5, %v10107_v46 }
0x115e   : > { %v5324_v19 = vmul.f32 0.044715, %v10126_v38  ;;  %v10132_v14 = vadd.f32 %v10067_v3, %v5267_v23  ;;  %7674 = vtanh.f32 %v5383_v53  ;;  %v5427_v54 = vmul.f32 %v5411_v62, %v5299_v20 }
0x115f   : > { %v7200_v16 = vpop.f32.mrf.mxu0  ;;  %v5443_v42 = vpack.c.bf16 %v5429_v45, %v5428_v34 }
0x1160   : > { %v5340_v39 = vmul.f32 %v5324_v19, %v10126_v38  ;;  %v5322_v41 = vmul.f32 0.044715, %v10132_v14  ;;  %v10139_v51 = vadd.f32 %v7200_v16, %v10067_v3  ;;  %v5442_v27 = vpack.c.bf16 %v5427_v54, %v5426_v25 }
0x1161   : > { %v5270_v15 = vpop.f32.mrf.mxu0 }
0x1162   : > { %v5356_v31 = vmul.f32 %v5340_v39, %v10126_v38  ;;  %v5338_v18 = vmul.f32 %v5322_v41, %v10132_v14  ;;  %v5325_v44 = vmul.f32 0.044715, %v10139_v51  ;;  %v10145_v43 = vadd.f32 %v10067_v3, %v5270_v15  ;;  %7213 = vmatprep.mubr.msk.bf16.mxu1 %vm865_vm1, %v5442_v27 }
0x1163   : > { %7214 = vmatmul.mubr.msk.bf16.vlgmr.msra.gmra.mxu1 %vm865_vm1, %v5443_v42  ;;  %v5302_v41 = vmul.f32 0.5, %v10102_v50  ;;  %v5303_v15 = vmul.f32 0.5, %v10113_v1 }
0x1164   : > { %v5372_v48 = vadd.f32 %v5356_v31, %v10126_v38  ;;  %v5354_v21 = vmul.f32 %v5338_v18, %v10132_v14  ;;  %v5341_v2 = vmul.f32 %v5325_v44, %v10139_v51  ;;  %v5323_v52 = vmul.f32 0.044715, %v10145_v43 }
0x1166   : > { %v5388_v5 = vmul.f32 0.7978846, %v5372_v48  ;;  %v5370_v47 = vadd.f32 %v5354_v21, %v10132_v14  ;;  %v5357_v11 = vmul.f32 %v5341_v2, %v10139_v51  ;;  %v5339_v26 = vmul.f32 %v5323_v52, %v10145_v43 }
0x1167   : > { %v7669_v37 = vpop.eup %7668 }
0x1168   : > { %v5386_v22 = vmul.f32 0.7978846, %v5370_v47  ;;  %v5373_v55 = vadd.f32 %v5357_v11, %v10139_v51  ;;  %v5355_v17 = vmul.f32 %v5339_v26, %v10145_v43  ;;  %7676 = vtanh.f32 %v5388_v5 }
0x1169   : > { %v7671_v9 = vpop.eup %7670  ;;  %v5414_v16 = vadd.f32 1.0, %v7669_v37 }
0x116a   : > { %v7673_v56 = vpop.eup %7672  ;;  %v5389_v28 = vmul.f32 0.7978846, %v5373_v55  ;;  %v7203_v10 = vpop.f32.mrf.mxu0  ;;  %v5417_v53 = vadd.f32 1.0, %v7671_v9  ;;  %7678 = vtanh.f32 %v5386_v22  ;;  %v5371_v23 = vadd.f32 %v5355_v17, %v10145_v43 }
0x116b   : > { %v10160_v61 = vadd.f32 %v7203_v10, %v10067_v3  ;;  %v7675_v6 = vpop.eup %7674  ;;  %v5416_v45 = vadd.f32 1.0, %v7673_v56  ;;  %v5430_v18 = vmul.f32 %v5414_v16, %v5302_v41  ;;  %v5308_v41 = vmul.f32 0.5, %v10126_v38 }
0x116c   : > { %7680 = vtanh.f32 %v5389_v28  ;;  %v5283_v19 = vpop.f32.mrf.mxu0  ;;  %v5387_v40 = vmul.f32 0.7978846, %v5371_v23  ;;  %v5415_v25 = vadd.f32 1.0, %v7675_v6  ;;  %v5433_v54 = vmul.f32 %v5417_v53, %v5305_v30 }
0x116d   : > { %v5328_v20 = vmul.f32 0.044715, %v10160_v61  ;;  %v10166_v62 = vadd.f32 %v10067_v3, %v5283_v19  ;;  %v5432_v50 = vmul.f32 %v5416_v45, %v5304_v33  ;;  %v5309_v19 = vmul.f32 0.5, %v10139_v51 }
0x116e   : > { %v7204_v39 = vpop.f32.mrf.mxu0  ;;  %7682 = vtanh.f32 %v5387_v40  ;;  %v5431_v44 = vmul.f32 %v5415_v25, %v5303_v15  ;;  %v5307_v45 = vmul.f32 0.5, %v10145_v43 }
0x116f   : > { %v5344_v36 = vmul.f32 %v5328_v20, %v10160_v61  ;;  %v5326_v46 = vmul.f32 0.044715, %v10166_v62  ;;  %v5295_v34 = vadd.f32 %v7204_v39, %v10067_v3  ;;  %v5445_v47 = vpack.c.bf16 %v5433_v54, %v5432_v50 }
0x1170   : > { %v5286_v31 = vpop.f32.mrf.mxu0  ;;  %v5444_v21 = vpack.c.bf16 %v5431_v44, %v5430_v18  ;;  %v5306_v20 = vmul.f32 0.5, %v10132_v14  ;;  %v5310_v38 = vmul.f32 0.5, %v10166_v62 }
0x1171   : > { %v5360_v27 = vmul.f32 %v5344_v36, %v10160_v61  ;;  %v5342_v42 = vmul.f32 %v5326_v46, %v10166_v62  ;;  %v5329_v48 = vmul.f32 0.044715, %v5295_v34  ;;  %v5287_v1 = vadd.f32 %v10067_v3, %v5286_v31 }
0x1172   : > { %7217 = vmatprep.mubr.msk.bf16.mxu1 %vm865_vm1, %v5444_v21 }
0x1173   : > { %v5376_v2 = vadd.f32 %v5360_v27, %v10160_v61  ;;  %v5358_v52 = vmul.f32 %v5342_v42, %v10166_v62  ;;  %v5345_v5 = vmul.f32 %v5329_v48, %v5295_v34  ;;  %v5327_v11 = vmul.f32 0.044715, %v5287_v1  ;;  %7218 = vmatmul.mubr.msk.bf16.gmra.mxu1 %vm865_vm1, %v5445_v47 }
0x1174   : > { %v5313_v42 = vmul.f32 0.5, %v5295_v34  ;;  %v5311_v50 = vmul.f32 0.5, %v5287_v1 }
0x1175   : > { %v5392_v26 = vmul.f32 0.7978846, %v5376_v2  ;;  %v5374_v37 = vadd.f32 %v5358_v52, %v10166_v62  ;;  %v5361_v22 = vmul.f32 %v5345_v5, %v5295_v34  ;;  %v5343_v55 = vmul.f32 %v5327_v11, %v5287_v1  ;;  %v7677_v9 = vpop.eup %7676 }
0x1176   : > { %v5420_v40 = vadd.f32 1.0, %v7677_v9  ;;  %v5312_v2 = vmul.f32 0.5, %v10160_v61 }
0x1177   : > { %v5390_v17 = vmul.f32 0.7978846, %v5374_v37  ;;  %v5377_v3 = vadd.f32 %v5361_v22, %v5295_v34  ;;  %v7679_v56 = vpop.eup %7678  ;;  %v5359_v28 = vmul.f32 %v5343_v55, %v5287_v1  ;;  %7684 = vtanh.f32 %v5392_v26  ;;  %v10194_v34 = vld [vmem:[%s10520_s10 + $0x1] ss:$0 sm:$0xff] }
0x1178   : > { %v5418_v33 = vadd.f32 1.0, %v7679_v56  ;;  %v5436_v36 = vmul.f32 %v5420_v40, %v5308_v41 }
0x1179   : > { %v7681_v10 = vpop.eup %7680  ;;  %v5393_v53 = vmul.f32 0.7978846, %v5377_v3  ;;  %7686 = vtanh.f32 %v5390_v17  ;;  %v5375_v23 = vadd.f32 %v5359_v28, %v5287_v1 }
0x117a   : > { %v5421_v6 = vadd.f32 1.0, %v7681_v10  ;;  %v5434_v25 = vmul.f32 %v5418_v33, %v5306_v20 }
0x117b   : > { %7688 = vtanh.f32 %v5393_v53  ;;  %v7683_v30 = vpop.eup %7682  ;;  %v5391_v16 = vmul.f32 0.7978846, %v5375_v23 }
0x117c   : > { %v5419_v39 = vadd.f32 1.0, %v7683_v30  ;;  %v5437_v15 = vmul.f32 %v5421_v6, %v5309_v19 }
0x117d   : > { %7690 = vtanh.f32 %v5391_v16 }
0x117e   : > { %v5435_v54 = vmul.f32 %v5419_v39, %v5307_v45  ;;  %v5447_v31 = vpack.c.bf16 %v5437_v15, %v5436_v36 }
0x1180   : > { %v5446_v46 = vpack.c.bf16 %v5435_v54, %v5434_v25 }
0x1182   : > { %7221 = vmatprep.mubr.msk.bf16.mxu1 %vm865_vm1, %v5446_v46 }
0x1183   : > { %7222 = vmatmul.mubr.msk.bf16.gmra.mxu1 %vm865_vm1, %v5447_v31 }
0x1184   : > { %v7685_v51 = vpop.eup %7684 }
0x1185   : > { %v5424_v48 = vadd.f32 1.0, %v7685_v51 }
0x1186   : > { %v7687_v18 = vpop.eup %7686 }
0x1187   : > { %v5422_v27 = vadd.f32 1.0, %v7687_v18  ;;  %v5440_v11 = vmul.f32 %v5424_v48, %v5312_v2 }
0x1188   : > { %v7689_v44 = vpop.eup %7688 }
0x1189   : > { %v5425_v14 = vadd.f32 1.0, %v7689_v44  ;;  %v5438_v5 = vmul.f32 %v5422_v27, %v5310_v38 }
0x118a   : > { %v7691_v43 = vpop.eup %7690 }
0x118b   : > { %v5423_v21 = vadd.f32 1.0, %v7691_v43  ;;  %v5441_v52 = vmul.f32 %v5425_v14, %v5313_v42 }
0x118d   : > { %v5439_v47 = vmul.f32 %v5423_v21, %v5311_v50  ;;  %v5449_v37 = vpack.c.bf16 %v5441_v52, %v5440_v11 }
0x118f   : > { %v5448_v26 = vpack.c.bf16 %v5439_v47, %v5438_v5 }
0x1191   : > { %7225 = vmatprep.mubr.msk.bf16.mxu1 %vm865_vm1, %v5448_v26 }
0x1192   : > { %7226 = vmatmul.mubr.msk.bf16.gmra.mxu1 %vm865_vm1, %v5449_v37 }
0x1223   : > { %v7215_v62 = vpop.f32.mrf.mxu1 }
0x1224   : > { %v5547_v1 = vadd.f32 %v7215_v62, %v10194_v34 }
0x1225   : > { %v5538_v22 = vpop.f32.mrf.mxu1 }
0x1226   : > { %v10198_v61 = vadd.f32 %v5547_v1, %v9931_v29  ;;  %v5539_v55 = vadd.f32 %v10194_v34, %v5538_v22 }
0x1227   : > { %v7216_v9 = vpop.f32.mrf.mxu1 }
0x1228   : > { %v10202_v17 = vadd.f32 %v5539_v55, %v9924_v57  ;;  %v5550_v3 = vadd.f32 %v7216_v9, %v10194_v34  ;;  %v5623_v56 = vsel %vm561_vm0, %v10198_v61, 0.0  ;;  %v5683_v6 = vmul.f32 %v10198_v61, %v10198_v61 }
0x1229   : > { %5624 = vadd.xlane.f32.xlu0 %v5623_v56  ;;  %v5541_v28 = vpop.f32.mrf.mxu1 }
0x122a   : > { %v10208_v10 = vadd.f32 %v5550_v3, %v9916_v63  ;;  %v5542_v53 = vadd.f32 %v10194_v34, %v5541_v28  ;;  %v5617_v57 = vsel %vm561_vm0, %v10202_v17, 0.0  ;;  %v5703_v33 = vsel %vm561_vm0, %v5683_v6, 0.0 }
0x122b   : > { %v5681_v30 = vmul.f32 %v10202_v17, %v10202_v17 }
0x122c   : > { %v10212_v29 = vadd.f32 %v5542_v53, %v9934_v60  ;;  %v5626_v23 = vsel %vm561_vm0, %v10208_v10, 0.0  ;;  %v5684_v60 = vmul.f32 %v10208_v10, %v10208_v10 }
0x122d   : > { %5627 = vadd.xlane.f32.xlu1 %v5626_v23  ;;  %5618 = vadd.xlane.f32.xlu0 %v5617_v57  ;;  %v5697_v20 = vsel %vm561_vm0, %v5681_v30, 0.0 }
0x122e   : > { %v5620_v63 = vsel %vm561_vm0, %v10212_v29, 0.0  ;;  %v5706_v40 = vsel %vm561_vm0, %v5684_v60, 0.0  ;;  %v5682_v39 = vmul.f32 %v10212_v29, %v10212_v29 }
0x1230   : > { %v5700_v31 = vsel %vm561_vm0, %v5682_v39, 0.0 }
0x1231   : > { %5621 = vadd.xlane.f32.xlu1 %v5620_v63  ;;  %5704 = vadd.xlane.f32.xlu0 %v5703_v33 }
0x1233   : > { %v7219_v19 = vpop.f32.mrf.mxu1 }
0x1234   : > { %v5563_v16 = vadd.f32 %v7219_v19, %v10194_v34 }
0x1235   : > { %v5554_v45 = vpop.f32.mrf.mxu1  ;;  %5707 = vadd.xlane.f32.xlu1 %v5706_v40  ;;  %5698 = vadd.xlane.f32.xlu0 %v5697_v20 }
0x1236   : > { %v10233_v41 = vadd.f32 %v5563_v16, %v9963_v58  ;;  %v5555_v15 = vadd.f32 %v10194_v34, %v5554_v45 }
0x1237   : > { %v7220_v25 = vpop.f32.mrf.mxu1 }
0x1238   : > { %v5566_v54 = vadd.f32 %v7220_v25, %v10194_v34  ;;  %v5635_v36 = vsel %vm561_vm0, %v10233_v41, 0.0  ;;  %v10240_v46 = vadd.f32 %v5555_v15, %v9973_v4  ;;  %v5687_v27 = vmul.f32 %v10233_v41, %v10233_v41 }
0x1239   : > { %v5557_v51 = vpop.f32.mrf.mxu1  ;;  %5701 = vadd.xlane.f32.xlu1 %v5700_v31  ;;  %5636 = vadd.xlane.f32.xlu0 %v5635_v36 }
0x123a   : > { %v10244_v18 = vadd.f32 %v5566_v54, %v9966_v7  ;;  %v5558_v58 = vadd.f32 %v10194_v34, %v5557_v51  ;;  %v5629_v4 = vsel %vm561_vm0, %v10240_v46, 0.0  ;;  %v5685_v7 = vmul.f32 %v10240_v46, %v10240_v46 }
0x123b   : > { %v5715_v42 = vsel %vm561_vm0, %v5687_v27, 0.0 }
0x123c   : > { %v5638_v44 = vsel %vm561_vm0, %v10244_v18, 0.0  ;;  %v10250_v14 = vadd.f32 %v5558_v58, %v9976_v12  ;;  %v5688_v12 = vmul.f32 %v10244_v18, %v10244_v18  ;;  %v5709_v50 = vsel %vm561_vm0, %v5685_v7, 0.0 }
0x123d   : > { %5639 = vadd.xlane.f32.xlu1 %v5638_v44  ;;  %5630 = vadd.xlane.f32.xlu0 %v5629_v4 }
0x123e   : > { %v5632_v43 = vsel %vm561_vm0, %v10250_v14, 0.0  ;;  %v5718_v52 = vsel %vm561_vm0, %v5688_v12, 0.0  ;;  %v5686_v47 = vmul.f32 %v10250_v14, %v10250_v14 }
0x1240   : > { %v5712_v22 = vsel %vm561_vm0, %v5686_v47, 0.0 }
0x1241   : > { %5633 = vadd.xlane.f32.xlu1 %v5632_v43  ;;  %5716 = vadd.xlane.f32.xlu0 %v5715_v42 }
0x1243   : > { %v7223_v48 = vpop.f32.mrf.mxu1 }
0x1244   : > { %v5579_v38 = vadd.f32 %v7223_v48, %v10194_v34 }
0x1245   : > { %v5570_v21 = vpop.f32.mrf.mxu1  ;;  %5719 = vadd.xlane.f32.xlu1 %v5718_v52  ;;  %5710 = vadd.xlane.f32.xlu0 %v5709_v50 }
0x1246   : > { %v10266_v2 = vadd.f32 %v5579_v38, %v10008_v8  ;;  %v5571_v5 = vadd.f32 %v10194_v34, %v5570_v21 }
0x1247   : > { %v7224_v11 = vpop.f32.mrf.mxu1 }
0x1248   : > { %v5582_v26 = vadd.f32 %v7224_v11, %v10194_v34  ;;  %v5647_v37 = vsel %vm561_vm0, %v10266_v2, 0.0  ;;  %v10276_v1 = vadd.f32 %v5571_v5, %v10014_v35  ;;  %v5691_v35 = vmul.f32 %v10266_v2, %v10266_v2 }
0x1249   : > { %v5573_v62 = vpop.f32.mrf.mxu1  ;;  %5713 = vadd.xlane.f32.xlu1 %v5712_v22  ;;  %5648 = vadd.xlane.f32.xlu0 %v5647_v37 }
0x124a   : > { %v10279_v8 = vadd.f32 %v5582_v26, %v10011_v49  ;;  %v5574_v55 = vadd.f32 %v10194_v34, %v5573_v62  ;;  %v5641_v56 = vsel %vm561_vm0, %v10276_v1, 0.0  ;;  %v5727_v28 = vsel %vm561_vm0, %v5691_v35, 0.0 }
0x124c   : > { %v5650_v9 = vsel %vm561_vm0, %v10279_v8, 0.0  ;;  %v10286_v3 = vadd.f32 %v5574_v55, %v10005_v59  ;;  %v5692_v23 = vmul.f32 %v10279_v8, %v10279_v8  ;;  %v5689_v59 = vmul.f32 %v10276_v1, %v10276_v1 }
0x124d   : > { %5651 = vadd.xlane.f32.xlu1 %v5650_v9  ;;  %5642 = vadd.xlane.f32.xlu0 %v5641_v56 }
0x124e   : > { %v5644_v49 = vsel %vm561_vm0, %v10286_v3, 0.0  ;;  %v5730_v60 = vsel %vm561_vm0, %v5692_v23, 0.0  ;;  %v5721_v30 = vsel %vm561_vm0, %v5689_v59, 0.0  ;;  %v5690_v16 = vmul.f32 %v10286_v3, %v10286_v3 }
0x1250   : > { %v5724_v25 = vsel %vm561_vm0, %v5690_v16, 0.0 }
0x1251   : > { %5645 = vadd.xlane.f32.xlu1 %v5644_v49  ;;  %5728 = vadd.xlane.f32.xlu0 %v5727_v28 }
0x1252   : > { %v7227_v53 = vpop.f32.mrf.mxu1 }
0x1253   : > { %v5595_v57 = vadd.f32 %v7227_v53, %v10194_v34 }
0x1254   : > { %v5586_v6 = vpop.f32.mrf.mxu1 }
0x1255   : > { %v10301_v63 = vadd.f32 %v5595_v57, %v10047_v32  ;;  %v5587_v33 = vadd.f32 %v10194_v34, %v5586_v6  ;;  %5731 = vadd.xlane.f32.xlu1 %v5730_v60  ;;  %5722 = vadd.xlane.f32.xlu0 %v5721_v30 }
0x1256   : > { %v7228_v19 = vpop.f32.mrf.mxu1 }
0x1257   : > { %v5598_v40 = vadd.f32 %v7228_v19, %v10194_v34  ;;  %v5659_v45 = vsel %vm561_vm0, %v10301_v63, 0.0  ;;  %v10315_v39 = vadd.f32 %v5587_v33, %v10036_v24 }
0x1258   : > { %v5589_v20 = vpop.f32.mrf.mxu1 }
0x1259   : > { %v10312_v32 = vadd.f32 %v5598_v40, %v10043_v13  ;;  %v5590_v15 = vadd.f32 %v10194_v34, %v5589_v20  ;;  %5725 = vadd.xlane.f32.xlu1 %v5724_v25  ;;  %5660 = vadd.xlane.f32.xlu0 %v5659_v45  ;;  %v5653_v31 = vsel %vm561_vm0, %v10315_v39, 0.0  ;;  %v5693_v13 = vmul.f32 %v10315_v39, %v10315_v39 }
0x125b   : > { %v5662_v54 = vsel %vm561_vm0, %v10312_v32, 0.0  ;;  %v10322_v36 = vadd.f32 %v5590_v15, %v10033_v0  ;;  %v5733_v34 = vsel %vm561_vm0, %v5693_v13, 0.0  ;;  %v5695_v0 = vmul.f32 %v10301_v63, %v10301_v63 }
0x125c   : > { %v5696_v4 = vmul.f32 %v10312_v32, %v10312_v32 }
0x125d   : > { %5663 = vadd.xlane.f32.xlu1 %v5662_v54  ;;  %5654 = vadd.xlane.f32.xlu0 %v5653_v31  ;;  %v5656_v24 = vsel %vm561_vm0, %v10322_v36, 0.0  ;;  %v5694_v51 = vmul.f32 %v10322_v36, %v10322_v36  ;;  %v5739_v44 = vsel %vm561_vm0, %v5695_v0, 0.0 }
0x125e   : > { %v5742_v27 = vsel %vm561_vm0, %v5696_v4, 0.0 }
0x125f   : > { %v5736_v58 = vsel %vm561_vm0, %v5694_v51, 0.0 }
0x1261   : > { %5657 = vadd.xlane.f32.xlu1 %v5656_v24  ;;  %5734 = vadd.xlane.f32.xlu0 %v5733_v34 }
0x1265   : > { %5737 = vadd.xlane.f32.xlu1 %v5736_v58  ;;  %5740 = vadd.xlane.f32.xlu0 %v5739_v44 }
0x1269   : > { %5743 = vadd.xlane.f32.xlu1 %v5742_v27 }
0x12b2   : > { %v5625_v7 = vpop.xlane.xlu0 %5624 }
0x12b3   : > { %v5667_v12 = vmul.f32 0.03125, %v5625_v7 }
0x12b5   : > { %v5763_v21 = vmul.f32 %v5667_v12, %v5667_v12  ;;  %v5811_v0 = vsub.f32 %v10198_v61, %v5667_v12 }
0x12b6   : > { %v5628_v43 = vpop.xlane.xlu1 %5627  ;;  %v5619_v42 = vpop.xlane.xlu0 %5618 }
0x12b7   : > { %v10340_v48 = vmul.f32 0.03125, %v5628_v43  ;;  %v10342_v52 = vmul.f32 0.03125, %v5619_v42 }
0x12b9   : > { %v5764_v11 = vmul.f32 %v10340_v48, %v10340_v48  ;;  %v5761_v22 = vmul.f32 %v10342_v52, %v10342_v52 }
0x12ba   : > { %v5622_v38 = vpop.xlane.xlu1 %5621  ;;  %v5705_v50 = vpop.xlane.xlu0 %5704 }
0x12bb   : > { %v5747_v5 = vmul.f32 0.03125, %v5705_v50  ;;  %v10346_v26 = vmul.f32 0.03125, %v5622_v38  ;;  %v10368_v50 = vld [vmem:[%s10521_s11 + $0x1] ss:$0 sm:$0xff] }
0x12bd   : > { %v5779_v47 = vsub.f32 %v5747_v5, %v5763_v21  ;;  %v5762_v53 = vmul.f32 %v10346_v26, %v10346_v26 }
0x12be   : > { %v5708_v37 = vpop.xlane.xlu1 %5707  ;;  %v5699_v62 = vpop.xlane.xlu0 %5698 }
0x12bf   : > { %v5795_v55 = vmax.f32 %v5779_v47, 0.0  ;;  %v5748_v9 = vmul.f32 0.03125, %v5708_v37  ;;  %v5745_v56 = vmul.f32 0.03125, %v5699_v62  ;;  %v10377_v37 = vld [vmem:[%s10522_s12 + $0x1] ss:$0 sm:$0xff] }
0x12c1   : > { %v5827_v35 = vadd.f32 1e-06, %v5795_v55  ;;  %v5780_v49 = vsub.f32 %v5748_v9, %v5764_v11  ;;  %v5777_v28 = vsub.f32 %v5745_v56, %v5761_v22  ;;  %v5812_v11 = vsub.f32 %v10208_v10, %v10340_v48 }
0x12c2   : > { %v5702_v23 = vpop.xlane.xlu1 %5701  ;;  %v5637_v59 = vpop.xlane.xlu0 %5636  ;;  %v5809_v10 = vsub.f32 %v10202_v17, %v10342_v52 }
0x12c3   : > { %7692 = vrsqrt.f32 %v5827_v35  ;;  %v5796_v57 = vmax.f32 %v5780_v49, 0.0  ;;  %v5793_v6 = vmax.f32 %v5777_v28, 0.0  ;;  %v5746_v33 = vmul.f32 0.03125, %v5702_v23 }
0x12c4   : > { %v10352_v45 = vmul.f32 0.03125, %v5637_v59 }
0x12c5   : > { %v5828_v60 = vadd.f32 1e-06, %v5796_v57  ;;  %v5825_v30 = vadd.f32 1e-06, %v5793_v6  ;;  %v5778_v19 = vsub.f32 %v5746_v33, %v5762_v53 }
0x12c6   : > { %v5640_v16 = vpop.xlane.xlu1 %5639  ;;  %v5631_v40 = vpop.xlane.xlu0 %5630  ;;  %v5767_v13 = vmul.f32 %v10352_v45, %v10352_v45 }
0x12c7   : > { %7694 = vrsqrt.f32 %v5828_v60  ;;  %v5794_v20 = vmax.f32 %v5778_v19, 0.0  ;;  %v10354_v25 = vmul.f32 0.03125, %v5640_v16  ;;  %v10358_v24 = vmul.f32 0.03125, %v5631_v40 }
0x12c8   : > { %7696 = vrsqrt.f32 %v5825_v30  ;;  %v5810_v19 = vsub.f32 %v10212_v29, %v10346_v26 }
0x12c9   : > { %v5826_v15 = vadd.f32 1e-06, %v5794_v20  ;;  %v5768_v58 = vmul.f32 %v10354_v25, %v10354_v25  ;;  %v5765_v27 = vmul.f32 %v10358_v24, %v10358_v24 }
0x12ca   : > { %v5634_v54 = vpop.xlane.xlu1 %5633  ;;  %v5717_v31 = vpop.xlane.xlu0 %5716 }
0x12cb   : > { %7698 = vrsqrt.f32 %v5826_v15  ;;  %v5751_v34 = vmul.f32 0.03125, %v5717_v31  ;;  %v10370_v21 = vmul.f32 0.03125, %v5634_v54 }
0x12cd   : > { %v5783_v51 = vsub.f32 %v5751_v34, %v5767_v13  ;;  %v5766_v48 = vmul.f32 %v10370_v21, %v10370_v21 }
0x12ce   : > { %v5720_v44 = vpop.xlane.xlu1 %5719  ;;  %v5711_v4 = vpop.xlane.xlu0 %5710 }
0x12cf   : > { %v5799_v7 = vmax.f32 %v5783_v51, 0.0  ;;  %v5752_v43 = vmul.f32 0.03125, %v5720_v44  ;;  %v5749_v42 = vmul.f32 0.03125, %v5711_v4 }
0x12d0   : > { %v7693_v38 = vpop.eup %7692 }
0x12d1   : > { %v5859_v61 = vmul.f32 %v7693_v38, %v5811_v0  ;;  %v5831_v12 = vadd.f32 1e-06, %v5799_v7  ;;  %v5784_v5 = vsub.f32 %v5752_v43, %v5768_v58  ;;  %v5781_v47 = vsub.f32 %v5749_v42, %v5765_v27 }
0x12d2   : > { %v5714_v62 = vpop.xlane.xlu1 %5713  ;;  %v5649_v22 = vpop.xlane.xlu0 %5648  ;;  %v5815_v7 = vsub.f32 %v10233_v41, %v10352_v45  ;;  %v5816_v45 = vsub.f32 %v10244_v18, %v10354_v25 }
0x12d3   : > { %v5881_v55 = vmul.f32 %v10368_v50, %v5859_v61  ;;  %7700 = vrsqrt.f32 %v5831_v12  ;;  %v5800_v9 = vmax.f32 %v5784_v5, 0.0  ;;  %v5797_v56 = vmax.f32 %v5781_v47, 0.0 }
0x12d4   : > { %v7695_v35 = vpop.eup %7694  ;;  %v5750_v49 = vmul.f32 0.03125, %v5714_v62  ;;  %v10397_v52 = vmul.f32 0.03125, %v5649_v22 }
0x12d5   : > { %v7697_v28 = vpop.eup %7696  ;;  %v5903_v53 = vadd.f32 %v10377_v37, %v5881_v55  ;;  %v5860_v23 = vmul.f32 %v7695_v35, %v5812_v11  ;;  %v5832_v59 = vadd.f32 1e-06, %v5800_v9  ;;  %v5829_v57 = vadd.f32 1e-06, %v5797_v56 }
0x12d6   : > { %v5857_v6 = vmul.f32 %v7697_v28, %v5809_v10  ;;  %v5782_v33 = vsub.f32 %v5750_v49, %v5766_v48  ;;  %v5652_v60 = vpop.xlane.xlu1 %5651  ;;  %v5643_v30 = vpop.xlane.xlu0 %5642  ;;  %v5771_v0 = vmul.f32 %v10397_v52, %v10397_v52 }
0x12d7   : > { %5919 = vst.msk [vmem:[%s10385_s24 + $0x10] sm:$0xff] %vm561_vm0, %v5903_v53  ;;  %v5882_v17 = vmul.f32 %v10368_v50, %v5860_v23  ;;  %7702 = vrsqrt.f32 %v5832_v59  ;;  %v10402_v26 = vmul.f32 0.03125, %v5652_v60  ;;  %v10409_v58 = vmul.f32 0.03125, %v5643_v30 }
0x12d8   : > { %v7699_v16 = vpop.eup %7698  ;;  %v5879_v40 = vmul.f32 %v10368_v50, %v5857_v6  ;;  %7704 = vrsqrt.f32 %v5829_v57  ;;  %v5798_v20 = vmax.f32 %v5782_v33, 0.0  ;;  %v5813_v53 = vsub.f32 %v10240_v46, %v10358_v24 }
0x12d9   : > { %v5904_v15 = vadd.f32 %v10377_v37, %v5882_v17  ;;  %v5858_v54 = vmul.f32 %v7699_v16, %v5810_v19  ;;  %v5772_v43 = vmul.f32 %v10402_v26, %v10402_v26  ;;  %v5769_v61 = vmul.f32 %v10409_v58, %v10409_v58 }
0x12da   : > { %v5901_v31 = vadd.f32 %v10377_v37, %v5879_v40  ;;  %v5830_v29 = vadd.f32 1e-06, %v5798_v20  ;;  %v5646_v13 = vpop.xlane.xlu1 %5645  ;;  %v5729_v34 = vpop.xlane.xlu0 %5728  ;;  %v5814_v24 = vsub.f32 %v10250_v14, %v10370_v21 }
0x12db   : > { %5920 = vst.msk [vmem:[%s10385_s24 + $0x18] sm:$0xff] %vm561_vm0, %v5904_v15  ;;  %v5880_v51 = vmul.f32 %v10368_v50, %v5858_v54  ;;  %v5755_v44 = vmul.f32 0.03125, %v5729_v34  ;;  %v10422_v62 = vmul.f32 0.03125, %v5646_v13 }
0x12dc   : > { %5917 = vst.msk [vmem:[%s10385_s24] sm:$0xff] %vm561_vm0, %v5901_v31  ;;  %7706 = vrsqrt.f32 %v5830_v29 }
0x12dd   : > { %v5902_v4 = vadd.f32 %v10377_v37, %v5880_v51  ;;  %v5787_v27 = vsub.f32 %v5755_v44, %v5771_v0  ;;  %v5770_v23 = vmul.f32 %v10422_v62, %v10422_v62 }
0x12de   : > { %v5732_v42 = vpop.xlane.xlu1 %5731  ;;  %v5723_v38 = vpop.xlane.xlu0 %5722 }
0x12df   : > { %5918 = vst.msk [vmem:[%s10385_s24 + $0x8] sm:$0xff] %vm561_vm0, %v5902_v4  ;;  %v5803_v12 = vmax.f32 %v5787_v27, 0.0  ;;  %v5756_v5 = vmul.f32 0.03125, %v5732_v42  ;;  %v5753_v47 = vmul.f32 0.03125, %v5723_v38 }
0x12e0   : > { %v7701_v11 = vpop.eup %7700 }
0x12e1   : > { %v5863_v22 = vmul.f32 %v7701_v11, %v5815_v7  ;;  %v5835_v55 = vadd.f32 1e-06, %v5803_v12  ;;  %v5788_v9 = vsub.f32 %v5756_v5, %v5772_v43  ;;  %v5785_v41 = vsub.f32 %v5753_v47, %v5769_v61 }
0x12e2   : > { %v5726_v56 = vpop.xlane.xlu1 %5725  ;;  %v5661_v35 = vpop.xlane.xlu0 %5660  ;;  %v5819_v43 = vsub.f32 %v10266_v2, %v10397_v52  ;;  %v5820_v2 = vsub.f32 %v10279_v8, %v10402_v26 }
0x12e3   : > { %v5885_v10 = vmul.f32 %v10368_v50, %v5863_v22  ;;  %7708 = vrsqrt.f32 %v5835_v55  ;;  %v5804_v48 = vmax.f32 %v5788_v9, 0.0  ;;  %v5801_v49 = vmax.f32 %v5785_v41, 0.0 }
0x12e4   : > { %v7703_v28 = vpop.eup %7702  ;;  %v5754_v59 = vmul.f32 0.03125, %v5726_v56  ;;  %v10442_v34 = vmul.f32 0.03125, %v5661_v35 }
0x12e5   : > { %v7705_v57 = vpop.eup %7704  ;;  %v5907_v6 = vadd.f32 %v10377_v37, %v5885_v10  ;;  %v5864_v18 = vmul.f32 %v7703_v28, %v5816_v45  ;;  %v5836_v25 = vadd.f32 1e-06, %v5804_v48  ;;  %v5833_v33 = vadd.f32 1e-06, %v5801_v49 }
0x12e6   : > { %v5861_v60 = vmul.f32 %v7705_v57, %v5813_v53  ;;  %v5786_v30 = vsub.f32 %v5754_v59, %v5770_v23  ;;  %v5664_v19 = vpop.xlane.xlu1 %5663  ;;  %v5655_v17 = vpop.xlane.xlu0 %5654  ;;  %v5775_v42 = vmul.f32 %v10442_v34, %v10442_v34  ;;  %v5817_v28 = vsub.f32 %v10276_v1, %v10409_v58 }
0x12e7   : > { %5923 = vst.msk [vmem:[%s10385_s24 + $0x30] sm:$0xff] %vm561_vm0, %v5907_v6  ;;  %v5886_v16 = vmul.f32 %v10368_v50, %v5864_v18  ;;  %7710 = vrsqrt.f32 %v5836_v25  ;;  %v10435_v46 = vmul.f32 0.03125, %v5655_v17  ;;  %v5680_v55 = vmul.f32 0.03125, %v5664_v19 }
0x12e8   : > { %v5883_v40 = vmul.f32 %v10368_v50, %v5861_v60  ;;  %7712 = vrsqrt.f32 %v5833_v33  ;;  %v5802_v20 = vmax.f32 %v5786_v30, 0.0  ;;  %v5818_v1 = vsub.f32 %v10286_v3, %v10422_v62 }
0x12e9   : > { %v7707_v15 = vpop.eup %7706  ;;  %v5908_v54 = vadd.f32 %v10377_v37, %v5886_v16  ;;  %v5773_v14 = vmul.f32 %v10435_v46, %v10435_v46  ;;  %v5776_v53 = vmul.f32 %v5680_v55, %v5680_v55  ;;  %v5821_v62 = vsub.f32 %v10315_v39, %v10435_v46 }
0x12ea   : > { %v5905_v31 = vadd.f32 %v10377_v37, %v5883_v40  ;;  %v5862_v29 = vmul.f32 %v7707_v15, %v5814_v24  ;;  %v5834_v13 = vadd.f32 1e-06, %v5802_v20  ;;  %v5658_v51 = vpop.xlane.xlu1 %5657  ;;  %v5735_v0 = vpop.xlane.xlu0 %5734 }
0x12eb   : > { %5924 = vst.msk [vmem:[%s10385_s24 + $0x38] sm:$0xff] %vm561_vm0, %v5908_v54  ;;  %v10448_v21 = vmul.f32 0.03125, %v5658_v51  ;;  %v5757_v44 = vmul.f32 0.03125, %v5735_v0 }
0x12ec   : > { %5921 = vst.msk [vmem:[%s10385_s24 + $0x20] sm:$0xff] %vm561_vm0, %v5905_v31  ;;  %v5884_v4 = vmul.f32 %v10368_v50, %v5862_v29  ;;  %7714 = vrsqrt.f32 %v5834_v13  ;;  %v5823_v13 = vsub.f32 %v10301_v63, %v10442_v34 }
0x12ed   : > { %v5789_v27 = vsub.f32 %v5757_v44, %v5773_v14  ;;  %v5774_v12 = vmul.f32 %v10448_v21, %v10448_v21  ;;  %v5822_v54 = vsub.f32 %v10322_v36, %v10448_v21  ;;  %v5824_v36 = vsub.f32 %v10312_v32, %v5680_v55 }
0x12ee   : > { %v5906_v7 = vadd.f32 %v10377_v37, %v5884_v4  ;;  %v5738_v38 = vpop.xlane.xlu1 %5737  ;;  %v5741_v61 = vpop.xlane.xlu0 %5740 }
0x12ef   : > { %v5805_v5 = vmax.f32 %v5789_v27, 0.0  ;;  %v5758_v47 = vmul.f32 0.03125, %v5738_v38  ;;  %v5759_v11 = vmul.f32 0.03125, %v5741_v61 }
0x12f0   : > { %v7709_v22 = vpop.eup %7708  ;;  %5922 = vst.msk [vmem:[%s10385_s24 + $0x28] sm:$0xff] %vm561_vm0, %v5906_v7 }
0x12f1   : > { %v5867_v9 = vmul.f32 %v7709_v22, %v5819_v43  ;;  %v5837_v41 = vadd.f32 1e-06, %v5805_v5  ;;  %v5790_v45 = vsub.f32 %v5758_v47, %v5774_v12  ;;  %v5791_v56 = vsub.f32 %v5759_v11, %v5775_v42 }
0x12f2   : > { %v5744_v52 = vpop.xlane.xlu1 %5743 }
0x12f3   : > { %v5889_v35 = vmul.f32 %v10368_v50, %v5867_v9  ;;  %7716 = vrsqrt.f32 %v5837_v41  ;;  %v5806_v10 = vmax.f32 %v5790_v45, 0.0  ;;  %v5807_v48 = vmax.f32 %v5791_v56, 0.0 }
0x12f4   : > { %v7711_v49 = vpop.eup %7710  ;;  %v5760_v23 = vmul.f32 0.03125, %v5744_v52 }
0x12f5   : > { %v7713_v59 = vpop.eup %7712  ;;  %v5911_v57 = vadd.f32 %v10377_v37, %v5889_v35  ;;  %v5868_v6 = vmul.f32 %v7711_v49, %v5820_v2  ;;  %v5838_v18 = vadd.f32 1e-06, %v5806_v10  ;;  %v5839_v8 = vadd.f32 1e-06, %v5807_v48 }
0x12f6   : > { %v5865_v26 = vmul.f32 %v7713_v59, %v5817_v28  ;;  %v5792_v25 = vsub.f32 %v5760_v23, %v5776_v53 }
0x12f7   : > { %5927 = vst.msk [vmem:[%s10385_s24 + $0x50] sm:$0xff] %vm561_vm0, %v5911_v57  ;;  %v5890_v33 = vmul.f32 %v10368_v50, %v5868_v6  ;;  %7718 = vrsqrt.f32 %v5838_v18 }
0x12f8   : > { %v5887_v58 = vmul.f32 %v10368_v50, %v5865_v26  ;;  %7720 = vrsqrt.f32 %v5839_v8  ;;  %v5808_v60 = vmax.f32 %v5792_v25, 0.0 }
0x12f9   : > { %v7715_v30 = vpop.eup %7714  ;;  %v5912_v19 = vadd.f32 %v10377_v37, %v5890_v33 }
0x12fa   : > { %v5909_v17 = vadd.f32 %v10377_v37, %v5887_v58  ;;  %v5866_v16 = vmul.f32 %v7715_v30, %v5818_v1  ;;  %v5840_v24 = vadd.f32 1e-06, %v5808_v60 }
0x12fb   : > { %5928 = vst.msk [vmem:[%s10385_s24 + $0x58] sm:$0xff] %vm561_vm0, %v5912_v19 }
0x12fc   : > { %5925 = vst.msk [vmem:[%s10385_s24 + $0x40] sm:$0xff] %vm561_vm0, %v5909_v17  ;;  %v5888_v40 = vmul.f32 %v10368_v50, %v5866_v16  ;;  %7722 = vrsqrt.f32 %v5840_v24 }
0x12fe   : > { %v5910_v3 = vadd.f32 %v10377_v37, %v5888_v40 }
0x1300   : > { %v7717_v20 = vpop.eup %7716  ;;  %5926 = vst.msk [vmem:[%s10385_s24 + $0x48] sm:$0xff] %vm561_vm0, %v5910_v3 }
0x1301   : > { %v5869_v15 = vmul.f32 %v7717_v20, %v5821_v62 }
0x1303   : > { %v5891_v31 = vmul.f32 %v10368_v50, %v5869_v15 }
0x1304   : > { %v7719_v29 = vpop.eup %7718 }
0x1305   : > { %v7721_v51 = vpop.eup %7720  ;;  %v5913_v0 = vadd.f32 %v10377_v37, %v5891_v31  ;;  %v5870_v39 = vmul.f32 %v7719_v29, %v5822_v54 }
0x1306   : > { %v5871_v46 = vmul.f32 %v7721_v51, %v5823_v13 }
0x1307   : > { %5929 = vst.msk [vmem:[%s10385_s24 + $0x60] sm:$0xff] %vm561_vm0, %v5913_v0  ;;  %v5892_v14 = vmul.f32 %v10368_v50, %v5870_v39 }
0x1308   : > { %v5893_v21 = vmul.f32 %v10368_v50, %v5871_v46 }
0x1309   : > { %v7723_v44 = vpop.eup %7722  ;;  %v5914_v4 = vadd.f32 %v10377_v37, %v5892_v14 }
0x130a   : > { %v5915_v27 = vadd.f32 %v10377_v37, %v5893_v21  ;;  %v5872_v63 = vmul.f32 %v7723_v44, %v5824_v36 }
0x130b   : > { %5930 = vst.msk [vmem:[%s10385_s24 + $0x68] sm:$0xff] %vm561_vm0, %v5914_v4 }
0x130c   : > { %5931 = vst.msk [vmem:[%s10385_s24 + $0x70] sm:$0xff] %vm561_vm0, %v5915_v27  ;;  %v5894_v34 = vmul.f32 %v10368_v50, %v5872_v63 }
0x130e   : > { %v5916_v7 = vadd.f32 %v10377_v37, %v5894_v34 }
0x1310   : > { %5932 = vst.msk [vmem:[%s10385_s24 + $0x78] sm:$0xff] %vm561_vm0, %v5916_v7 }
0x1311 PF: > { %s25_s29 = sadd.s32 1, %s7731_s29  }
0x1312   : > { %p22_p4 = scmp.ge.s32.totalorder %s25_s29, 4  }
0x1314   :  { %24 = sbr.rel (!%p22_p4) target bundleno = 1 (0x1), region = 135 }

</bundles_post_ra>
